<compile_context>
chip_gen: v5e
topology: v5e:2x2
jax: 0.10.0
libtpu: 0.0.40
codegen_flags: <defaults>
</compile_context>

<pallas_src>
import functools

import jax
import jax.numpy as jnp
from jax import lax
from jax.experimental import pallas as pl
from jax.experimental.pallas import tpu as pltpu


DROP_P = 0.1

# lowbias32-style integer hash constants (int32 two's-complement wraparound).
_MIX_SEED = 0x27D4EB2F
_HASH_C1 = 0x7FEB352D
_HASH_C2 = 0x846CA68B - (1 << 32)   # keep literal inside int32 range
_MASK24 = 0x00FFFFFF


def _hash_bits24(idx, seed):
    """Per-element 24-bit uniform random integer from (element index, seed)."""
    h = idx ^ (seed * _MIX_SEED)
    h = h ^ lax.shift_right_logical(h, 16)
    h = h * _HASH_C1
    h = h ^ lax.shift_right_logical(h, 15)
    h = h * _HASH_C2
    h = h ^ lax.shift_right_logical(h, 16)
    return h & _MASK24                      # non-negative int32 in [0, 2^24)


def _softmax_dropout_kernel(seed_ref, x_ref, o_ref, *, p, tm, n):
    x = x_ref[...].astype(jnp.float32)

    # Numerically-stable softmax along the last (lane) dim; fold the inverted
    # dropout scale 1/(1-p) into the per-row reciprocal (one (tm,1) divide).
    m = jnp.max(x, axis=-1, keepdims=True)
    e = jnp.exp(x - m)
    s = jnp.sum(e, axis=-1, keepdims=True)
    inv = jnp.float32(1.0 / (1.0 - p)) / s

    # Dropout mask: hash of the global element index + seed, integer threshold.
    row0 = pl.program_id(0) * tm
    rows_i = lax.broadcasted_iota(jnp.int32, (tm, n), 0)
    cols_i = lax.broadcasted_iota(jnp.int32, (tm, n), 1)
    idx = (row0 + rows_i) * n + cols_i
    r = _hash_bits24(idx, seed_ref[0])
    thresh = int(round(p * (1 << 24)))      # keep with prob (1 - p)
    keep = r >= thresh

    out = jnp.where(keep, e * inv, jnp.float32(0.0))
    o_ref[...] = out.astype(o_ref.dtype)


def _pick_row_tile(rows, tm_req):
    """Largest multiple of 8 that divides `rows` and is <= tm_req (else rows)."""
    tm = min(tm_req, rows)
    tm -= tm % 8
    while tm >= 8 and rows % tm != 0:
        tm -= 8
    if tm < 8 or rows % tm != 0:
        tm = rows
    return tm


def softmax_dropout(x, seed, *, p=DROP_P, tm=512):
    """softmax(x, axis=-1) followed by inverted dropout(p) (training mode)."""
    orig_shape = x.shape
    n = orig_shape[-1]
    rows = 1
    for d in orig_shape[:-1]:
        rows *= d
    x2 = x.reshape(rows, n)

    tm = _pick_row_tile(rows, tm)
    grid = (rows // tm,)
    kernel = functools.partial(_softmax_dropout_kernel, p=p, tm=tm, n=n)

    out2 = pl.pallas_call(
        kernel,
        out_shape=jax.ShapeDtypeStruct((rows, n), x.dtype),
        grid_spec=pltpu.PrefetchScalarGridSpec(
            num_scalar_prefetch=1,
            grid=grid,
            in_specs=[pl.BlockSpec((tm, n), lambda i, seed_ref: (i, 0))],
            out_specs=pl.BlockSpec((tm, n), lambda i, seed_ref: (i, 0)),
        ),
        compiler_params=pltpu.CompilerParams(
            # Tiles are independent (seed mixed per-element, not per-step), so
            # the grid can be sharded across TensorCores on v7x.
            dimension_semantics=("parallel",),
        ),
    )(jnp.asarray([seed], dtype=jnp.int32), x2)

    return out2.reshape(orig_shape)


if __name__ == "__main__":
    # Small-shape stand-in for the module's [1, 12, 384, 384] attention map.
    B, H, S = 1, 4, 128
    key = jax.random.PRNGKey(0)
    x = jax.random.normal(key, (B, H, S, S), dtype=jnp.float32)

    out = jax.block_until_ready(softmax_dropout(x, seed=0))

    assert out.shape == (B, H, S, S)
    assert out.dtype == x.dtype
    assert bool(jnp.all(jnp.isfinite(out)))
    # Softmax outputs are strictly positive, so zeros come only from dropout;
    # the empirical drop fraction should be ~p.
    drop_frac = float(jnp.mean(out == 0.0))
    assert abs(drop_frac - DROP_P) < 0.03, f"drop fraction {drop_frac}"

    print("KERNEL_OK")
</pallas_src>

<mosaic_0001>
module attributes {stable_mosaic.version = 11 : i64} {
  func.func @_softmax_dropout_kernel(%arg0: i32, %arg1: memref<1xi32, #tpu.memory_space<smem>>, %arg2: memref<512x128xf32, #tpu.memory_space<vmem>>, %arg3: memref<512x128xf32, #tpu.memory_space<vmem>>) attributes {dimension_semantics = [#tpu.dimension_semantics<parallel>], iteration_bounds = array<i64: 1>, scalar_prefetch = 1 : i64, scratch_operands = 0 : i64, tpu.core_type = #tpu.core_type<tc>, window_params = [{transform_indices = @transform_0, window_bounds = array<i64: 512, 128>}, {transform_indices = @transform_1, window_bounds = array<i64: 512, 128>}]} {
    %c0 = arith.constant 0 : index
    %c0_0 = arith.constant 0 : index
    %0 = vector.load %arg2[%c0, %c0_0] : memref<512x128xf32, #tpu.memory_space<vmem>>, vector<512x128xf32>
    %cst = arith.constant dense<0xFF800000> : vector<512xf32>
    %1 = vector.multi_reduction <maximumf>, %0, %cst [1] : vector<512x128xf32> to vector<512xf32>
    %2 = vector.shape_cast %1 : vector<512xf32> to vector<512x1xf32>
    %3 = vector.broadcast %2 : vector<512x1xf32> to vector<512x128xf32>
    %4 = arith.subf %0, %3 : vector<512x128xf32>
    %5 = math.exp %4 : vector<512x128xf32>
    %cst_1 = arith.constant dense<0.000000e+00> : vector<512xf32>
    %6 = vector.multi_reduction <add>, %5, %cst_1 [1] : vector<512x128xf32> to vector<512xf32>
    %7 = vector.shape_cast %6 : vector<512xf32> to vector<512x1xf32>
    %cst_2 = arith.constant 1.11111116 : f32
    %8 = vector.broadcast %cst_2 : f32 to vector<512x1xf32>
    %9 = arith.divf %8, %7 : vector<512x1xf32>
    %c512_i32 = arith.constant 512 : i32
    %10 = arith.muli %arg0, %c512_i32 : i32
    %11 = tpu.iota {dimensions = array<i32: 0>} : vector<512x128xi32>
    %12 = tpu.iota {dimensions = array<i32: 1>} : vector<512x128xi32>
    %13 = vector.broadcast %10 : i32 to vector<512x128xi32>
    %14 = arith.addi %13, %11 : vector<512x128xi32>
    %c128_i32 = arith.constant 128 : i32
    %15 = vector.broadcast %c128_i32 : i32 to vector<512x128xi32>
    %16 = arith.muli %14, %15 : vector<512x128xi32>
    %17 = arith.addi %16, %12 : vector<512x128xi32>
    %c0_3 = arith.constant 0 : index
    %18 = memref.load %arg1[%c0_3] : memref<1xi32, #tpu.memory_space<smem>>
    %c668265263_i32 = arith.constant 668265263 : i32
    %19 = arith.muli %18, %c668265263_i32 : i32
    %20 = vector.broadcast %19 : i32 to vector<512x128xi32>
    %21 = arith.xori %17, %20 : vector<512x128xi32>
    %c16_i32 = arith.constant 16 : i32
    %22 = vector.broadcast %c16_i32 : i32 to vector<512x128xi32>
    %23 = arith.shrui %21, %22 : vector<512x128xi32>
    %24 = arith.xori %21, %23 : vector<512x128xi32>
    %c2146121005_i32 = arith.constant 2146121005 : i32
    %25 = vector.broadcast %c2146121005_i32 : i32 to vector<512x128xi32>
    %26 = arith.muli %24, %25 : vector<512x128xi32>
    %c15_i32 = arith.constant 15 : i32
    %27 = vector.broadcast %c15_i32 : i32 to vector<512x128xi32>
    %28 = arith.shrui %26, %27 : vector<512x128xi32>
    %29 = arith.xori %26, %28 : vector<512x128xi32>
    %c-2073254261_i32 = arith.constant -2073254261 : i32
    %30 = vector.broadcast %c-2073254261_i32 : i32 to vector<512x128xi32>
    %31 = arith.muli %29, %30 : vector<512x128xi32>
    %c16_i32_4 = arith.constant 16 : i32
    %32 = vector.broadcast %c16_i32_4 : i32 to vector<512x128xi32>
    %33 = arith.shrui %31, %32 : vector<512x128xi32>
    %34 = arith.xori %31, %33 : vector<512x128xi32>
    %c16777215_i32 = arith.constant 16777215 : i32
    %35 = vector.broadcast %c16777215_i32 : i32 to vector<512x128xi32>
    %36 = arith.andi %34, %35 : vector<512x128xi32>
    %c1677722_i32 = arith.constant 1677722 : i32
    %37 = vector.broadcast %c1677722_i32 : i32 to vector<512x128xi32>
    %38 = arith.cmpi sge, %36, %37 : vector<512x128xi32>
    %39 = vector.broadcast %9 : vector<512x1xf32> to vector<512x128xf32>
    %40 = arith.mulf %5, %39 : vector<512x128xf32>
    %cst_5 = arith.constant 0.000000e+00 : f32
    %41 = vector.broadcast %cst_5 : f32 to vector<512x128xf32>
    %42 = arith.select %38, %40, %41 : vector<512x128xi1>, vector<512x128xf32>
    %c0_6 = arith.constant 0 : index
    %c0_7 = arith.constant 0 : index
    %43 = vector.load %arg3[%c0_6, %c0_7] : memref<512x128xf32, #tpu.memory_space<vmem>>, vector<512x128xf32>
    tpu.vector_store %arg3[%c0_6, %c0_7], %42 {strides = array<i32>} : memref<512x128xf32, #tpu.memory_space<vmem>>, vector<512x128xf32>,
    return
  }
  func.func @transform_0(%arg0: i32, %arg1: memref<1xi32, #tpu.memory_space<smem>>) -> (i32, i32) {
    %c0_i32 = arith.constant 0 : i32
    %c0_i32_0 = arith.constant 0 : i32
    return %arg0, %c0_i32 : i32, i32
  }
  func.func @transform_1(%arg0: i32, %arg1: memref<1xi32, #tpu.memory_space<smem>>) -> (i32, i32) {
    %c0_i32 = arith.constant 0 : i32
    %c0_i32_0 = arith.constant 0 : i32
    return %arg0, %c0_i32 : i32, i32
  }
}

</mosaic_0001>

<bundles_post_ra>
// kernel: tpu_custom_call.1
= control target key start
LH: loop header
LB: loop body
LE: loop exit
PB: predicated region body
PF: predicated region fallthrough
CT: control target
= control target key end

     0   :  { %8 = vsyncpa [#allocation5], 0  ;;  %s4895_s0 = inlined_call_operand.<no memory space> [shape: s32[1], index: 0, kind: input, shape index: {}]   ;;  %s4896_s1 = inlined_call_operand.hbm [shape: f32[512,128], index: 1, kind: input, shape index: {}]   ;;  %s4897_s2 = inlined_call_operand.hbm [shape: f32[512,128], index: 2, kind: output, shape index: {}]  }
   0x1   :  { %9 = vsyncpa [#allocation6], 0  ;;  %s14_s11 = sshll.u32 %s4896_s1, 4  ;;  %s2990_s12 = smov [#allocation4]   ;;  %s15_s11 = int_to_ptr.hbm [resolvable:$true] %s14_s11 }
   0x2   :  { %s16_s13 = sshll.u32 %s2990_s12, 4  ;;  %s2991_s14 = smov 128   ;;  %s17_s13 = int_to_ptr.vmem [resolvable:$true] %s16_s13 }
   0x3   :  { %s2992_s15 = smov 8  }
   0x4   :  { %22 = dma.hbm_to_vmem [thread:$0]  %s15_s11, 8192, %s17_s13, [#allocation5], %s2991_s14, %s2991_s14, %s2992_s15  }
   0x5   :  { %2986 = dma.done.wait [#allocation5], 8192  }
   0x6   :  { %2987 = vsyncadd [#allocation5], 4294959104  ;;  %v3015_v0 = vld [vmem:[#allocation4 + $0x20] sm:$0xff]  ;;  %v3017_v1 = vld [vmem:[#allocation4 + $0x10] sm:$0xff]  ;;  %s1761_s17 = smul.u32 668265263, %s4895_s0 }
   0x7   :  { %v3019_v2 = vld [vmem:[#allocation4] sm:$0xff]  ;;  %99 = vmax.xlane.f32.xlu2 %v3015_v0  ;;  %95 = vmax.xlane.f32.xlu1 %v3017_v1  ;;  %v3024_v3 = vld [vmem:[#allocation4 + $0x28] sm:$0xff]  ;;  %v3026_v4 = vld [vmem:[#allocation4 + $0x18] sm:$0xff]  ;;  %s2993_s0 = smov [#allocation7]   ;;  %s2665_s21 = sshll.u32 %s4897_s2, 4  ;;  %s2666_s21 = int_to_ptr.hbm [resolvable:$true] %s2665_s21 }
   0x8   :  { %91 = vmax.xlane.f32.xlu0 %v3019_v2  ;;  %v3028_v5 = vld [vmem:[#allocation4 + $0x8] sm:$0xff]  ;;  %v3033_v6 = vld [vmem:[#allocation4 + $0x40] sm:$0xff]  ;;  %v3035_v7 = vld [vmem:[#allocation4 + $0x38] sm:$0xff]  ;;  %s2663_s18 = sshll.u32 %s2993_s0, 4  ;;  %s2664_s18 = int_to_ptr.vmem [resolvable:$true] %s2663_s18 }
   0x9   :  { %v3037_v8 = vld [vmem:[#allocation4 + $0x30] sm:$0xff]  ;;  %v3042_v9 = vld [vmem:[#allocation4 + $0x58] sm:$0xff]  ;;  %v3046_v11 = vld [vmem:[#allocation4 + $0x48] sm:$0xff] }
   0xa   :  { %v3044_v10 = vld [vmem:[#allocation4 + $0x50] sm:$0xff]  ;;  %v3053_v13 = vld [vmem:[#allocation4 + $0x68] sm:$0xff]  ;;  %v3055_v14 = vld [vmem:[#allocation4 + $0x60] sm:$0xff] }
   0xb   :  { %v3051_v12 = vld [vmem:[#allocation4 + $0x70] sm:$0xff]  ;;  %v3060_v15 = vld [vmem:[#allocation4 + $0x88] sm:$0xff]  ;;  %v3062_v16 = vld [vmem:[#allocation4 + $0x80] sm:$0xff] }
   0xc   :  { %v3064_v17 = vld [vmem:[#allocation4 + $0x78] sm:$0xff]  ;;  %v3069_v18 = vld [vmem:[#allocation4 + $0xa0] sm:$0xff]  ;;  %v3073_v20 = vld [vmem:[#allocation4 + $0x90] sm:$0xff] }
   0xd   :  { %v3071_v19 = vld [vmem:[#allocation4 + $0x98] sm:$0xff]  ;;  %v3080_v22 = vld [vmem:[#allocation4 + $0xb0] sm:$0xff]  ;;  %v3082_v23 = vld [vmem:[#allocation4 + $0xa8] sm:$0xff] }
   0xe   :  { %v3078_v21 = vld [vmem:[#allocation4 + $0xb8] sm:$0xff]  ;;  %v3087_v24 = vld [vmem:[#allocation4 + $0xd0] sm:$0xff]  ;;  %v3089_v25 = vld [vmem:[#allocation4 + $0xc8] sm:$0xff] }
   0xf   :  { %101 = vmax.xlane.f32.xlu2 %v3024_v3  ;;  %97 = vmax.xlane.f32.xlu1 %v3026_v4  ;;  %v3091_v26 = vld [vmem:[#allocation4 + $0xc0] sm:$0xff]  ;;  %v3096_v27 = vld [vmem:[#allocation4 + $0xe8] sm:$0xff]  ;;  %v3100_v29 = vld [vmem:[#allocation4 + $0xd8] sm:$0xff] }
  0x10   :  { %93 = vmax.xlane.f32.xlu0 %v3028_v5  ;;  %v3098_v28 = vld [vmem:[#allocation4 + $0xe0] sm:$0xff]  ;;  %v3107_v31 = vld [vmem:[#allocation4 + $0xf8] sm:$0xff]  ;;  %v3109_v32 = vld [vmem:[#allocation4 + $0xf0] sm:$0xff] }
  0x11   :  { %v3105_v30 = vld [vmem:[#allocation4 + $0x100] sm:$0xff]  ;;  %v3114_v33 = vld [vmem:[#allocation4 + $0x118] sm:$0xff]  ;;  %v3116_v34 = vld [vmem:[#allocation4 + $0x110] sm:$0xff] }
  0x12   :  { %v3118_v35 = vld [vmem:[#allocation4 + $0x108] sm:$0xff]  ;;  %v3123_v36 = vld [vmem:[#allocation4 + $0x130] sm:$0xff]  ;;  %v3127_v38 = vld [vmem:[#allocation4 + $0x120] sm:$0xff] }
  0x13   :  { %v3125_v37 = vld [vmem:[#allocation4 + $0x128] sm:$0xff]  ;;  %4966 = vst [vmem:[#allocation11_spill] sm:$0xff] %v3127_v38  ;;  %v3134_v40 = vld [vmem:[#allocation4 + $0x140] sm:$0xff]  ;;  %v3136_v41 = vld [vmem:[#allocation4 + $0x138] sm:$0xff] }
  0x14   :  { %4965 = vst [vmem:[#allocation10_spill] sm:$0xff] %v3125_v37  ;;  %v3132_v39 = vld [vmem:[#allocation4 + $0x148] sm:$0xff]  ;;  %v3141_v42 = vld [vmem:[#allocation4 + $0x160] sm:$0xff]  ;;  %v3143_v43 = vld [vmem:[#allocation4 + $0x158] sm:$0xff] }
  0x15   :  { %4967 = vst [vmem:[#allocation12_spill] sm:$0xff] %v3132_v39  ;;  %v3145_v44 = vld [vmem:[#allocation4 + $0x150] sm:$0xff]  ;;  %v3154_v48 = vld [vmem:[#allocation4 + $0x178] sm:$0xff]  ;;  %v3158_v50 = vld [vmem:[#allocation4 + $0x168] sm:$0xff] }
  0x16   :  { %4968 = vst [vmem:[#allocation13_spill] sm:$0xff] %v3134_v40  ;;  %v3156_v49 = vld [vmem:[#allocation4 + $0x170] sm:$0xff]  ;;  %v3167_v55 = vld [vmem:[#allocation4 + $0x188] sm:$0xff]  ;;  %v3169_v56 = vld [vmem:[#allocation4 + $0x180] sm:$0xff] }
  0x17   :  { %107 = vmax.xlane.f32.xlu2 %v3033_v6  ;;  %105 = vmax.xlane.f32.xlu1 %v3035_v7  ;;  %4969 = vst [vmem:[#allocation14_spill] sm:$0xff] %v3136_v41  ;;  %v3165_v54 = vld [vmem:[#allocation4 + $0x190] sm:$0xff]  ;;  %v3180_v60 = vld [vmem:[#allocation4 + $0x1a8] sm:$0xff]  ;;  %v3182_v61 = vld [vmem:[#allocation4 + $0x1a0] sm:$0xff] }
  0x18   :  { %103 = vmax.xlane.f32.xlu0 %v3037_v8  ;;  %4970 = vst [vmem:[#allocation15_spill] sm:$0xff] %v3141_v42  ;;  %v3184_v62 = vld [vmem:[#allocation4 + $0x198] sm:$0xff] }
  0x19   :  { %4971 = vst [vmem:[#allocation16_spill] sm:$0xff] %v3143_v43 }
  0x1a   :  { %4972 = vst [vmem:[#allocation17_spill] sm:$0xff] %v3145_v44 }
  0x1b   :  { %4973 = vst [vmem:[#allocation18_spill] sm:$0xff] %v3154_v48 }
  0x1c   :  { %4974 = vst [vmem:[#allocation19_spill] sm:$0xff] %v3156_v49 }
  0x1d   :  { %4975 = vst [vmem:[#allocation20_spill] sm:$0xff] %v3158_v50 }
  0x1e   :  { %4976 = vst [vmem:[#allocation21_spill] sm:$0xff] %v3165_v54 }
  0x1f   :  { %113 = vmax.xlane.f32.xlu2 %v3042_v9  ;;  %111 = vmax.xlane.f32.xlu1 %v3044_v10  ;;  %4977 = vst [vmem:[#allocation22_spill] sm:$0xff] %v3167_v55 }
  0x20   :  { %109 = vmax.xlane.f32.xlu0 %v3046_v11  ;;  %4978 = vst [vmem:[#allocation23_spill] sm:$0xff] %v3169_v56 }
  0x21   :  { %4979 = vst [vmem:[#allocation24_spill] sm:$0xff] %v3180_v60 }
  0x22   :  { %4980 = vst [vmem:[#allocation25_spill] sm:$0xff] %v3182_v61 }
  0x23   :  { %4981 = vst [vmem:[#allocation26_spill] sm:$0xff] %v3184_v62 }
  0x27   :  { %119 = vmax.xlane.f32.xlu2 %v3051_v12  ;;  %117 = vmax.xlane.f32.xlu1 %v3053_v13 }
  0x28   :  { %115 = vmax.xlane.f32.xlu0 %v3055_v14 }
  0x2f   :  { %125 = vmax.xlane.f32.xlu2 %v3060_v15  ;;  %123 = vmax.xlane.f32.xlu1 %v3062_v16 }
  0x30   :  { %121 = vmax.xlane.f32.xlu0 %v3064_v17 }
  0x37   :  { %131 = vmax.xlane.f32.xlu2 %v3069_v18  ;;  %129 = vmax.xlane.f32.xlu1 %v3071_v19 }
  0x38   :  { %127 = vmax.xlane.f32.xlu0 %v3073_v20 }
  0x3f   :  { %137 = vmax.xlane.f32.xlu2 %v3078_v21  ;;  %135 = vmax.xlane.f32.xlu1 %v3080_v22 }
  0x40   :  { %133 = vmax.xlane.f32.xlu0 %v3082_v23 }
  0x47   :  { %143 = vmax.xlane.f32.xlu2 %v3087_v24  ;;  %141 = vmax.xlane.f32.xlu1 %v3089_v25 }
  0x48   :  { %139 = vmax.xlane.f32.xlu0 %v3091_v26 }
  0x4f   :  { %149 = vmax.xlane.f32.xlu2 %v3096_v27  ;;  %147 = vmax.xlane.f32.xlu1 %v3098_v28 }
  0x50   :  { %145 = vmax.xlane.f32.xlu0 %v3100_v29 }
  0x57   :  { %155 = vmax.xlane.f32.xlu2 %v3105_v30  ;;  %153 = vmax.xlane.f32.xlu1 %v3107_v31 }
  0x58   :  { %151 = vmax.xlane.f32.xlu0 %v3109_v32 }
  0x5f   :  { %161 = vmax.xlane.f32.xlu2 %v3114_v33  ;;  %159 = vmax.xlane.f32.xlu1 %v3116_v34 }
  0x60   :  { %157 = vmax.xlane.f32.xlu0 %v3118_v35 }
  0x67   :  { %167 = vmax.xlane.f32.xlu2 %v3123_v36  ;;  %165 = vmax.xlane.f32.xlu1 %v3125_v37  ;;  %v3229_v37 = vld [vmem:[#allocation4 + $0x1e8] sm:$0xff] }
  0x68   :  { %163 = vmax.xlane.f32.xlu0 %v3127_v38  ;;  %v3227_v38 = vld [vmem:[#allocation4 + $0x1f0] sm:$0xff]  ;;  %4987 = vst [vmem:[#allocation32_spill] sm:$0xff] %v3229_v37 }
  0x6f   :  { %173 = vmax.xlane.f32.xlu2 %v3132_v39  ;;  %171 = vmax.xlane.f32.xlu1 %v3134_v40 }
  0x70   :  { %169 = vmax.xlane.f32.xlu0 %v3136_v41 }
  0x77   :  { %179 = vmax.xlane.f32.xlu2 %v3141_v42  ;;  %177 = vmax.xlane.f32.xlu1 %v3143_v43  ;;  %v3214_v43 = vld [vmem:[#allocation4 + $0x1c8] sm:$0xff] }
  0x78   :  { %175 = vmax.xlane.f32.xlu0 %v3145_v44  ;;  %v3212_v44 = vld [vmem:[#allocation4 + $0x1d0] sm:$0xff]  ;;  %4986 = vst [vmem:[#allocation31_spill] sm:$0xff] %v3214_v43 }
  0x79   :  { %4985 = vst [vmem:[#allocation30_spill] sm:$0xff] %v3212_v44 }
  0x7a   :  { %v3150_v45 = vpop.xlane.xlu2 %99  ;;  %v3152_v46 = vpop.xlane.xlu1 %95 }
  0x7b   :  { %v92_v47 = vpop.xlane.xlu0 %91 }
  0x7c   :  { %v219_v42 = vsub.f32 %v3019_v2, %v92_v47  ;;  %v3231_v2 = vld [vmem:[#allocation4 + $0x1e0] sm:$0xff]  ;;  %v223_v47 = vsub.f32 %v3015_v0, %v3150_v45 }
  0x7e   :  { %v283_v41 = vmul.f32 1.442695, %v219_v42  ;;  %v221_v42 = vsub.f32 %v3017_v1, %v3152_v46 }
  0x7f   :  { %185 = vmax.xlane.f32.xlu2 %v3154_v48  ;;  %183 = vmax.xlane.f32.xlu1 %v3156_v49  ;;  %v3199_v49 = vld [vmem:[#allocation4 + $0x1b0] sm:$0xff]  ;;  %v3210_v48 = vld [vmem:[#allocation4 + $0x1d8] sm:$0xff] }
  0x80   :  { %181 = vmax.xlane.f32.xlu0 %v3158_v50  ;;  %v3197_v50 = vld [vmem:[#allocation4 + $0x1b8] sm:$0xff]  ;;  %4984 = vst [vmem:[#allocation29_spill] sm:$0xff] %v3199_v49  ;;  %2682 = vpow2.f32 %v283_v41  ;;  %v287_v45 = vmul.f32 1.442695, %v221_v42 }
  0x81   :  { %4983 = vst [vmem:[#allocation28_spill] sm:$0xff] %v3197_v50 }
  0x82   :  { %v3163_v51 = vpop.xlane.xlu2 %101  ;;  %v98_v52 = vpop.xlane.xlu1 %97 }
  0x83   :  { %v94_v53 = vpop.xlane.xlu0 %93  ;;  %v224_v46 = vsub.f32 %v3024_v3, %v3163_v51 }
  0x85   :  { %v293_v42 = vmul.f32 1.442695, %v224_v46 }
  0x86   :  { %v3247_v41 = vpop.eup %2682 }
  0x87   :  { %191 = vmax.xlane.f32.xlu2 %v3165_v54  ;;  %189 = vmax.xlane.f32.xlu1 %v3167_v55  ;;  %v3195_v54 = vld [vmem:[#allocation4 + $0x1c0] sm:$0xff] }
  0x88   :  { %187 = vmax.xlane.f32.xlu0 %v3169_v56  ;;  %4982 = vst [vmem:[#allocation27_spill] sm:$0xff] %v3195_v54 }
  0x8a   :  { %v3174_v57 = vpop.xlane.xlu2 %107  ;;  %v3176_v58 = vpop.xlane.xlu1 %105 }
  0x8b   :  { %v3178_v59 = vpop.xlane.xlu0 %103  ;;  %v227_v51 = vsub.f32 %v3033_v6, %v3174_v57 }
  0x8c   :  { %v225_v1 = vsub.f32 %v3037_v8, %v3178_v59 }
  0x8f   :  { %197 = vmax.xlane.f32.xlu2 %v3180_v60  ;;  %195 = vmax.xlane.f32.xlu1 %v3182_v61 }
  0x90   :  { %193 = vmax.xlane.f32.xlu0 %v3184_v62 }
  0x92   :  { %v3189_v63 = vpop.xlane.xlu2 %113  ;;  %v3191_v56 = vpop.xlane.xlu1 %111 }
  0x93   :  { %v3193_v55 = vpop.xlane.xlu0 %109  ;;  %v229_v59 = vsub.f32 %v3044_v10, %v3191_v56  ;;  %v230_v57 = vsub.f32 %v3042_v9, %v3189_v63 }
  0x94   :  { %v228_v3 = vsub.f32 %v3046_v11, %v3193_v55 }
  0x96   :  { %v301_v56 = vmul.f32 1.442695, %v228_v3 }
  0x97   :  { %203 = vmax.xlane.f32.xlu2 %v3195_v54  ;;  %201 = vmax.xlane.f32.xlu1 %v3197_v50 }
  0x98   :  { %199 = vmax.xlane.f32.xlu0 %v3199_v49  ;;  %v220_v49 = vsub.f32 %v3028_v5, %v94_v53  ;;  %v222_v5 = vsub.f32 %v3026_v4, %v98_v52 }
  0x9a   :  { %v3204_v61 = vpop.xlane.xlu2 %119  ;;  %v3206_v62 = vpop.xlane.xlu1 %117  ;;  %v285_v39 = vmul.f32 1.442695, %v220_v49  ;;  %v289_v0 = vmul.f32 1.442695, %v222_v5 }
  0x9b   :  { %v3208_v60 = vpop.xlane.xlu0 %115  ;;  %v232_v55 = vsub.f32 %v3053_v13, %v3206_v62  ;;  %v233_v63 = vsub.f32 %v3051_v12, %v3204_v61 }
  0x9c   :  { %2684 = vpow2.f32 %v285_v39  ;;  %v226_v39 = vsub.f32 %v3035_v7, %v3176_v58  ;;  %v295_v58 = vmul.f32 1.442695, %v225_v1  ;;  %v303_v1 = vmul.f32 1.442695, %v229_v59 }
  0x9d   :  { %v231_v6 = vsub.f32 %v3055_v14, %v3208_v60  ;;  %v309_v3 = vmul.f32 1.442695, %v232_v55 }
  0x9f   :  { %209 = vmax.xlane.f32.xlu2 %v3210_v48  ;;  %207 = vmax.xlane.f32.xlu1 %v3212_v44  ;;  %v307_v62 = vmul.f32 1.442695, %v231_v6 }
  0xa0   :  { %205 = vmax.xlane.f32.xlu0 %v3214_v43  ;;  %v291_v43 = vmul.f32 1.442695, %v223_v47  ;;  %v297_v47 = vmul.f32 1.442695, %v226_v39 }
  0xa2   :  { %v3221_v50 = vpop.xlane.xlu2 %125  ;;  %v3223_v54 = vpop.xlane.xlu1 %123  ;;  %2686 = vpow2.f32 %v291_v43 }
  0xa3   :  { %v3225_v40 = vpop.xlane.xlu0 %121  ;;  %v3251_v4 = vpop.eup %2684  ;;  %2688 = vpow2.f32 %v289_v0  ;;  %v235_v60 = vsub.f32 %v3062_v16, %v3223_v54  ;;  %v236_v61 = vsub.f32 %v3060_v15, %v3221_v50 }
  0xa4   :  { %2690 = vpow2.f32 %v287_v45  ;;  %v234_v9 = vsub.f32 %v3064_v17, %v3225_v40 }
  0xa5   :  { %2692 = vpow2.f32 %v297_v47  ;;  %v299_v47 = vmul.f32 1.442695, %v227_v51  ;;  %v315_v6 = vmul.f32 1.442695, %v235_v60 }
  0xa6   :  { %2694 = vpow2.f32 %v295_v58  ;;  %v313_v54 = vmul.f32 1.442695, %v234_v9 }
  0xa7   :  { %215 = vmax.xlane.f32.xlu2 %v3227_v38  ;;  %213 = vmax.xlane.f32.xlu1 %v3229_v37  ;;  %v3249_v37 = vld [vmem:[#allocation4 + $0x1f8] sm:$0xff]  ;;  %2696 = vpow2.f32 %v293_v42 }
  0xa8   :  { %211 = vmax.xlane.f32.xlu0 %v3231_v2  ;;  %v3268_v5 = vpop.eup %2686  ;;  %2698 = vpow2.f32 %v303_v1  ;;  %v305_v1 = vmul.f32 1.442695, %v230_v57 }
  0xa9   :  { %v3270_v0 = vpop.eup %2688  ;;  %2700 = vpow2.f32 %v301_v56 }
  0xaa   :  { %v3241_v49 = vpop.xlane.xlu2 %131  ;;  %v3243_v53 = vpop.xlane.xlu1 %129  ;;  %2702 = vpow2.f32 %v299_v47 }
  0xab   :  { %v3245_v44 = vpop.xlane.xlu0 %127  ;;  %v3272_v8 = vpop.eup %2690  ;;  %2704 = vpow2.f32 %v309_v3  ;;  %v311_v3 = vmul.f32 1.442695, %v233_v63  ;;  %v238_v40 = vsub.f32 %v3071_v19, %v3243_v53  ;;  %v239_v50 = vsub.f32 %v3069_v18, %v3241_v49 }
  0xac   :  { %v3289_v46 = vpop.eup %2692  ;;  %2706 = vpow2.f32 %v307_v62  ;;  %v237_v12 = vsub.f32 %v3073_v20, %v3245_v44 }
  0xad   :  { %v3291_v58 = vpop.eup %2694  ;;  %2708 = vpow2.f32 %v305_v1  ;;  %v321_v9 = vmul.f32 1.442695, %v238_v40 }
  0xae   :  { %v3293_v11 = vpop.eup %2696  ;;  %2710 = vpow2.f32 %v315_v6  ;;  %v319_v53 = vmul.f32 1.442695, %v237_v12  ;;  %v317_v6 = vmul.f32 1.442695, %v236_v61 }
  0xaf   :  { %411 = vadd.xlane.f32.xlu1 %v3247_v41  ;;  %413 = vadd.xlane.f32.xlu2 %v3251_v4  ;;  %v3310_v51 = vpop.eup %2698  ;;  %2712 = vpow2.f32 %v313_v54 }
  0xb0   :  { %217 = vmax.xlane.f32.xlu0 %v3249_v37  ;;  %4988 = vst [vmem:[#allocation33_spill] sm:$0xff] %v3310_v51  ;;  %v3312_v56 = vpop.eup %2700  ;;  %2714 = vpow2.f32 %v311_v3 }
  0xb1   :  { %4989 = vst [vmem:[#allocation34_spill] sm:$0xff] %v3312_v56  ;;  %v3314_v14 = vpop.eup %2702  ;;  %2716 = vpow2.f32 %v321_v9  ;;  %v323_v9 = vmul.f32 1.442695, %v239_v50 }
  0xb2   :  { %v3262_v52 = vpop.xlane.xlu2 %137  ;;  %v3264_v43 = vpop.xlane.xlu1 %135  ;;  %4990 = vst [vmem:[#allocation35_spill] sm:$0xff] %v3314_v14  ;;  %2718 = vpow2.f32 %v319_v53 }
  0xb3   :  { %v3266_v7 = vpop.xlane.xlu0 %133  ;;  %v3331_v57 = vpop.eup %2704  ;;  %v241_v44 = vsub.f32 %v3080_v22, %v3264_v43  ;;  %2720 = vpow2.f32 %v317_v6  ;;  %v242_v49 = vsub.f32 %v3078_v21, %v3262_v52 }
  0xb4   :  { %4991 = vst [vmem:[#allocation36_spill] sm:$0xff] %v3331_v57  ;;  %v3333_v62 = vpop.eup %2706  ;;  %v240_v15 = vsub.f32 %v3082_v23, %v3266_v7 }
  0xb5   :  { %4992 = vst [vmem:[#allocation37_spill] sm:$0xff] %v3333_v62  ;;  %v3335_v17 = vpop.eup %2708  ;;  %v327_v12 = vmul.f32 1.442695, %v241_v44 }
  0xb6   :  { %4993 = vst [vmem:[#allocation38_spill] sm:$0xff] %v3335_v17  ;;  %v3352_v63 = vpop.eup %2710  ;;  %v325_v43 = vmul.f32 1.442695, %v240_v15 }
  0xb7   :  { %417 = vadd.xlane.f32.xlu1 %v3270_v0  ;;  %419 = vadd.xlane.f32.xlu2 %v3268_v5  ;;  %4994 = vst [vmem:[#allocation39_spill] sm:$0xff] %v3352_v63  ;;  %v3354_v54 = vpop.eup %2712  ;;  %2722 = vpow2.f32 %v327_v12  ;;  %v329_v12 = vmul.f32 1.442695, %v242_v49 }
  0xb8   :  { %415 = vadd.xlane.f32.xlu0 %v3272_v8  ;;  %4995 = vst [vmem:[#allocation40_spill] sm:$0xff] %v3354_v54  ;;  %v3356_v20 = vpop.eup %2714  ;;  %2724 = vpow2.f32 %v325_v43 }
  0xb9   :  { %4996 = vst [vmem:[#allocation41_spill] sm:$0xff] %v3356_v20  ;;  %v3373_v61 = vpop.eup %2716  ;;  %2726 = vpow2.f32 %v323_v9 }
  0xba   :  { %v3283_v45 = vpop.xlane.xlu2 %143  ;;  %v3285_v39 = vpop.xlane.xlu1 %141  ;;  %4997 = vst [vmem:[#allocation42_spill] sm:$0xff] %v3373_v61 }
  0xbb   :  { %v3287_v10 = vpop.xlane.xlu0 %139  ;;  %v3375_v53 = vpop.eup %2718  ;;  %v244_v7 = vsub.f32 %v3089_v25, %v3285_v39  ;;  %v245_v52 = vsub.f32 %v3087_v24, %v3283_v45 }
  0xbc   :  { %4998 = vst [vmem:[#allocation43_spill] sm:$0xff] %v3375_v53  ;;  %v3377_v23 = vpop.eup %2720  ;;  %v243_v18 = vsub.f32 %v3091_v26, %v3287_v10 }
  0xbd   :  { %4999 = vst [vmem:[#allocation44_spill] sm:$0xff] %v3377_v23  ;;  %v333_v15 = vmul.f32 1.442695, %v244_v7  ;;  %v3394_v50 = vpop.eup %2722 }
  0xbe   :  { %v331_v39 = vmul.f32 1.442695, %v243_v18  ;;  %5000 = vst [vmem:[#allocation45_spill] sm:$0xff] %v3394_v50  ;;  %v3396_v43 = vpop.eup %2724 }
  0xbf   :  { %425 = vadd.xlane.f32.xlu2 %v3289_v46  ;;  %423 = vadd.xlane.f32.xlu1 %v3291_v58  ;;  %5001 = vst [vmem:[#allocation46_spill] sm:$0xff] %v3396_v43  ;;  %v3398_v26 = vpop.eup %2726  ;;  %2728 = vpow2.f32 %v333_v15  ;;  %v335_v15 = vmul.f32 1.442695, %v245_v52 }
  0xc0   :  { %421 = vadd.xlane.f32.xlu0 %v3293_v11  ;;  %5002 = vst [vmem:[#allocation47_spill] sm:$0xff] %v3398_v26  ;;  %2730 = vpow2.f32 %v331_v39 }
  0xc1   :  { %2732 = vpow2.f32 %v329_v12 }
  0xc2   :  { %v3304_v42 = vpop.xlane.xlu2 %149  ;;  %v3306_v59 = vpop.xlane.xlu1 %147 }
  0xc3   :  { %v3308_v13 = vpop.xlane.xlu0 %145  ;;  %v247_v10 = vsub.f32 %v3098_v28, %v3306_v59  ;;  %v248_v45 = vsub.f32 %v3096_v27, %v3304_v42 }
  0xc4   :  { %v246_v21 = vsub.f32 %v3100_v29, %v3308_v13 }
  0xc5   :  { %v339_v18 = vmul.f32 1.442695, %v247_v10  ;;  %v3415_v49 = vpop.eup %2728  ;;  %v341_v27 = vmul.f32 1.442695, %v248_v45 }
  0xc6   :  { %v337_v59 = vmul.f32 1.442695, %v246_v21  ;;  %5003 = vst [vmem:[#allocation48_spill] sm:$0xff] %v3415_v49  ;;  %v3417_v39 = vpop.eup %2730 }
  0xc7   :  { %431 = vadd.xlane.f32.xlu2 %v3310_v51  ;;  %429 = vadd.xlane.f32.xlu1 %v3312_v56  ;;  %5004 = vst [vmem:[#allocation49_spill] sm:$0xff] %v3417_v39  ;;  %v3419_v29 = vpop.eup %2732  ;;  %2734 = vpow2.f32 %v339_v18 }
  0xc8   :  { %427 = vadd.xlane.f32.xlu0 %v3314_v14  ;;  %5005 = vst [vmem:[#allocation50_spill] sm:$0xff] %v3419_v29  ;;  %2736 = vpow2.f32 %v337_v59 }
  0xc9   :  { %2738 = vpow2.f32 %v335_v15 }
  0xca   :  { %v3325_v47 = vpop.xlane.xlu2 %155  ;;  %v3327_v55 = vpop.xlane.xlu1 %153 }
  0xcb   :  { %v3329_v16 = vpop.xlane.xlu0 %151  ;;  %v250_v13 = vsub.f32 %v3107_v31, %v3327_v55  ;;  %v251_v12 = vsub.f32 %v3105_v30, %v3325_v47 }
  0xcc   :  { %v249_v24 = vsub.f32 %v3109_v32, %v3329_v16 }
  0xcd   :  { %v345_v55 = vmul.f32 1.442695, %v250_v13  ;;  %v3442_v18 = vpop.eup %2734  ;;  %v347_v47 = vmul.f32 1.442695, %v251_v12 }
  0xce   :  { %v343_v32 = vmul.f32 1.442695, %v249_v24  ;;  %5006 = vst [vmem:[#allocation51_spill] sm:$0xff] %v3442_v18  ;;  %v3446_v42 = vpop.eup %2736 }
  0xcf   :  { %437 = vadd.xlane.f32.xlu2 %v3331_v57  ;;  %435 = vadd.xlane.f32.xlu1 %v3333_v62  ;;  %5007 = vst [vmem:[#allocation52_spill] sm:$0xff] %v3446_v42  ;;  %v3450_v15 = vpop.eup %2738  ;;  %2740 = vpow2.f32 %v345_v55  ;;  %v5012_v55 = vld [vmem:[#allocation13_spill] sm:$0xff] }
  0xd0   :  { %433 = vadd.xlane.f32.xlu0 %v3335_v17  ;;  %5008 = vst [vmem:[#allocation53_spill] sm:$0xff] %v3450_v15  ;;  %2742 = vpow2.f32 %v343_v32 }
  0xd1   :  { %2744 = vpow2.f32 %v341_v27  ;;  %v5013_v27 = vld [vmem:[#allocation14_spill] sm:$0xff] }
  0xd2   :  { %v3346_v1 = vpop.xlane.xlu2 %161  ;;  %v3348_v60 = vpop.xlane.xlu1 %159  ;;  %2746 = vpow2.f32 %v347_v47 }
  0xd3   :  { %v3350_v19 = vpop.xlane.xlu0 %157  ;;  %v254_v21 = vsub.f32 %v3114_v33, %v3346_v1  ;;  %v253_v16 = vsub.f32 %v3116_v34, %v3348_v60  ;;  %v5009_v1 = vld [vmem:[#allocation10_spill] sm:$0xff] }
  0xd4   :  { %v252_v30 = vsub.f32 %v3118_v35, %v3350_v19  ;;  %v5010_v35 = vld [vmem:[#allocation11_spill] sm:$0xff]  ;;  %v5011_v19 = vld [vmem:[#allocation12_spill] sm:$0xff] }
  0xd5   :  { %v353_v33 = vmul.f32 1.442695, %v254_v21  ;;  %v351_v34 = vmul.f32 1.442695, %v253_v16 }
  0xd7   :  { %443 = vadd.xlane.f32.xlu2 %v3352_v63  ;;  %441 = vadd.xlane.f32.xlu1 %v3354_v54  ;;  %2748 = vpow2.f32 %v353_v33 }
  0xd8   :  { %439 = vadd.xlane.f32.xlu0 %v3356_v20  ;;  %2750 = vpow2.f32 %v351_v34 }
  0xda   :  { %v3367_v3 = vpop.xlane.xlu2 %167  ;;  %v3369_v40 = vpop.xlane.xlu1 %165 }
  0xdb   :  { %v3371_v22 = vpop.xlane.xlu0 %163  ;;  %v257_v59 = vsub.f32 %v3123_v36, %v3367_v3  ;;  %v256_v13 = vsub.f32 %v5009_v1, %v3369_v40  ;;  %v349_v36 = vmul.f32 1.442695, %v252_v30 }
  0xdc   :  { %v255_v60 = vsub.f32 %v5010_v35, %v3371_v22  ;;  %v1500_v22 = vlaneseq }
  0xdd   :  { %v359_v24 = vmul.f32 1.442695, %v257_v59  ;;  %v357_v12 = vmul.f32 1.442695, %v256_v13  ;;  %2752 = vpow2.f32 %v349_v36  ;;  %v5015_v59 = vld [vmem:[#allocation15_spill] sm:$0xff] }
  0xde   :  { %v355_v16 = vmul.f32 1.442695, %v255_v60  ;;  %v3475_v33 = vshrl.u32 %v1500_v22, 7 }
  0xdf   :  { %449 = vadd.xlane.f32.xlu2 %v3373_v61  ;;  %447 = vadd.xlane.f32.xlu1 %v3375_v53  ;;  %2754 = vpow2.f32 %v359_v24 }
  0xe0   :  { %445 = vadd.xlane.f32.xlu0 %v3377_v23  ;;  %2756 = vpow2.f32 %v357_v12  ;;  %v1632_v24 = vmul.u32 128, %v3475_v33 }
  0xe1   :  { %2758 = vpow2.f32 %v355_v16 }
  0xe2   :  { %v3388_v6 = vpop.xlane.xlu2 %173  ;;  %v3390_v44 = vpop.xlane.xlu1 %171 }
  0xe3   :  { %v3392_v25 = vpop.xlane.xlu0 %169  ;;  %v260_v3 = vsub.f32 %v5011_v19, %v3388_v6  ;;  %v259_v21 = vsub.f32 %v5012_v55, %v3390_v44  ;;  %v3471_v6 = vpop.eup %2740  ;;  %v5017_v44 = vld [vmem:[#allocation16_spill] sm:$0xff] }
  0xe4   :  { %v258_v30 = vsub.f32 %v5013_v27, %v3392_v25  ;;  %5014 = vst [vmem:[#allocation10_spill] sm:$0xff] %v3471_v6  ;;  %v3477_v13 = vpop.eup %2742 }
  0xe5   :  { %v365_v47 = vmul.f32 1.442695, %v260_v3  ;;  %5016 = vst [vmem:[#allocation11_spill] sm:$0xff] %v3477_v13  ;;  %v3484_v25 = vpop.eup %2744  ;;  %v363_v34 = vmul.f32 1.442695, %v259_v21  ;;  %v3494_v3 = vand.u32 127, %v1500_v22 }
  0xe6   :  { %5018 = vst [vmem:[#allocation12_spill] sm:$0xff] %v3484_v25  ;;  %v3489_v60 = vpop.eup %2746  ;;  %v361_v36 = vmul.f32 1.442695, %v258_v30  ;;  %v5022_v21 = vld [vmem:[#allocation17_spill] sm:$0xff]  ;;  %v3505_v30 = vstv %s1761_s17 }
  0xe7   :  { %455 = vadd.xlane.f32.xlu2 %v3394_v50  ;;  %453 = vadd.xlane.f32.xlu1 %v3396_v43  ;;  %5019 = vst [vmem:[#allocation13_spill] sm:$0xff] %v3489_v60  ;;  %2760 = vpow2.f32 %v365_v47  ;;  %v1696_v47 = vadd.s32 %v1632_v24, %v3494_v3  ;;  %v5036_v50 = vld [vmem:[#allocation23_spill] sm:$0xff] }
  0xe8   :  { %451 = vadd.xlane.f32.xlu0 %v3398_v26  ;;  %2762 = vpow2.f32 %v363_v34 }
  0xe9   :  { %2764 = vpow2.f32 %v361_v36 }
  0xea   :  { %v3409_v9 = vpop.xlane.xlu2 %179  ;;  %v3411_v7 = vpop.xlane.xlu1 %177 }
  0xeb   :  { %v3413_v28 = vpop.xlane.xlu0 %175  ;;  %v263_v1 = vsub.f32 %v5015_v59, %v3409_v9  ;;  %v262_v35 = vsub.f32 %v5017_v44, %v3411_v7  ;;  %v1502_v9 = vadd.s32 8, %v3475_v33  ;;  %v3492_v7 = vpop.eup %2748 }
  0xec   :  { %5020 = vst [vmem:[#allocation14_spill] sm:$0xff] %v3492_v7  ;;  %v3497_v12 = vpop.eup %2750  ;;  %v261_v27 = vsub.f32 %v5022_v21, %v3413_v28 }
  0xed   :  { %v371_v19 = vmul.f32 1.442695, %v263_v1  ;;  %5021 = vst [vmem:[#allocation15_spill] sm:$0xff] %v3497_v12  ;;  %v369_v55 = vmul.f32 1.442695, %v262_v35  ;;  %v1633_v44 = vmul.u32 128, %v1502_v9  ;;  %v1763_v9 = vxor.u32 %v3505_v30, %v1696_v47 }
  0xee   :  { %v5025_v35 = vld [vmem:[#allocation18_spill] sm:$0xff]  ;;  %v367_v34 = vmul.f32 1.442695, %v261_v27  ;;  %v5031_v47 = vld [vmem:[#allocation21_spill] sm:$0xff] }
  0xef   :  { %461 = vadd.xlane.f32.xlu2 %v3415_v49  ;;  %459 = vadd.xlane.f32.xlu1 %v3417_v39  ;;  %v1697_v21 = vadd.s32 %v1633_v44, %v3494_v3  ;;  %2766 = vpow2.f32 %v371_v19  ;;  %v1827_v19 = vshrl.u32 %v1763_v9, 16  ;;  %v1504_v44 = vadd.s32 24, %v3475_v33 }
  0xf0   :  { %457 = vadd.xlane.f32.xlu0 %v3419_v29  ;;  %2768 = vpow2.f32 %v369_v55  ;;  %v1505_v55 = vadd.s32 32, %v3475_v33 }
  0xf1   :  { %2770 = vpow2.f32 %v367_v34 }
  0xf2   :  { %v3432_v10 = vpop.xlane.xlu2 %185  ;;  %v3434_v31 = vpop.xlane.xlu1 %183  ;;  %v1636_v29 = vmul.u32 128, %v1505_v55 }
  0xf3   :  { %v3438_v52 = vpop.xlane.xlu0 %181  ;;  %v266_v28 = vsub.f32 %v5025_v35, %v3432_v10  ;;  %v5030_v10 = vld [vmem:[#allocation20_spill] sm:$0xff] }
  0xf4   :  { %v264_v35 = vsub.f32 %v5030_v10, %v3438_v52  ;;  %v5033_v52 = vld [vmem:[#allocation22_spill] sm:$0xff] }
  0xf5   :  { %v377_v27 = vmul.f32 1.442695, %v266_v28 }
  0xf6   :  { %v373_v43 = vmul.f32 1.442695, %v264_v35 }
  0xf7   :  { %467 = vadd.xlane.f32.xlu2 %v3442_v18  ;;  %465 = vadd.xlane.f32.xlu1 %v3446_v42  ;;  %v1764_v42 = vxor.u32 %v3505_v30, %v1697_v21  ;;  %v1503_v21 = vadd.s32 16, %v3475_v33  ;;  %2772 = vpow2.f32 %v377_v27  ;;  %v5039_v27 = vld [vmem:[#allocation24_spill] sm:$0xff] }
  0xf8   :  { %463 = vadd.xlane.f32.xlu0 %v3450_v15  ;;  %v5028_v15 = vld [vmem:[#allocation19_spill] sm:$0xff] }
  0xf9   :  { %v265_v24 = vsub.f32 %v5028_v15, %v3434_v31  ;;  %v1828_v15 = vshrl.u32 %v1764_v42, 16 }
  0xfa   :  { %v3461_v45 = vpop.xlane.xlu2 %191  ;;  %v3463_v40 = vpop.xlane.xlu1 %189 }
  0xfb   :  { %v3467_v32 = vpop.xlane.xlu0 %187  ;;  %v269_v31 = vsub.f32 %v5031_v47, %v3461_v45  ;;  %v268_v10 = vsub.f32 %v5033_v52, %v3463_v40  ;;  %v375_v28 = vmul.f32 1.442695, %v265_v24  ;;  %v1892_v45 = vxor.u32 %v1828_v15, %v1764_v42 }
  0xfc   :  { %v1634_v47 = vmul.u32 128, %v1503_v21  ;;  %v267_v23 = vsub.f32 %v5036_v50, %v3467_v32 }
  0xfd   :  { %v383_v34 = vmul.f32 1.442695, %v269_v31  ;;  %v1956_v24 = vmul.u32 2146121005, %v1892_v45  ;;  %v381_v55 = vmul.f32 1.442695, %v268_v10  ;;  %2774 = vpow2.f32 %v375_v28 }
  0xfe   :  { %v1698_v42 = vadd.s32 %v1634_v47, %v3494_v3  ;;  %2776 = vpow2.f32 %v373_v43  ;;  %v5040_v43 = vld [vmem:[#allocation25_spill] sm:$0xff]  ;;  %v5041_v28 = vld [vmem:[#allocation26_spill] sm:$0xff] }
  0xff   :  { %473 = vadd.xlane.f32.xlu2 %v3471_v6  ;;  %471 = vadd.xlane.f32.xlu1 %v3477_v13  ;;  %2778 = vpow2.f32 %v383_v34 }
 0x100   :  { %469 = vadd.xlane.f32.xlu0 %v3484_v25  ;;  %v3507_v25 = vpop.eup %2752  ;;  %v1765_v32 = vxor.u32 %v3505_v30, %v1698_v42  ;;  %2780 = vpow2.f32 %v381_v55 }
 0x101   :  { %5023 = vst [vmem:[#allocation16_spill] sm:$0xff] %v3507_v25  ;;  %v3512_v1 = vpop.eup %2754 }
 0x102   :  { %v3501_v59 = vpop.xlane.xlu2 %197  ;;  %v3503_v16 = vpop.xlane.xlu1 %195  ;;  %5024 = vst [vmem:[#allocation17_spill] sm:$0xff] %v3512_v1  ;;  %v1829_v10 = vshrl.u32 %v1765_v32, 16 }
 0x103   :  { %v3509_v22 = vpop.xlane.xlu0 %193  ;;  %v3517_v13 = vpop.eup %2756  ;;  %v272_v21 = vsub.f32 %v5039_v27, %v3501_v59 }
 0x104   :  { %5026 = vst [vmem:[#allocation18_spill] sm:$0xff] %v3517_v13  ;;  %v3520_v6 = vpop.eup %2758  ;;  %v270_v45 = vsub.f32 %v5041_v28, %v3509_v22  ;;  %v1893_v61 = vxor.u32 %v1829_v10, %v1765_v32  ;;  %v5045_v22 = vld [vmem:[#allocation28_spill] sm:$0xff] }
 0x105   :  { %5027 = vst [vmem:[#allocation54_spill] sm:$0xff] %v3520_v6  ;;  %v3525_v36 = vpop.eup %2760 }
 0x106   :  { %5029 = vst [vmem:[#allocation19_spill] sm:$0xff] %v3525_v36  ;;  %v3537_v18 = vpop.eup %2762 }
 0x107   :  { %479 = vadd.xlane.f32.xlu2 %v3497_v12  ;;  %477 = vadd.xlane.f32.xlu1 %v3507_v25  ;;  %5032 = vst [vmem:[#allocation20_spill] sm:$0xff] %v3537_v18  ;;  %v1891_v25 = vxor.u32 %v1827_v19, %v1763_v9  ;;  %v1635_v12 = vmul.u32 128, %v1504_v44  ;;  %v3541_v39 = vpop.eup %2764  ;;  %v1700_v44 = vadd.s32 %v1636_v29, %v3494_v3 }
 0x108   :  { %475 = vadd.xlane.f32.xlu0 %v3489_v60  ;;  %5034 = vst [vmem:[#allocation21_spill] sm:$0xff] %v3541_v39  ;;  %v3545_v60 = vpop.eup %2766 }
 0x109   :  { %5035 = vst [vmem:[#allocation22_spill] sm:$0xff] %v3545_v60  ;;  %v1955_v40 = vmul.u32 2146121005, %v1891_v25  ;;  %v1699_v9 = vadd.s32 %v1635_v12, %v3494_v3  ;;  %v3552_v19 = vpop.eup %2768  ;;  %v1767_v50 = vxor.u32 %v3505_v30, %v1700_v44  ;;  %v379_v25 = vmul.f32 1.442695, %v267_v23 }
 0x10a   :  { %v204_v49 = vpop.xlane.xlu2 %203  ;;  %v3543_v26 = vpop.xlane.xlu1 %201  ;;  %5037 = vst [vmem:[#allocation23_spill] sm:$0xff] %v3552_v19  ;;  %v2020_v12 = vshrl.u32 %v1956_v24, 15  ;;  %v271_v23 = vsub.f32 %v5040_v43, %v3503_v16  ;;  %v389_v16 = vmul.f32 1.442695, %v272_v21 }
 0x10b   :  { %v3549_v53 = vpop.xlane.xlu0 %199  ;;  %v1766_v35 = vxor.u32 %v3505_v30, %v1699_v9  ;;  %v2019_v15 = vshrl.u32 %v1955_v40, 15  ;;  %v3561_v31 = vpop.eup %2770  ;;  %v1831_v52 = vshrl.u32 %v1767_v50, 16  ;;  %v5042_v9 = vld [vmem:[#allocation27_spill] sm:$0xff]  ;;  %2782 = vpow2.f32 %v379_v25 }
 0x10c   :  { %5038 = vst [vmem:[#allocation55_spill] sm:$0xff] %v3561_v31  ;;  %v275_v44 = vsub.f32 %v5042_v9, %v204_v49  ;;  %v3571_v59 = vpop.eup %2772  ;;  %v1957_v49 = vmul.u32 2146121005, %v1893_v61  ;;  %2784 = vpow2.f32 %v389_v16 }
 0x10d   :  { %v1830_v29 = vshrl.u32 %v1766_v35, 16  ;;  %v2083_v34 = vxor.u32 %v2019_v15, %v1955_v40  ;;  %5043 = vst [vmem:[#allocation24_spill] sm:$0xff] %v3571_v59  ;;  %v3575_v20 = vpop.eup %2774  ;;  %v387_v40 = vmul.f32 1.442695, %v271_v23  ;;  %v385_v15 = vmul.f32 1.442695, %v270_v45 }
 0x10e   :  { %5044 = vst [vmem:[#allocation25_spill] sm:$0xff] %v3575_v20  ;;  %v3579_v43 = vpop.eup %2776  ;;  %v2021_v28 = vshrl.u32 %v1957_v49, 15 }
 0x10f   :  { %485 = vadd.xlane.f32.xlu2 %v3517_v13  ;;  %483 = vadd.xlane.f32.xlu1 %v3520_v6  ;;  %v1894_v47 = vxor.u32 %v1830_v29, %v1766_v35  ;;  %v1895_v13 = vxor.u32 %v1831_v52, %v1767_v50  ;;  %v274_v35 = vsub.f32 %v5045_v22, %v3543_v26  ;;  %v5047_v50 = vld [vmem:[#allocation29_spill] sm:$0xff]  ;;  %v3583_v52 = vpop.eup %2778  ;;  %2786 = vpow2.f32 %v387_v40 }
 0x110   :  { %481 = vadd.xlane.f32.xlu0 %v3492_v7  ;;  %v3573_v7 = vxor.u32 %v2020_v12, %v1956_v24  ;;  %5046 = vst [vmem:[#allocation26_spill] sm:$0xff] %v3579_v43  ;;  %v273_v32 = vsub.f32 %v5047_v50, %v3549_v53  ;;  %v395_v24 = vmul.f32 1.442695, %v275_v44  ;;  %v2147_v12 = vmul.u32 2221713035, %v2083_v34  ;;  %v3585_v21 = vpop.eup %2780  ;;  %v5050_v44 = vld [vmem:[#allocation30_spill] sm:$0xff] }
 0x111   :  { %v1958_v55 = vmul.u32 2146121005, %v1894_v47  ;;  %v1959_v29 = vmul.u32 2146121005, %v1895_v13  ;;  %5048 = vst [vmem:[#allocation27_spill] sm:$0xff] %v3585_v21  ;;  %v1508_v53 = vadd.s32 56, %v3475_v33  ;;  %v3595_v47 = vxor.u32 %v2021_v28, %v1957_v49  ;;  %v3597_v9 = vpop.eup %2782 }
 0x112   :  { %v210_v42 = vpop.xlane.xlu2 %209  ;;  %v208_v6 = vpop.xlane.xlu1 %207  ;;  %v2148_v61 = vmul.u32 2221713035, %v3573_v7  ;;  %v393_v23 = vmul.f32 1.442695, %v274_v35  ;;  %5049 = vst [vmem:[#allocation28_spill] sm:$0xff] %v3597_v9  ;;  %2788 = vpow2.f32 %v385_v15  ;;  %v5051_v7 = vld [vmem:[#allocation31_spill] sm:$0xff] }
 0x113   :  { %v206_v27 = vpop.xlane.xlu0 %205  ;;  %v2022_v25 = vshrl.u32 %v1958_v55, 15  ;;  %v2023_v10 = vshrl.u32 %v1959_v29, 15  ;;  %v278_v26 = vsub.f32 %v3210_v48, %v210_v42  ;;  %v391_v48 = vmul.f32 1.442695, %v273_v32 }
 0x114   :  { %v277_v42 = vsub.f32 %v5050_v44, %v208_v6  ;;  %v1639_v34 = vmul.u32 128, %v1508_v53  ;;  %v2211_v16 = vshrl.u32 %v2147_v12, 16  ;;  %2790 = vpow2.f32 %v395_v24 }
 0x115   :  { %v2086_v13 = vxor.u32 %v2022_v25, %v1958_v55  ;;  %v3593_v45 = vxor.u32 %v2023_v10, %v1959_v29  ;;  %v276_v55 = vsub.f32 %v5051_v7, %v206_v27  ;;  %v401_v25 = vmul.f32 1.442695, %v278_v26 }
 0x116   :  { %v2212_v10 = vshrl.u32 %v2148_v61, 16  ;;  %v1703_v49 = vadd.s32 %v1639_v34, %v3494_v3  ;;  %2792 = vpow2.f32 %v393_v23  ;;  %v2149_v32 = vmul.u32 2221713035, %v3595_v47 }
 0x117   :  { %491 = vadd.xlane.f32.xlu2 %v3537_v18  ;;  %489 = vadd.xlane.f32.xlu1 %v3541_v39  ;;  %v2150_v35 = vmul.u32 2221713035, %v2086_v13  ;;  %v2151_v40 = vmul.u32 2221713035, %v3593_v45  ;;  %v1507_v6 = vadd.s32 48, %v3475_v33  ;;  %2794 = vpow2.f32 %v391_v48  ;;  %v3607_v13 = vpop.eup %2784  ;;  %v5052_v45 = vld [vmem:[#allocation32_spill] sm:$0xff] }
 0x118   :  { %487 = vadd.xlane.f32.xlu0 %v3512_v1  ;;  %v399_v15 = vmul.f32 1.442695, %v277_v42  ;;  %v1770_v28 = vxor.u32 %v3505_v30, %v1703_v49  ;;  %v397_v24 = vmul.f32 1.442695, %v276_v55  ;;  %v3609_v26 = vxor.u32 %v2211_v16, %v2147_v12  ;;  %v3611_v23 = vpop.eup %2786 }
 0x119   :  { %v2214_v53 = vshrl.u32 %v2150_v35, 16  ;;  %v1638_v44 = vmul.u32 128, %v1507_v6  ;;  %2796 = vpow2.f32 %v401_v25  ;;  %v3616_v48 = vxor.u32 %v2212_v10, %v2148_v61  ;;  %v3618_v42 = vpop.eup %2788 }
 0x11a   :  { %v216_v22 = vpop.xlane.xlu2 %215  ;;  %v214_v50 = vpop.xlane.xlu1 %213  ;;  %v2215_v12 = vshrl.u32 %v2151_v40, 16  ;;  %v2213_v34 = vshrl.u32 %v2149_v32, 16  ;;  %v1506_v55 = vadd.s32 40, %v3475_v33  ;;  %2798 = vpow2.f32 %v399_v15 }
 0x11b   :  { %v212_v29 = vpop.xlane.xlu0 %211  ;;  %v281_v27 = vsub.f32 %v3227_v38, %v216_v22  ;;  %v280_v47 = vsub.f32 %v5052_v45, %v214_v50  ;;  %v1834_v38 = vshrl.u32 %v1770_v28, 16  ;;  %v1702_v7 = vadd.s32 %v1638_v44, %v3494_v3  ;;  %v3623_v22 = vpop.eup %2790 }
 0x11c   :  { %v279_v16 = vsub.f32 %v3231_v2, %v212_v29  ;;  %v3626_v61 = vpop.eup %2792  ;;  %2800 = vpow2.f32 %v397_v24  ;;  %v2339_v10 = vand.u32 16777215, %v3609_v26  ;;  %v3633_v45 = vxor.u32 %v2214_v53, %v2150_v35 }
 0x11d   :  { %v407_v50 = vmul.f32 1.442695, %v281_v27  ;;  %v1898_v25 = vxor.u32 %v1834_v38, %v1770_v28  ;;  %v3635_v44 = vpop.eup %2794  ;;  %v2340_v15 = vand.u32 16777215, %v3616_v48  ;;  %v1769_v29 = vxor.u32 %v3505_v30, %v1702_v7 }
 0x11e   :  { %v3641_v27 = vxor.u32 %v2215_v12, %v2151_v40  ;;  %v3643_v28 = vxor.u32 %v2213_v34, %v2149_v32  ;;  %v1637_v24 = vmul.u32 128, %v1506_v55  ;;  %v403_v35 = vmul.f32 1.442695, %v279_v16 }
 0x11f   :  { %497 = vadd.xlane.f32.xlu2 %v3552_v19  ;;  %495 = vadd.xlane.f32.xlu1 %v3561_v31  ;;  %v3645_v26 = vpop.eup %2796  ;;  %vm3706_vm4 = vcmp.ge.s32.totalorder %v2339_v10, 1677722  ;;  %vm3715_vm6 = vcmp.ge.s32.totalorder %v2340_v15, 1677722 }
 0x120   :  { %493 = vadd.xlane.f32.xlu0 %v3525_v36  ;;  %v405_v36 = vmul.f32 1.442695, %v280_v47  ;;  %v1962_v47 = vmul.u32 2146121005, %v1898_v25  ;;  %v3652_v40 = vpop.eup %2798  ;;  %v1701_v25 = vadd.s32 %v1637_v24, %v3494_v3 }
 0x122   :  { %v3629_v49 = vpop.xlane.xlu1 %411  ;;  %v3631_v6 = vpop.xlane.xlu2 %413  ;;  %v2026_v16 = vshrl.u32 %v1962_v47, 15  ;;  %v3702_v39 = vxor.u32 %v3505_v30, %v1701_v25 }
 0x123   :  { %2802 = vrcp.f32 %v3629_v49  ;;  %v218_v2 = vpop.xlane.xlu0 %217  ;;  %v548_v38 = vand.u32 2147483647, %v3629_v49  ;;  %v550_v48 = vand.u32 2147483648, %v3629_v49  ;;  %v565_v7 = vand.u32 2147483648, %v3631_v6  ;;  %v3657_v34 = vpop.eup %2800 }
 0x124   :  { %2804 = vrcp.f32 %v3631_v6  ;;  %v282_v53 = vsub.f32 %v3249_v37, %v218_v2  ;;  %v563_v32 = vand.u32 2147483647, %v3631_v6  ;;  %v1833_v37 = vshrl.u32 %v1769_v29, 16 }
 0x125   :  { %2806 = vpow2.f32 %v407_v50  ;;  %vm544_vm0 = vweird.f32 %v3629_v49  ;;  %vm559_vm1 = vweird.f32 %v3631_v6  ;;  %v3668_v2 = vadd.s32 80, %v3475_v33 }
 0x126   :  { %2808 = vpow2.f32 %v405_v36  ;;  %v409_v12 = vmul.f32 1.442695, %v282_v53  ;;  %vm3674_vm2 = vcmp.eq.f32.partialorder %v548_v38, 8.507059e+37  ;;  %v551_v24 = vor.u32 1.1754944e-38, %v550_v48 }
 0x127   :  { %503 = vadd.xlane.f32.xlu2 %v3575_v20  ;;  %501 = vadd.xlane.f32.xlu1 %v3579_v43  ;;  %2810 = vpow2.f32 %v403_v35  ;;  %v566_v31 = vor.u32 1.1754944e-38, %v565_v7  ;;  %vm3686_vm3 = vcmp.eq.f32.partialorder %v563_v32, 8.507059e+37  ;;  %v3693_v48 = vxor.u32 %v1833_v37, %v1769_v29 }
 0x128   :  { %499 = vadd.xlane.f32.xlu0 %v3545_v60  ;;  %2812 = vpow2.f32 %v409_v12  ;;  %v3696_v7 = vadd.s32 72, %v3475_v33  ;;  %v3699_v1 = vxor.u32 %v2026_v16, %v1962_v47  ;;  %v1832_v17 = vshrl.u32 %v3702_v39, 16 }
 0x129   :  { %v3663_v36 = vpop.eup %2802 }
 0x12a   :  { %v3670_v53 = vpop.eup %2804  ;;  %v540_v55 = vmul.f32 %v3663_v36, %v3629_v49  ;;  %v3678_v35 = vpop.xlane.xlu1 %417  ;;  %vm545_vm5 = vweird.f32 %v3663_v36 }
 0x12b   :  { %v3680_v60 = vpop.xlane.xlu2 %419  ;;  %v3682_v43 = vpop.eup %2806  ;;  %v555_v20 = vmul.f32 %v3670_v53, %v3631_v6  ;;  %2814 = vrcp.f32 %v3678_v35  ;;  %v595_v29 = vand.u32 2147483648, %v3678_v35  ;;  %v593_v10 = vand.u32 2147483647, %v3678_v35  ;;  %vm546_vm9 = vmor %vm544_vm0, %vm545_vm5 }
 0x12c   :  { %5055 = vst [vmem:[#allocation29_spill] sm:$0xff] %v3682_v43  ;;  %v3691_v38 = vpop.xlane.xlu0 %415  ;;  %v541_v12 = vsub.f32 1.0, %v540_v55  ;;  %2816 = vrcp.f32 %v3680_v60  ;;  %v3704_v32 = vpop.eup %2808  ;;  %v610_v37 = vand.u32 2147483648, %v3680_v60  ;;  %vm560_vm7 = vweird.f32 %v3670_v53 }
 0x12d   :  { %v556_v54 = vsub.f32 1.0, %v555_v20  ;;  %2818 = vrcp.f32 %v3691_v38  ;;  %v3721_v16 = vpop.eup %2810  ;;  %v608_v25 = vand.u32 2147483647, %v3680_v60  ;;  %vm589_vm8 = vweird.f32 %v3678_v35  ;;  %vm561_vm11 = vmor %vm559_vm1, %vm560_vm7 }
 0x12e   :  { %v542_v63 = vmul.f32 %v3663_v36, %v541_v12  ;;  %v3729_v12 = vpop.eup %2812  ;;  %vm604_vm10 = vweird.f32 %v3680_v60  ;;  %vm3748_vm12 = vcmp.eq.f32.partialorder %v593_v10, 8.507059e+37  ;;  %v578_v49 = vand.u32 2147483647, %v3691_v38 }
 0x12f   :  { %v557_v20 = vmul.f32 %v3670_v53, %v556_v54  ;;  %509 = vadd.xlane.f32.xlu2 %v3585_v21  ;;  %507 = vadd.xlane.f32.xlu1 %v3597_v9  ;;  %5062 = vst [vmem:[#allocation30_spill] sm:$0xff] %v3729_v12  ;;  %v1961_v54 = vmul.u32 2146121005, %v3693_v48  ;;  %v596_v9 = vor.u32 1.1754944e-38, %v595_v29  ;;  %v580_v29 = vand.u32 2147483648, %v3691_v38 }
 0x130   :  { %v543_v55 = vadd.f32 %v3663_v36, %v542_v63  ;;  %505 = vadd.xlane.f32.xlu0 %v3571_v59  ;;  %v611_v63 = vor.u32 1.1754944e-38, %v610_v37  ;;  %vm3758_vm13 = vcmp.eq.f32.partialorder %v608_v25, 8.507059e+37  ;;  %vm574_vm14 = vweird.f32 %v3691_v38 }
 0x131   :  { %v2815_v62 = vpop.eup %2814  ;;  %v558_v15 = vadd.f32 %v3670_v53, %v557_v20  ;;  %v2154_v10 = vmul.u32 2221713035, %v3699_v1 }
 0x132   :  { %v2817_v21 = vpop.eup %2816  ;;  %v547_v57 = vsel %vm546_vm9, %v3663_v36, %v543_v55  ;;  %v585_v48 = vmul.f32 %v2815_v62, %v3678_v35  ;;  %vm590_vm0 = vweird.f32 %v2815_v62  ;;  %vm3811_vm9 = vcmp.eq.f32.partialorder %v578_v49, 8.507059e+37 }
 0x133   :  { %v552_v37 = vsel %vm3674_vm2, %v551_v24, %v547_v57  ;;  %v562_v36 = vsel %vm561_vm11, %v3670_v53, %v558_v15  ;;  %v600_v55 = vmul.f32 %v2817_v21, %v3680_v60  ;;  %v3764_v20 = vpop.xlane.xlu2 %425  ;;  %v2819_v14 = vpop.eup %2818  ;;  %v2025_v24 = vshrl.u32 %v1961_v54, 15 }
 0x134   :  { %v553_v56 = vmul.f32 1.1111112, %v552_v37  ;;  %v567_v50 = vsel %vm3686_vm3, %v566_v31, %v562_v36  ;;  %v586_v57 = vsub.f32 1.0, %v585_v48  ;;  %v5067_v15 = vand.u32 16777215, %v3633_v45 }
 0x135   :  { %v568_v53 = vmul.f32 1.1111112, %v567_v50  ;;  %v601_v51 = vsub.f32 1.0, %v600_v55  ;;  %v570_v1 = vmul.f32 %v2819_v14, %v3691_v38  ;;  %v5070_v37 = vand.u32 16777215, %v3641_v27 }
 0x136   :  { %vm3770_vm15 = vcmp.ge.s32.totalorder %v5067_v15, 1677722  ;;  %v2467_v43 = vmul.f32 %v3247_v41, %v553_v56  ;;  %v587_v12 = vmul.f32 %v2815_v62, %v586_v57  ;;  %vm605_vm2 = vweird.f32 %v2817_v21  ;;  %v3817_v15 = vpop.xlane.xlu1 %423 }
 0x137   :  { %vm3778_vm1 = vcmp.ge.s32.totalorder %v5070_v37, 1677722  ;;  %2820 = vrcp.f32 %v3764_v20  ;;  %v2468_v31 = vmul.f32 %v3251_v4, %v568_v53  ;;  %v602_v45 = vmul.f32 %v2817_v21, %v601_v51  ;;  %515 = vadd.xlane.f32.xlu2 %v3611_v23  ;;  %513 = vadd.xlane.f32.xlu1 %v3618_v42  ;;  %vm606_vm7 = vmor %vm604_vm10, %vm605_vm2 }
 0x138   :  { %v571_v48 = vsub.f32 1.0, %v570_v1  ;;  %v2218_v36 = vshrl.u32 %v2154_v10, 16  ;;  %v2531_v41 = vsel %vm3706_vm4, %v2467_v43, 0.0  ;;  %v588_v56 = vadd.f32 %v2815_v62, %v587_v12  ;;  %511 = vadd.xlane.f32.xlu0 %v3583_v52  ;;  %vm591_vm4 = vmor %vm589_vm8, %vm590_vm0 }
 0x139   :  { %v5073_v27 = vand.u32 16777215, %v3643_v28  ;;  %v3795_v50 = vxor.u32 %v1832_v17, %v3702_v39  ;;  %v5076_v4 = vmul.u32 128, %v3668_v2  ;;  %2595 = vst [vmem:[#allocation7] sm:$0xff] %v2531_v41  ;;  %v2532_v18 = vsel %vm3715_vm6, %v2468_v31, 0.0 }
 0x13a   :  { %v603_v43 = vadd.f32 %v2817_v21, %v602_v45  ;;  %v572_v28 = vmul.f32 %v2819_v14, %v571_v48  ;;  %vm575_vm5 = vweird.f32 %v2819_v14  ;;  %2596 = vst [vmem:[#allocation7 + $0x8] sm:$0xff] %v2532_v18  ;;  %v592_v17 = vsel %vm591_vm4, %v2815_v62, %v588_v56  ;;  %v3832_v45 = vpop.xlane.xlu0 %421 }
 0x13b   :  { %vm3790_vm3 = vcmp.ge.s32.totalorder %v5073_v27, 1677722  ;;  %v3801_v51 = vadd.s32 %v5076_v4, %v3494_v3  ;;  %v581_v2 = vor.u32 1.1754944e-38, %v580_v29  ;;  %v2089_v47 = vxor.u32 %v2025_v24, %v1961_v54  ;;  %vm576_vm6 = vmor %vm574_vm14, %vm575_vm5 }
 0x13c   :  { %v597_v12 = vsel %vm3748_vm12, %v596_v9, %v592_v17  ;;  %v607_v35 = vsel %vm606_vm7, %v2817_v21, %v603_v43  ;;  %v573_v57 = vadd.f32 %v2819_v14, %v572_v28  ;;  %v2282_v53 = vxor.u32 %v2218_v36, %v2154_v10  ;;  %v3861_v17 = vpop.xlane.xlu2 %431 }
 0x13d   :  { %v2821_v1 = vpop.eup %2820  ;;  %v598_v62 = vmul.f32 1.1111112, %v597_v12  ;;  %v612_v60 = vsel %vm3758_vm13, %v611_v63, %v607_v35  ;;  %v653_v49 = vand.u32 2147483647, %v3764_v20  ;;  %v2153_v54 = vmul.u32 2221713035, %v2089_v47 }
 0x13e   :  { %v613_v29 = vmul.f32 1.1111112, %v612_v60  ;;  %v577_v59 = vsel %vm576_vm6, %v2819_v14, %v573_v57  ;;  %v645_v21 = vmul.f32 %v2821_v1, %v3764_v20  ;;  %v655_v9 = vand.u32 2147483648, %v3764_v20 }
 0x13f   :  { %v2470_v10 = vmul.f32 %v3270_v0, %v598_v62  ;;  %v582_v24 = vsel %vm3811_vm9, %v581_v2, %v577_v59  ;;  %v2217_v6 = vshrl.u32 %v2153_v54, 16  ;;  %2822 = vrcp.f32 %v3817_v15  ;;  %521 = vadd.xlane.f32.xlu2 %v3626_v61  ;;  %519 = vadd.xlane.f32.xlu1 %v3635_v44 }
 0x140   :  { %v2471_v38 = vmul.f32 %v3268_v5, %v613_v29  ;;  %v583_v63 = vmul.f32 1.1111112, %v582_v24  ;;  %v2346_v37 = vand.u32 16777215, %v2282_v53  ;;  %v646_v31 = vsub.f32 1.0, %v645_v21  ;;  %517 = vadd.xlane.f32.xlu0 %v3607_v13  ;;  %v3883_v24 = vpop.xlane.xlu1 %429 }
 0x141   :  { %v2534_v0 = vsel %vm3770_vm15, %v2470_v10, 0.0  ;;  %vm650_vm8 = vweird.f32 %v2821_v1  ;;  %v2281_v14 = vxor.u32 %v2217_v6, %v2153_v54  ;;  %v638_v48 = vand.u32 2147483647, %v3817_v15 }
 0x142   :  { %2598 = vst [vmem:[#allocation7 + $0x18] sm:$0xff] %v2534_v0  ;;  %v2535_v5 = vsel %vm3778_vm1, %v2471_v38, 0.0  ;;  %v2469_v36 = vmul.f32 %v3272_v8, %v583_v63  ;;  %v647_v41 = vmul.f32 %v2821_v1, %v646_v31  ;;  %v1960_v56 = vmul.u32 2146121005, %v3795_v50 }
 0x143   :  { %2599 = vst [vmem:[#allocation7 + $0x20] sm:$0xff] %v2535_v5  ;;  %vm649_vm10 = vweird.f32 %v3764_v20  ;;  %vm3845_vm11 = vcmp.eq.f32.partialorder %v653_v49, 8.507059e+37  ;;  %v640_v27 = vand.u32 2147483648, %v3817_v15  ;;  %2824 = vrcp.f32 %v3832_v45 }
 0x144   :  { %v2533_v19 = vsel %vm3790_vm3, %v2469_v36, 0.0  ;;  %v648_v4 = vadd.f32 %v2821_v1, %v647_v41  ;;  %v656_v18 = vor.u32 1.1754944e-38, %v655_v9  ;;  %v2024_v8 = vshrl.u32 %v1960_v56, 15  ;;  %vm651_vm13 = vmor %vm649_vm10, %vm650_vm8 }
 0x145   :  { %v2823_v43 = vpop.eup %2822  ;;  %2597 = vst [vmem:[#allocation7 + $0x10] sm:$0xff] %v2533_v19  ;;  %vm3853_vm12 = vcmp.ge.s32.totalorder %v2346_v37, 1677722  ;;  %v2345_v20 = vand.u32 16777215, %v2281_v14  ;;  %vm634_vm14 = vweird.f32 %v3817_v15  ;;  %v1773_v28 = vxor.u32 %v3505_v30, %v3801_v51 }
 0x146   :  { %v652_v55 = vsel %vm651_vm13, %v2821_v1, %v648_v4  ;;  %v630_v39 = vmul.f32 %v2823_v43, %v3817_v15  ;;  %vm3864_vm15 = vcmp.eq.f32.partialorder %v638_v48, 8.507059e+37  ;;  %v2088_v47 = vxor.u32 %v2024_v8, %v1960_v56 }
 0x147   :  { %v657_v12 = vsel %vm3845_vm11, %v656_v18, %v652_v55  ;;  %v641_v35 = vor.u32 1.1754944e-38, %v640_v27  ;;  %v623_v57 = vand.u32 2147483647, %v3832_v45  ;;  %v1837_v53 = vshrl.u32 %v1773_v28, 16  ;;  %527 = vadd.xlane.f32.xlu2 %v3652_v40  ;;  %525 = vadd.xlane.f32.xlu1 %v3657_v34 }
 0x148   :  { %v658_v62 = vmul.f32 1.1111112, %v657_v12  ;;  %v631_v60 = vsub.f32 1.0, %v630_v39  ;;  %v2152_v51 = vmul.u32 2221713035, %v2088_v47  ;;  %vm619_vm0 = vweird.f32 %v3832_v45  ;;  %523 = vadd.xlane.f32.xlu0 %v3623_v22 }
 0x149   :  { %2826 = vrcp.f32 %v3861_v17  ;;  %v2825_v1 = vpop.eup %2824  ;;  %vm3875_vm1 = vcmp.ge.s32.totalorder %v2345_v20, 1677722  ;;  %vm635_vm2 = vweird.f32 %v2823_v43  ;;  %v625_v54 = vand.u32 2147483648, %v3832_v45 }
 0x14a   :  { %v1901_v29 = vxor.u32 %v1837_v53, %v1773_v28  ;;  %v2474_v59 = vmul.f32 %v3289_v46, %v658_v62  ;;  %v632_v21 = vmul.f32 %v2823_v43, %v631_v60  ;;  %v2216_v9 = vshrl.u32 %v2152_v51, 16  ;;  %vm636_vm4 = vmor %vm634_vm14, %vm635_vm2 }
 0x14b   :  { %v615_v10 = vmul.f32 %v2825_v1, %v3832_v45  ;;  %vm3885_vm3 = vcmp.eq.f32.partialorder %v623_v57, 8.507059e+37  ;;  %v698_v63 = vand.u32 2147483647, %v3861_v17  ;;  %v700_v37 = vand.u32 2147483648, %v3861_v17 }
 0x14c   :  { %v1965_v38 = vmul.u32 2146121005, %v1901_v29  ;;  %v2538_v31 = vsel %vm3853_vm12, %v2474_v59, 0.0  ;;  %v633_v0 = vadd.f32 %v2823_v43, %v632_v21  ;;  %v2280_v46 = vxor.u32 %v2216_v9, %v2152_v51  ;;  %v3924_v51 = vpop.xlane.xlu0 %427 }
 0x14d   :  { %v616_v14 = vsub.f32 1.0, %v615_v10  ;;  %2602 = vst [vmem:[#allocation7 + $0x38] sm:$0xff] %v2538_v31  ;;  %v626_v48 = vor.u32 1.1754944e-38, %v625_v54  ;;  %v5089_v36 = vmul.u32 128, %v3696_v7  ;;  %2828 = vrcp.f32 %v3883_v24 }
 0x14e   :  { %v2029_v5 = vshrl.u32 %v1965_v38, 15  ;;  %v637_v25 = vsel %vm636_vm4, %v2823_v43, %v633_v0  ;;  %vm620_vm5 = vweird.f32 %v2825_v1  ;;  %vm694_vm7 = vweird.f32 %v3861_v17 }
 0x14f   :  { %v1705_v41 = vadd.s32 %v5089_v36, %v3494_v3  ;;  %v2827_v56 = vpop.eup %2826  ;;  %v617_v27 = vmul.f32 %v2825_v1, %v616_v14  ;;  %v642_v19 = vsel %vm3864_vm15, %v641_v35, %v637_v25  ;;  %v2344_v4 = vand.u32 16777215, %v2280_v46  ;;  %533 = vadd.xlane.f32.xlu2 %v3704_v32  ;;  %531 = vadd.xlane.f32.xlu1 %v3721_v16  ;;  %vm621_vm6 = vmor %vm619_vm0, %vm620_vm5  ;;  %v5097_v25 = vld [vmem:[#allocation29_spill] sm:$0xff] }
 0x150   :  { %v2093_v15 = vxor.u32 %v2029_v5, %v1965_v38  ;;  %v690_v18 = vmul.f32 %v2827_v56, %v3861_v17  ;;  %vm3904_vm9 = vcmp.eq.f32.partialorder %v698_v63, 8.507059e+37  ;;  %v643_v7 = vmul.f32 1.1111112, %v642_v19  ;;  %529 = vadd.xlane.f32.xlu0 %v3645_v26  ;;  %v5094_v17 = vld [vmem:[#allocation30_spill] sm:$0xff] }
 0x151   :  { %v618_v50 = vadd.f32 %v2825_v1, %v617_v27  ;;  %v701_v20 = vor.u32 1.1754944e-38, %v700_v37  ;;  %v1772_v43 = vxor.u32 %v3505_v30, %v1705_v41  ;;  %vm695_vm8 = vweird.f32 %v2827_v56 }
 0x152   :  { %v2157_v28 = vmul.u32 2221713035, %v2093_v15  ;;  %v691_v55 = vsub.f32 1.0, %v690_v18  ;;  %v683_v39 = vand.u32 2147483647, %v3883_v24  ;;  %v2473_v2 = vmul.f32 %v3291_v58, %v643_v7  ;;  %vm696_vm12 = vmor %vm694_vm7, %vm695_vm8  ;;  %v5100_v18 = vld [vmem:[#allocation33_spill] sm:$0xff] }
 0x153   :  { %v622_v47 = vsel %vm621_vm6, %v2825_v1, %v618_v50  ;;  %v1836_v12 = vshrl.u32 %v1772_v43, 16  ;;  %vm679_vm10 = vweird.f32 %v3883_v24  ;;  %v1509_v35 = vadd.s32 64, %v3475_v33  ;;  %v2829_v57 = vpop.eup %2828 }
 0x154   :  { %vm3918_vm11 = vcmp.ge.s32.totalorder %v2344_v4, 1677722  ;;  %v627_v45 = vsel %vm3885_vm3, %v626_v48, %v622_v47  ;;  %v2221_v62 = vshrl.u32 %v2157_v28, 16  ;;  %v692_v60 = vmul.f32 %v2827_v56, %v691_v55  ;;  %v3940_v48 = vpop.xlane.xlu2 %437 }
 0x155   :  { %v2537_v58 = vsel %vm3875_vm1, %v2473_v2, 0.0  ;;  %v628_v1 = vmul.f32 1.1111112, %v627_v45  ;;  %v1900_v54 = vxor.u32 %v1836_v12, %v1772_v43  ;;  %v675_v29 = vmul.f32 %v2829_v57, %v3883_v24 }
 0x156   :  { %2601 = vst [vmem:[#allocation7 + $0x30] sm:$0xff] %v2537_v58  ;;  %v2285_v59 = vxor.u32 %v2221_v62, %v2157_v28  ;;  %v693_v21 = vadd.f32 %v2827_v56, %v692_v60  ;;  %v685_v9 = vand.u32 2147483648, %v3883_v24  ;;  %v1640_v10 = vmul.u32 128, %v1509_v35 }
 0x157   :  { %v2472_v6 = vmul.f32 %v3293_v11, %v628_v1  ;;  %v1964_v38 = vmul.u32 2146121005, %v1900_v54  ;;  %v676_v63 = vsub.f32 1.0, %v675_v29  ;;  %2830 = vrcp.f32 %v3924_v51  ;;  %537 = vadd.xlane.f32.xlu1 %v5094_v17 }
 0x158   :  { %v2349_v49 = vand.u32 16777215, %v2285_v59  ;;  %v697_v37 = vsel %vm696_vm12, %v2827_v56, %v693_v21  ;;  %vm680_vm13 = vweird.f32 %v2829_v57  ;;  %v1704_v31 = vadd.s32 %v1640_v10, %v3494_v3  ;;  %535 = vadd.xlane.f32.xlu0 %v5097_v25  ;;  %v5103_v59 = vld [vmem:[#allocation34_spill] sm:$0xff] }
 0x159   :  { %v2536_v0 = vsel %vm3918_vm11, %v2472_v6, 0.0  ;;  %v702_v46 = vsel %vm3904_vm9, %v701_v20, %v697_v37  ;;  %v2028_v11 = vshrl.u32 %v1964_v38, 15  ;;  %v677_v14 = vmul.f32 %v2829_v57, %v676_v63  ;;  %vm681_vm0 = vmor %vm679_vm10, %vm680_vm13 }
 0x15a   :  { %2600 = vst [vmem:[#allocation7 + $0x28] sm:$0xff] %v2536_v0  ;;  %v703_v5 = vmul.f32 1.1111112, %v702_v46  ;;  %vm3943_vm14 = vcmp.eq.f32.partialorder %v683_v39, 8.507059e+37  ;;  %v686_v41 = vor.u32 1.1754944e-38, %v685_v9  ;;  %v1771_v56 = vxor.u32 %v3505_v30, %v1704_v31 }
 0x15b   :  { %vm3949_vm15 = vcmp.ge.s32.totalorder %v2349_v49, 1677722  ;;  %v2092_v19 = vxor.u32 %v2028_v11, %v1964_v38  ;;  %v678_v4 = vadd.f32 %v2829_v57, %v677_v14  ;;  %v1514_v15 = vadd.s32 104, %v3475_v33  ;;  %v3975_v38 = vpop.xlane.xlu1 %435 }
 0x15c   :  { %v2477_v8 = vmul.f32 %v5100_v18, %v703_v5  ;;  %v1835_v7 = vshrl.u32 %v1771_v56, 16  ;;  %v670_v50 = vand.u32 2147483648, %v3924_v51  ;;  %2832 = vrcp.f32 %v3940_v48 }
 0x15d   :  { %v2831_v20 = vpop.eup %2830  ;;  %v2156_v43 = vmul.u32 2221713035, %v2092_v19  ;;  %v682_v28 = vsel %vm681_vm0, %v2829_v57, %v678_v4  ;;  %v668_v55 = vand.u32 2147483647, %v3924_v51  ;;  %v1645_v39 = vmul.u32 128, %v1514_v15 }
 0x15e   :  { %v2541_v2 = vsel %vm3949_vm15, %v2477_v8, 0.0  ;;  %v687_v47 = vsel %vm3943_vm14, %v686_v41, %v682_v28  ;;  %v1899_v12 = vxor.u32 %v1835_v7, %v1771_v56  ;;  %v660_v24 = vmul.f32 %v2831_v20, %v3924_v51 }
 0x15f   :  { %2605 = vst [vmem:[#allocation7 + $0x50] sm:$0xff] %v2541_v2  ;;  %v2220_v35 = vshrl.u32 %v2156_v43, 16  ;;  %v688_v53 = vmul.f32 1.1111112, %v687_v47  ;;  %v1709_v45 = vadd.s32 %v1645_v39, %v3494_v3  ;;  %vm664_vm1 = vweird.f32 %v3924_v51  ;;  %v5104_v47 = vld [vmem:[#allocation35_spill] sm:$0xff] }
 0x160   :  { %v1963_v62 = vmul.u32 2146121005, %v1899_v12  ;;  %v661_v60 = vsub.f32 1.0, %v660_v24  ;;  %v671_v57 = vor.u32 1.1754944e-38, %v670_v50  ;;  %vm665_vm2 = vweird.f32 %v2831_v20 }
 0x161   :  { %v2284_v58 = vxor.u32 %v2220_v35, %v2156_v43  ;;  %vm3968_vm3 = vcmp.eq.f32.partialorder %v668_v55, 8.507059e+37  ;;  %v1776_v54 = vxor.u32 %v3505_v30, %v1709_v45  ;;  %v2476_v21 = vmul.f32 %v5103_v59, %v688_v53  ;;  %vm666_vm5 = vmor %vm664_vm1, %vm665_vm2 }
 0x162   :  { %v2833_v29 = vpop.eup %2832  ;;  %v2027_v9 = vshrl.u32 %v1963_v62, 15  ;;  %v662_v10 = vmul.f32 %v2831_v20, %v661_v60  ;;  %v1513_v6 = vadd.s32 96, %v3475_v33  ;;  %v743_v31 = vand.u32 2147483647, %v3940_v48 }
 0x163   :  { %v2348_v63 = vand.u32 16777215, %v2284_v58  ;;  %v1840_v49 = vshrl.u32 %v1776_v54, 16  ;;  %v735_v37 = vmul.f32 %v2833_v29, %v3940_v48  ;;  %v745_v11 = vand.u32 2147483648, %v3940_v48 }
 0x164   :  { %v2091_v0 = vxor.u32 %v2027_v9, %v1963_v62  ;;  %v663_v46 = vadd.f32 %v2831_v20, %v662_v10  ;;  %v1644_v14 = vmul.u32 128, %v1513_v6  ;;  %2834 = vrcp.f32 %v3975_v38 }
 0x165   :  { %vm2412_vm4 = vcmp.ge.s32.totalorder %v2348_v63, 1677722  ;;  %v1904_v5 = vxor.u32 %v1840_v49, %v1776_v54  ;;  %v736_v36 = vsub.f32 1.0, %v735_v37  ;;  %vm740_vm7 = vweird.f32 %v2833_v29  ;;  %v4000_v49 = vpop.xlane.xlu2 %443  ;;  %v5105_v37 = vld [vmem:[#allocation36_spill] sm:$0xff] }
 0x166   :  { %v2540_v41 = vsel %vm2412_vm4, %v2476_v21, 0.0  ;;  %v2155_v56 = vmul.u32 2221713035, %v2091_v0  ;;  %v667_v27 = vsel %vm666_vm5, %v2831_v20, %v663_v46  ;;  %v1708_v19 = vadd.s32 %v1644_v14, %v3494_v3 }
 0x167   :  { %2604 = vst [vmem:[#allocation7 + $0x48] sm:$0xff] %v2540_v41  ;;  %v672_v4 = vsel %vm3968_vm3, %v671_v57, %v667_v27  ;;  %v1968_v15 = vmul.u32 2146121005, %v1904_v5  ;;  %v737_v18 = vmul.f32 %v2833_v29, %v736_v36  ;;  %vm739_vm9 = vweird.f32 %v3940_v48  ;;  %v3992_v48 = vpop.xlane.xlu0 %433 }
 0x168   :  { %v2219_v8 = vshrl.u32 %v2155_v56, 16  ;;  %v673_v7 = vmul.f32 1.1111112, %v672_v4  ;;  %v1775_v51 = vxor.u32 %v3505_v30, %v1708_v19  ;;  %vm744_vm6 = vcmp.eq.f32.partialorder %v743_v31, 8.507059e+37  ;;  %vm741_vm8 = vmor %vm739_vm9, %vm740_vm7 }
 0x169   :  { %v2032_v50 = vshrl.u32 %v1968_v15, 15  ;;  %v738_v43 = vadd.f32 %v2833_v29, %v737_v18  ;;  %v1512_v20 = vadd.s32 88, %v3475_v33  ;;  %v746_v55 = vor.u32 1.1754944e-38, %v745_v11 }
 0x16a   :  { %v2283_v28 = vxor.u32 %v2219_v8, %v2155_v56  ;;  %v1839_v39 = vshrl.u32 %v1775_v51, 16  ;;  %vm724_vm10 = vweird.f32 %v3975_v38  ;;  %v2835_v2 = vpop.eup %2834  ;;  %v2475_v12 = vmul.f32 %v5104_v47, %v673_v7 }
 0x16b   :  { %v2096_v24 = vxor.u32 %v2032_v50, %v1968_v15  ;;  %v742_v35 = vsel %vm741_vm8, %v2833_v29, %v738_v43  ;;  %v1643_v53 = vmul.u32 128, %v1512_v20  ;;  %v720_v57 = vmul.f32 %v2835_v2, %v3975_v38 }
 0x16c   :  { %v2347_v45 = vand.u32 16777215, %v2283_v28  ;;  %v747_v62 = vsel %vm744_vm6, %v746_v55, %v742_v35  ;;  %v1903_v60 = vxor.u32 %v1839_v39, %v1775_v51  ;;  %v728_v54 = vand.u32 2147483647, %v3975_v38 }
 0x16d   :  { %v2160_v58 = vmul.u32 2221713035, %v2096_v24  ;;  %v748_v1 = vmul.f32 1.1111112, %v747_v62  ;;  %v1707_v59 = vadd.s32 %v1643_v53, %v3494_v3  ;;  %v721_v9 = vsub.f32 1.0, %v720_v57  ;;  %v5108_v62 = vld [vmem:[#allocation37_spill] sm:$0xff] }
 0x16e   :  { %vm2411_vm11 = vcmp.ge.s32.totalorder %v2347_v45, 1677722  ;;  %v1967_v21 = vmul.u32 2146121005, %v1903_v60  ;;  %2836 = vrcp.f32 %v3992_v48  ;;  %v730_v6 = vand.u32 2147483648, %v3975_v38 }
 0x16f   :  { %v2539_v29 = vsel %vm2411_vm11, %v2475_v12, 0.0  ;;  %v2224_v10 = vshrl.u32 %v2160_v58, 16  ;;  %v1774_v63 = vxor.u32 %v3505_v30, %v1707_v59  ;;  %v2480_v31 = vmul.f32 %v5105_v37, %v748_v1 }
 0x170   :  { %2603 = vst [vmem:[#allocation7 + $0x40] sm:$0xff] %v2539_v29  ;;  %v2031_v0 = vshrl.u32 %v1967_v21, 15  ;;  %v722_v46 = vmul.f32 %v2835_v2, %v721_v9  ;;  %vm725_vm12 = vweird.f32 %v2835_v2  ;;  %v713_v5 = vand.u32 2147483647, %v3992_v48 }
 0x171   :  { %v2288_v11 = vxor.u32 %v2224_v10, %v2160_v58  ;;  %v1838_v14 = vshrl.u32 %v1774_v63, 16  ;;  %v1517_v36 = vadd.s32 128, %v3475_v33  ;;  %v715_v27 = vand.u32 2147483648, %v3992_v48  ;;  %vm726_vm13 = vmor %vm724_vm10, %vm725_vm12 }
 0x172   :  { %v2095_v41 = vxor.u32 %v2031_v0, %v1967_v21  ;;  %v723_v56 = vadd.f32 %v2835_v2, %v722_v46  ;;  %2838 = vrcp.f32 %v4000_v49  ;;  %v731_v4 = vor.u32 1.1754944e-38, %v730_v6  ;;  %v4021_v21 = vpop.xlane.xlu1 %441  ;;  %v5114_v0 = vld [vmem:[#allocation39_spill] sm:$0xff] }
 0x173   :  { %v2352_v19 = vand.u32 16777215, %v2288_v11  ;;  %v1902_v15 = vxor.u32 %v1838_v14, %v1774_v63  ;;  %v1648_v18 = vmul.u32 128, %v1517_v36  ;;  %vm729_vm14 = vcmp.eq.f32.partialorder %v728_v54, 8.507059e+37 }
 0x174   :  { %v2837_v8 = vpop.eup %2836  ;;  %v2159_v7 = vmul.u32 2221713035, %v2095_v41  ;;  %v727_v51 = vsel %vm726_vm13, %v2835_v2, %v723_v56  ;;  %vm709_vm15 = vweird.f32 %v3992_v48  ;;  %vm4011_vm1 = vcmp.eq.f32.partialorder %v713_v5, 8.507059e+37 }
 0x175   :  { %vm2416_vm0 = vcmp.ge.s32.totalorder %v2352_v19, 1677722  ;;  %v732_v50 = vsel %vm729_vm14, %v731_v4, %v727_v51  ;;  %v1966_v43 = vmul.u32 2146121005, %v1902_v15  ;;  %v705_v20 = vmul.f32 %v2837_v8, %v3992_v48 }
 0x176   :  { %v2544_v38 = vsel %vm2416_vm0, %v2480_v31, 0.0  ;;  %v2223_v55 = vshrl.u32 %v2159_v7, 16  ;;  %v733_v39 = vmul.f32 1.1111112, %v732_v50  ;;  %v716_v47 = vor.u32 1.1754944e-38, %v715_v27 }
 0x177   :  { %2608 = vst [vmem:[#allocation7 + $0x68] sm:$0xff] %v2544_v38  ;;  %v2030_v12 = vshrl.u32 %v1966_v43, 15  ;;  %v706_v24 = vsub.f32 1.0, %v705_v20  ;;  %v1712_v2 = vadd.s32 %v1648_v18, %v3494_v3  ;;  %v788_v35 = vand.u32 2147483647, %v4000_v49  ;;  %v4037_v18 = vpop.xlane.xlu0 %439  ;;  %v5111_v20 = vld [vmem:[#allocation38_spill] sm:$0xff] }
 0x178   :  { %v2839_v53 = vpop.eup %2838  ;;  %v2287_v45 = vxor.u32 %v2223_v55, %v2159_v7  ;;  %v2479_v60 = vmul.f32 %v5108_v62, %v733_v39  ;;  %vm710_vm2 = vweird.f32 %v2837_v8  ;;  %v1516_v57 = vadd.s32 120, %v3475_v33 }
 0x179   :  { %v2094_v58 = vxor.u32 %v2030_v12, %v1966_v43  ;;  %v707_v1 = vmul.f32 %v2837_v8, %v706_v24  ;;  %v1779_v54 = vxor.u32 %v3505_v30, %v1712_v2  ;;  %v780_v59 = vmul.f32 %v2839_v53, %v4000_v49  ;;  %vm711_vm5 = vmor %vm709_vm15, %vm710_vm2 }
 0x17a   :  { %v2351_v9 = vand.u32 16777215, %v2287_v45  ;;  %vm784_vm3 = vweird.f32 %v4000_v49  ;;  %v790_v29 = vand.u32 2147483648, %v4000_v49  ;;  %v1647_v10 = vmul.u32 128, %v1516_v57 }
 0x17b   :  { %v2158_v6 = vmul.u32 2221713035, %v2094_v58  ;;  %v708_v63 = vadd.f32 %v2837_v8, %v707_v1  ;;  %v1843_v37 = vshrl.u32 %v1779_v54, 16  ;;  %v781_v31 = vsub.f32 1.0, %v780_v59 }
 0x17c   :  { %vm2415_vm4 = vcmp.ge.s32.totalorder %v2351_v9, 1677722  ;;  %vm4028_vm7 = vcmp.eq.f32.partialorder %v788_v35, 8.507059e+37  ;;  %v1711_v46 = vadd.s32 %v1647_v10, %v3494_v3  ;;  %2840 = vrcp.f32 %v4021_v21 }
 0x17d   :  { %v2543_v11 = vsel %vm2415_vm4, %v2479_v60, 0.0  ;;  %v2222_v14 = vshrl.u32 %v2158_v6, 16  ;;  %v712_v5 = vsel %vm711_vm5, %v2837_v8, %v708_v63  ;;  %v1907_v36 = vxor.u32 %v1843_v37, %v1779_v54  ;;  %v4055_v54 = vpop.xlane.xlu2 %449 }
 0x17e   :  { %2607 = vst [vmem:[#allocation7 + $0x60] sm:$0xff] %v2543_v11  ;;  %v717_v41 = vsel %vm4011_vm1, %v716_v47, %v712_v5  ;;  %v782_v56 = vmul.f32 %v2839_v53, %v781_v31  ;;  %vm785_vm9 = vweird.f32 %v2839_v53  ;;  %v1778_v48 = vxor.u32 %v3505_v30, %v1711_v46 }
 0x17f   :  { %v2286_v27 = vxor.u32 %v2222_v14, %v2158_v6  ;;  %v718_v19 = vmul.f32 1.1111112, %v717_v41  ;;  %v1971_v4 = vmul.u32 2146121005, %v1907_v36  ;;  %v791_v15 = vor.u32 1.1754944e-38, %v790_v29  ;;  %vm786_vm6 = vmor %vm784_vm3, %vm785_vm9 }
 0x180   :  { %v783_v7 = vadd.f32 %v2839_v53, %v782_v56  ;;  %v1842_v51 = vshrl.u32 %v1778_v48, 16  ;;  %v773_v50 = vand.u32 2147483647, %v4021_v21  ;;  %v1515_v8 = vadd.s32 112, %v3475_v33 }
 0x181   :  { %v2350_v43 = vand.u32 16777215, %v2286_v27  ;;  %v2478_v28 = vmul.f32 %v5111_v20, %v718_v19  ;;  %v2035_v38 = vshrl.u32 %v1971_v4, 15  ;;  %v775_v55 = vand.u32 2147483648, %v4021_v21 }
 0x182   :  { %v2841_v39 = vpop.eup %2840  ;;  %v787_v47 = vsel %vm786_vm6, %v2839_v53, %v783_v7  ;;  %v1906_v12 = vxor.u32 %v1842_v51, %v1778_v48  ;;  %v1646_v24 = vmul.u32 128, %v1515_v8  ;;  %2842 = vrcp.f32 %v4037_v18 }
 0x183   :  { %vm2414_vm8 = vcmp.ge.s32.totalorder %v2350_v43, 1677722  ;;  %v2099_v2 = vxor.u32 %v2035_v38, %v1971_v4  ;;  %v792_v35 = vsel %vm4028_vm7, %v791_v15, %v787_v47  ;;  %v765_v45 = vmul.f32 %v2841_v39, %v4021_v21 }
 0x184   :  { %v2542_v62 = vsel %vm2414_vm8, %v2478_v28, 0.0  ;;  %v793_v60 = vmul.f32 1.1111112, %v792_v35  ;;  %v1970_v57 = vmul.u32 2146121005, %v1906_v12  ;;  %vm769_vm10 = vweird.f32 %v4021_v21 }
 0x185   :  { %2606 = vst [vmem:[#allocation7 + $0x58] sm:$0xff] %v2542_v62  ;;  %v2163_v49 = vmul.u32 2221713035, %v2099_v2  ;;  %v766_v58 = vsub.f32 1.0, %v765_v45  ;;  %vm4050_vm11 = vcmp.eq.f32.partialorder %v773_v50, 8.507059e+37  ;;  %v1710_v1 = vadd.s32 %v1646_v24, %v3494_v3 }
 0x186   :  { %v2034_v59 = vshrl.u32 %v1970_v57, 15  ;;  %vm770_vm12 = vweird.f32 %v2841_v39  ;;  %v776_v9 = vor.u32 1.1754944e-38, %v775_v55  ;;  %v758_v29 = vand.u32 2147483647, %v4037_v18 }
 0x187   :  { %v2227_v10 = vshrl.u32 %v2163_v49, 16  ;;  %v767_v6 = vmul.f32 %v2841_v39, %v766_v58  ;;  %v1777_v63 = vxor.u32 %v3505_v30, %v1710_v1  ;;  %v1520_v37 = vadd.s32 152, %v3475_v33  ;;  %vm771_vm14 = vmor %vm769_vm10, %vm770_vm12 }
 0x188   :  { %v2843_v31 = vpop.eup %2842  ;;  %v2483_v46 = vmul.f32 %v5114_v0, %v793_v60  ;;  %v2098_v11 = vxor.u32 %v2034_v59, %v1970_v57  ;;  %vm754_vm13 = vweird.f32 %v4037_v18  ;;  %2844 = vrcp.f32 %v4055_v54 }
 0x189   :  { %v2291_v14 = vxor.u32 %v2227_v10, %v2163_v49  ;;  %v768_v5 = vadd.f32 %v2841_v39, %v767_v6  ;;  %v1841_v36 = vshrl.u32 %v1777_v63, 16  ;;  %v750_v41 = vmul.f32 %v2843_v31, %v4037_v18 }
 0x18a   :  { %v2162_v56 = vmul.u32 2221713035, %v2098_v11  ;;  %vm4067_vm15 = vcmp.eq.f32.partialorder %v758_v29, 8.507059e+37  ;;  %v760_v27 = vand.u32 2147483648, %v4037_v18  ;;  %v1651_v19 = vmul.u32 128, %v1520_v37  ;;  %v4084_v29 = vpop.xlane.xlu1 %447  ;;  %v4090_v11 = vpop.xlane.xlu0 %445 }
 0x18b   :  { %v2355_v4 = vand.u32 16777215, %v2291_v14  ;;  %v772_v15 = vsel %vm771_vm14, %v2841_v39, %v768_v5  ;;  %v1905_v7 = vxor.u32 %v1841_v36, %v1777_v63  ;;  %v751_v51 = vsub.f32 1.0, %v750_v41  ;;  %v5117_v39 = vld [vmem:[#allocation40_spill] sm:$0xff] }
 0x18c   :  { %v2226_v50 = vshrl.u32 %v2162_v56, 16  ;;  %v777_v8 = vsel %vm4050_vm11, %v776_v9, %v772_v15  ;;  %vm755_vm0 = vweird.f32 %v2843_v31  ;;  %v1715_v43 = vadd.s32 %v1651_v19, %v3494_v3 }
 0x18d   :  { %vm2419_vm1 = vcmp.ge.s32.totalorder %v2355_v4, 1677722  ;;  %v778_v21 = vmul.f32 1.1111112, %v777_v8  ;;  %v1969_v20 = vmul.u32 2146121005, %v1905_v7  ;;  %v752_v28 = vmul.f32 %v2843_v31, %v751_v51  ;;  %vm756_vm2 = vmor %vm754_vm13, %vm755_vm0 }
 0x18e   :  { %v2845_v38 = vpop.eup %2844  ;;  %v2547_v55 = vsel %vm2419_vm1, %v2483_v46, 0.0  ;;  %v2290_v47 = vxor.u32 %v2226_v50, %v2162_v56  ;;  %v761_v12 = vor.u32 1.1754944e-38, %v760_v27  ;;  %v1782_v24 = vxor.u32 %v3505_v30, %v1715_v43  ;;  %v5118_v7 = vld [vmem:[#allocation41_spill] sm:$0xff] }
 0x18f   :  { %2611 = vst [vmem:[#allocation7 + $0x80] sm:$0xff] %v2547_v55  ;;  %v2482_v2 = vmul.f32 %v5117_v39, %v778_v21  ;;  %v2033_v35 = vshrl.u32 %v1969_v20, 15  ;;  %v753_v45 = vadd.f32 %v2843_v31, %v752_v28  ;;  %v825_v62 = vmul.f32 %v2845_v38, %v4055_v54 }
 0x190   :  { %v2354_v60 = vand.u32 16777215, %v2290_v47  ;;  %v1846_v57 = vshrl.u32 %v1782_v24, 16  ;;  %v833_v49 = vand.u32 2147483647, %v4055_v54  ;;  %v835_v58 = vand.u32 2147483648, %v4055_v54 }
 0x191   :  { %v2097_v53 = vxor.u32 %v2033_v35, %v1969_v20  ;;  %v757_v1 = vsel %vm756_vm2, %v2843_v31, %v753_v45  ;;  %v826_v59 = vsub.f32 1.0, %v825_v62  ;;  %v1519_v9 = vadd.s32 144, %v3475_v33 }
 0x192   :  { %vm2418_vm3 = vcmp.ge.s32.totalorder %v2354_v60, 1677722  ;;  %v762_v10 = vsel %vm4067_vm15, %v761_v12, %v757_v1  ;;  %v1910_v6 = vxor.u32 %v1846_v57, %v1782_v24  ;;  %vm829_vm4 = vweird.f32 %v4055_v54  ;;  %v4110_v60 = vpop.xlane.xlu2 %455  ;;  %v4134_v12 = vpop.xlane.xlu1 %453 }
 0x193   :  { %v2546_v18 = vsel %vm2418_vm3, %v2482_v2, 0.0  ;;  %v2161_v63 = vmul.u32 2221713035, %v2097_v53  ;;  %v827_v37 = vmul.f32 %v2845_v38, %v826_v59  ;;  %vm830_vm5 = vweird.f32 %v2845_v38 }
 0x194   :  { %2610 = vst [vmem:[#allocation7 + $0x78] sm:$0xff] %v2546_v18  ;;  %v763_v0 = vmul.f32 1.1111112, %v762_v10  ;;  %v1974_v46 = vmul.u32 2146121005, %v1910_v6  ;;  %v1650_v31 = vmul.u32 128, %v1519_v9  ;;  %2846 = vrcp.f32 %v4084_v29  ;;  %vm831_vm9 = vmor %vm829_vm4, %vm830_vm5 }
 0x195   :  { %v2225_v14 = vshrl.u32 %v2161_v63, 16  ;;  %v828_v5 = vadd.f32 %v2845_v38, %v827_v37  ;;  %vm834_vm7 = vcmp.eq.f32.partialorder %v833_v49, 8.507059e+37  ;;  %v836_v36 = vor.u32 1.1754944e-38, %v835_v58  ;;  %v5121_v49 = vld [vmem:[#allocation42_spill] sm:$0xff] }
 0x196   :  { %v2038_v41 = vshrl.u32 %v1974_v46, 15  ;;  %v1714_v56 = vadd.s32 %v1650_v31, %v3494_v3  ;;  %v818_v48 = vand.u32 2147483647, %v4084_v29  ;;  %v1518_v27 = vadd.s32 136, %v3475_v33 }
 0x197   :  { %v2289_v19 = vxor.u32 %v2225_v14, %v2161_v63  ;;  %v832_v4 = vsel %vm831_vm9, %v2845_v38, %v828_v5  ;;  %v820_v15 = vand.u32 2147483648, %v4084_v29  ;;  %2848 = vrcp.f32 %v4090_v11 }
 0x198   :  { %v2481_v51 = vmul.f32 %v5118_v7, %v763_v0  ;;  %v2102_v50 = vxor.u32 %v2038_v41, %v1974_v46  ;;  %v837_v8 = vsel %vm834_vm7, %v836_v36, %v832_v4  ;;  %v1781_v43 = vxor.u32 %v3505_v30, %v1714_v56 }
 0x199   :  { %v2353_v54 = vand.u32 16777215, %v2289_v19  ;;  %v838_v21 = vmul.f32 1.1111112, %v837_v8  ;;  %v1649_v20 = vmul.u32 128, %v1518_v27  ;;  %vm814_vm6 = vweird.f32 %v4084_v29 }
 0x19a   :  { %v2847_v28 = vpop.eup %2846  ;;  %v2166_v55 = vmul.u32 2221713035, %v2102_v50  ;;  %v1845_v47 = vshrl.u32 %v1781_v43, 16  ;;  %vm4103_vm10 = vcmp.eq.f32.partialorder %v818_v48, 8.507059e+37  ;;  %v821_v24 = vor.u32 1.1754944e-38, %v820_v15 }
 0x19b   :  { %vm2417_vm8 = vcmp.ge.s32.totalorder %v2353_v54, 1677722  ;;  %v810_v38 = vmul.f32 %v2847_v28, %v4084_v29  ;;  %v803_v39 = vand.u32 2147483647, %v4090_v11  ;;  %v1713_v62 = vadd.s32 %v1649_v20, %v3494_v3 }
 0x19c   :  { %v2545_v2 = vsel %vm2417_vm8, %v2481_v51, 0.0  ;;  %v2230_v35 = vshrl.u32 %v2166_v55, 16  ;;  %v1909_v45 = vxor.u32 %v1845_v47, %v1781_v43  ;;  %vm799_vm11 = vweird.f32 %v4090_v11 }
 0x19d   :  { %v2849_v57 = vpop.eup %2848  ;;  %2609 = vst [vmem:[#allocation7 + $0x70] sm:$0xff] %v2545_v2  ;;  %v2486_v58 = vmul.f32 %v5121_v49, %v838_v21  ;;  %v811_v53 = vsub.f32 1.0, %v810_v38  ;;  %v805_v1 = vand.u32 2147483648, %v4090_v11  ;;  %v1523_v59 = vadd.s32 176, %v3475_v33 }
 0x19e   :  { %v2294_v9 = vxor.u32 %v2230_v35, %v2166_v55  ;;  %v1973_v10 = vmul.u32 2146121005, %v1909_v45  ;;  %v1780_v6 = vxor.u32 %v3505_v30, %v1713_v62  ;;  %v795_v18 = vmul.f32 %v2849_v57, %v4090_v11 }
 0x19f   :  { %v812_v63 = vmul.f32 %v2847_v28, %v811_v53  ;;  %vm815_vm12 = vweird.f32 %v2847_v28  ;;  %v1654_v37 = vmul.u32 128, %v1523_v59  ;;  %2850 = vrcp.f32 %v4110_v60 }
 0x1a0   :  { %v2358_v0 = vand.u32 16777215, %v2294_v9  ;;  %v2037_v46 = vshrl.u32 %v1973_v10, 15  ;;  %v1844_v31 = vshrl.u32 %v1780_v6, 16  ;;  %v796_v14 = vsub.f32 1.0, %v795_v18  ;;  %vm816_vm0 = vmor %vm814_vm6, %vm815_vm12 }
 0x1a1   :  { %v813_v5 = vadd.f32 %v2847_v28, %v812_v63  ;;  %vm800_vm13 = vweird.f32 %v2849_v57  ;;  %vm4118_vm14 = vcmp.eq.f32.partialorder %v803_v39, 8.507059e+37  ;;  %v1718_v41 = vadd.s32 %v1654_v37, %v3494_v3 }
 0x1a2   :  { %vm2422_vm15 = vcmp.ge.s32.totalorder %v2358_v0, 1677722  ;;  %v2101_v56 = vxor.u32 %v2037_v46, %v1973_v10  ;;  %v1908_v48 = vxor.u32 %v1844_v31, %v1780_v6  ;;  %v797_v27 = vmul.f32 %v2849_v57, %v796_v14  ;;  %vm801_vm1 = vmor %vm799_vm11, %vm800_vm13  ;;  %v5127_v46 = vld [vmem:[#allocation44_spill] sm:$0xff] }
 0x1a3   :  { %v2550_v19 = vsel %vm2422_vm15, %v2486_v58, 0.0  ;;  %v817_v4 = vsel %vm816_vm0, %v2847_v28, %v813_v5  ;;  %v806_v15 = vor.u32 1.1754944e-38, %v805_v1  ;;  %v1785_v7 = vxor.u32 %v3505_v30, %v1718_v41  ;;  %v5124_v58 = vld [vmem:[#allocation43_spill] sm:$0xff]  ;;  %v4148_v5 = vpop.xlane.xlu0 %451 }
 0x1a4   :  { %2614 = vst [vmem:[#allocation7 + $0x98] sm:$0xff] %v2550_v19  ;;  %v2165_v51 = vmul.u32 2221713035, %v2101_v56  ;;  %v822_v50 = vsel %vm4103_vm10, %v821_v24, %v817_v4  ;;  %v1972_v8 = vmul.u32 2146121005, %v1908_v48  ;;  %v798_v43 = vadd.f32 %v2849_v57, %v797_v27 }
 0x1a5   :  { %v2851_v54 = vpop.eup %2850  ;;  %v823_v21 = vmul.f32 1.1111112, %v822_v50  ;;  %v1849_v29 = vshrl.u32 %v1785_v7, 16  ;;  %vm874_vm2 = vweird.f32 %v4110_v60  ;;  %v1522_v20 = vadd.s32 168, %v3475_v33 }
 0x1a6   :  { %v2229_v28 = vshrl.u32 %v2165_v51, 16  ;;  %v2036_v55 = vshrl.u32 %v1972_v8, 15  ;;  %v802_v47 = vsel %vm801_vm1, %v2849_v57, %v798_v43  ;;  %v870_v38 = vmul.f32 %v2851_v54, %v4110_v60 }
 0x1a7   :  { %v807_v24 = vsel %vm4118_vm14, %v806_v15, %v802_v47  ;;  %v1913_v39 = vxor.u32 %v1849_v29, %v1785_v7  ;;  %v878_v2 = vand.u32 2147483647, %v4110_v60  ;;  %v880_v11 = vand.u32 2147483648, %v4110_v60 }
 0x1a8   :  { %v2293_v35 = vxor.u32 %v2229_v28, %v2165_v51  ;;  %v2100_v45 = vxor.u32 %v2036_v55, %v1972_v8  ;;  %v808_v62 = vmul.f32 1.1111112, %v807_v24  ;;  %v871_v49 = vsub.f32 1.0, %v870_v38  ;;  %v4165_v38 = vpop.xlane.xlu2 %461 }
 0x1a9   :  { %v2485_v53 = vmul.f32 %v5124_v58, %v823_v21  ;;  %v1977_v1 = vmul.u32 2146121005, %v1913_v39  ;;  %v1653_v57 = vmul.u32 128, %v1522_v20  ;;  %2852 = vrcp.f32 %v4134_v12 }
 0x1aa   :  { %v2357_v59 = vand.u32 16777215, %v2293_v35  ;;  %v2164_v9 = vmul.u32 2221713035, %v2100_v45  ;;  %v872_v10 = vmul.f32 %v2851_v54, %v871_v49  ;;  %vm875_vm3 = vweird.f32 %v2851_v54  ;;  %v5130_v35 = vld [vmem:[#allocation45_spill] sm:$0xff] }
 0x1ab   :  { %v2041_v6 = vshrl.u32 %v1977_v1, 15  ;;  %vm4142_vm4 = vcmp.eq.f32.partialorder %v878_v2, 8.507059e+37  ;;  %v881_v63 = vor.u32 1.1754944e-38, %v880_v11  ;;  %v1717_v37 = vadd.s32 %v1653_v57, %v3494_v3  ;;  %vm876_vm7 = vmor %vm874_vm2, %vm875_vm3 }
 0x1ac   :  { %vm2421_vm5 = vcmp.ge.s32.totalorder %v2357_v59, 1677722  ;;  %v2228_v0 = vshrl.u32 %v2164_v9, 16  ;;  %v2484_v31 = vmul.f32 %v5127_v46, %v808_v62  ;;  %v873_v14 = vadd.f32 %v2851_v54, %v872_v10 }
 0x1ad   :  { %v2549_v36 = vsel %vm2421_vm5, %v2485_v53, 0.0  ;;  %v2105_v41 = vxor.u32 %v2041_v6, %v1977_v1  ;;  %v1784_v56 = vxor.u32 %v3505_v30, %v1717_v37  ;;  %v863_v48 = vand.u32 2147483647, %v4134_v12 }
 0x1ae   :  { %2613 = vst [vmem:[#allocation7 + $0x90] sm:$0xff] %v2549_v36  ;;  %v2292_v27 = vxor.u32 %v2228_v0, %v2164_v9  ;;  %v877_v19 = vsel %vm876_vm7, %v2851_v54, %v873_v14  ;;  %v865_v4 = vand.u32 2147483648, %v4134_v12  ;;  %v1521_v15 = vadd.s32 160, %v3475_v33 }
 0x1af   :  { %v2853_v7 = vpop.eup %2852  ;;  %v2169_v51 = vmul.u32 2221713035, %v2105_v41  ;;  %v882_v50 = vsel %vm4142_vm4, %v881_v63, %v877_v19  ;;  %v1848_v8 = vshrl.u32 %v1784_v56, 16  ;;  %2854 = vrcp.f32 %v4148_v5 }
 0x1b0   :  { %v2356_v60 = vand.u32 16777215, %v2292_v27  ;;  %v883_v43 = vmul.f32 1.1111112, %v882_v50  ;;  %v855_v21 = vmul.f32 %v2853_v7, %v4134_v12  ;;  %vm859_vm9 = vweird.f32 %v4134_v12 }
 0x1b1   :  { %v2233_v29 = vshrl.u32 %v2169_v51, 16  ;;  %v1912_v54 = vxor.u32 %v1848_v8, %v1784_v56  ;;  %vm4161_vm6 = vcmp.eq.f32.partialorder %v863_v48, 8.507059e+37  ;;  %v1652_v28 = vmul.u32 128, %v1521_v15 }
 0x1b2   :  { %vm2420_vm8 = vcmp.ge.s32.totalorder %v2356_v60, 1677722  ;;  %v856_v55 = vsub.f32 1.0, %v855_v21  ;;  %vm860_vm10 = vweird.f32 %v2853_v7  ;;  %v866_v47 = vor.u32 1.1754944e-38, %v865_v4 }
 0x1b3   :  { %v2548_v24 = vsel %vm2420_vm8, %v2484_v31, 0.0  ;;  %v2297_v39 = vxor.u32 %v2233_v29, %v2169_v51  ;;  %v1976_v2 = vmul.u32 2146121005, %v1912_v54  ;;  %v1716_v11 = vadd.s32 %v1652_v28, %v3494_v3  ;;  %vm861_vm13 = vmor %vm859_vm9, %vm860_vm10  ;;  %v5133_v54 = vld [vmem:[#allocation46_spill] sm:$0xff] }
 0x1b4   :  { %2612 = vst [vmem:[#allocation7 + $0x88] sm:$0xff] %v2548_v24  ;;  %v2489_v45 = vmul.f32 %v5130_v35, %v883_v43  ;;  %v857_v62 = vmul.f32 %v2853_v7, %v856_v55  ;;  %v848_v49 = vand.u32 2147483647, %v4148_v5  ;;  %v1526_v58 = vadd.s32 200, %v3475_v33 }
 0x1b5   :  { %v2855_v53 = vpop.eup %2854  ;;  %v2361_v1 = vand.u32 16777215, %v2297_v39  ;;  %v2040_v57 = vshrl.u32 %v1976_v2, 15  ;;  %v1783_v59 = vxor.u32 %v3505_v30, %v1716_v11  ;;  %2856 = vrcp.f32 %v4165_v38 }
 0x1b6   :  { %v858_v9 = vadd.f32 %v2853_v7, %v857_v62  ;;  %v840_v10 = vmul.f32 %v2855_v53, %v4148_v5  ;;  %vm844_vm11 = vweird.f32 %v4148_v5  ;;  %v850_v6 = vand.u32 2147483648, %v4148_v5 }
 0x1b7   :  { %vm2425_vm12 = vcmp.ge.s32.totalorder %v2361_v1, 1677722  ;;  %v2104_v18 = vxor.u32 %v2040_v57, %v1976_v2  ;;  %v1847_v63 = vshrl.u32 %v1783_v59, 16  ;;  %v1657_v37 = vmul.u32 128, %v1526_v58  ;;  %v4205_v57 = vpop.xlane.xlu0 %457 }
 0x1b8   :  { %v2553_v0 = vsel %vm2425_vm12, %v2489_v45, 0.0  ;;  %v862_v46 = vsel %vm861_vm13, %v2853_v7, %v858_v9  ;;  %v841_v31 = vsub.f32 1.0, %v840_v10  ;;  %vm4179_vm14 = vcmp.eq.f32.partialorder %v848_v49, 8.507059e+37 }
 0x1b9   :  { %2617 = vst [vmem:[#allocation7 + $0xb0] sm:$0xff] %v2553_v0  ;;  %v2168_v36 = vmul.u32 2221713035, %v2104_v18  ;;  %v867_v41 = vsel %vm4161_vm6, %v866_v47, %v862_v46  ;;  %v1911_v56 = vxor.u32 %v1847_v63, %v1783_v59  ;;  %v1721_v48 = vadd.s32 %v1657_v37, %v3494_v3  ;;  %v4194_v47 = vpop.xlane.xlu1 %459 }
 0x1ba   :  { %v868_v27 = vmul.f32 1.1111112, %v867_v41  ;;  %v842_v12 = vmul.f32 %v2855_v53, %v841_v31  ;;  %vm845_vm15 = vweird.f32 %v2855_v53  ;;  %v851_v19 = vor.u32 1.1754944e-38, %v850_v6 }
 0x1bb   :  { %v2857_v4 = vpop.eup %2856  ;;  %v2232_v15 = vshrl.u32 %v2168_v36, 16  ;;  %v1975_v7 = vmul.u32 2146121005, %v1911_v56  ;;  %v1788_v51 = vxor.u32 %v3505_v30, %v1721_v48  ;;  %v1525_v50 = vadd.s32 192, %v3475_v33  ;;  %vm846_vm0 = vmor %vm844_vm11, %vm845_vm15 }
 0x1bc   :  { %v843_v8 = vadd.f32 %v2855_v53, %v842_v12  ;;  %v915_v60 = vmul.f32 %v2857_v4, %v4165_v38  ;;  %v923_v43 = vand.u32 2147483647, %v4165_v38  ;;  %v925_v21 = vand.u32 2147483648, %v4165_v38 }
 0x1bd   :  { %v2296_v29 = vxor.u32 %v2232_v15, %v2168_v36  ;;  %v2488_v20 = vmul.f32 %v5133_v54, %v868_v27  ;;  %v2039_v28 = vshrl.u32 %v1975_v7, 15  ;;  %v1852_v55 = vshrl.u32 %v1788_v51, 16  ;;  %v5136_v27 = vld [vmem:[#allocation47_spill] sm:$0xff] }
 0x1be   :  { %v847_v24 = vsel %vm846_vm0, %v2855_v53, %v843_v8  ;;  %v916_v39 = vsub.f32 1.0, %v915_v60  ;;  %vm920_vm1 = vweird.f32 %v2857_v4  ;;  %v1656_v2 = vmul.u32 128, %v1525_v50 }
 0x1bf   :  { %v2360_v11 = vand.u32 16777215, %v2296_v29  ;;  %v2103_v35 = vxor.u32 %v2039_v28, %v1975_v7  ;;  %v852_v45 = vsel %vm4179_vm14, %v851_v19, %v847_v24  ;;  %v1916_v62 = vxor.u32 %v1852_v55, %v1788_v51 }
 0x1c0   :  { %v917_v49 = vmul.f32 %v2857_v4, %v916_v39  ;;  %vm4198_vm2 = vcmp.eq.f32.partialorder %v923_v43, 8.507059e+37  ;;  %v1720_v5 = vadd.s32 %v1656_v2, %v3494_v3  ;;  %2858 = vrcp.f32 %v4194_v47  ;;  %v5139_v2 = vld [vmem:[#allocation48_spill] sm:$0xff] }
 0x1c1   :  { %vm2424_vm3 = vcmp.ge.s32.totalorder %v2360_v11, 1677722  ;;  %v2167_v53 = vmul.u32 2221713035, %v2103_v35  ;;  %v1980_v1 = vmul.u32 2146121005, %v1916_v62  ;;  %vm919_vm4 = vweird.f32 %v4165_v38  ;;  %v4226_v62 = vpop.xlane.xlu2 %467 }
 0x1c2   :  { %v2552_v59 = vsel %vm2424_vm3, %v2488_v20, 0.0  ;;  %v853_v9 = vmul.f32 1.1111112, %v852_v45  ;;  %v918_v10 = vadd.f32 %v2857_v4, %v917_v49  ;;  %v1787_v6 = vxor.u32 %v3505_v30, %v1720_v5  ;;  %vm921_vm5 = vmor %vm919_vm4, %vm920_vm1 }
 0x1c3   :  { %2616 = vst [vmem:[#allocation7 + $0xa8] sm:$0xff] %v2552_v59  ;;  %v2231_v18 = vshrl.u32 %v2167_v53, 16  ;;  %v2044_v63 = vshrl.u32 %v1980_v1, 15  ;;  %v926_v37 = vor.u32 1.1754944e-38, %v925_v21  ;;  %v908_v0 = vand.u32 2147483647, %v4194_v47 }
 0x1c4   :  { %v922_v46 = vsel %vm921_vm5, %v2857_v4, %v918_v10  ;;  %v1851_v31 = vshrl.u32 %v1787_v6, 16  ;;  %v1524_v14 = vadd.s32 184, %v3475_v33  ;;  %2860 = vrcp.f32 %v4205_v57 }
 0x1c5   :  { %v2295_v38 = vxor.u32 %v2231_v18, %v2167_v53  ;;  %v2108_v36 = vxor.u32 %v2044_v63, %v1980_v1  ;;  %v927_v41 = vsel %vm4198_vm2, %v926_v37, %v922_v46  ;;  %v910_v56 = vand.u32 2147483648, %v4194_v47 }
 0x1c6   :  { %v2859_v48 = vpop.eup %2858  ;;  %v2487_v12 = vmul.f32 %v5136_v27, %v853_v9  ;;  %v1915_v19 = vxor.u32 %v1851_v31, %v1787_v6  ;;  %v1655_v15 = vmul.u32 128, %v1524_v14  ;;  %v928_v4 = vmul.f32 1.1111112, %v927_v41 }
 0x1c7   :  { %v2359_v7 = vand.u32 16777215, %v2295_v38  ;;  %v2172_v51 = vmul.u32 2221713035, %v2108_v36  ;;  %v900_v50 = vmul.f32 %v2859_v48, %v4194_v47  ;;  %vm904_vm7 = vweird.f32 %v4194_v47 }
 0x1c8   :  { %v1979_v8 = vmul.u32 2146121005, %v1915_v19  ;;  %vm4218_vm9 = vcmp.eq.f32.partialorder %v908_v0, 8.507059e+37  ;;  %v1719_v43 = vadd.s32 %v1655_v15, %v3494_v3  ;;  %v911_v54 = vor.u32 1.1754944e-38, %v910_v56  ;;  %v5140_v19 = vld [vmem:[#allocation49_spill] sm:$0xff] }
 0x1c9   :  { %vm2423_vm6 = vcmp.ge.s32.totalorder %v2359_v7, 1677722  ;;  %v2236_v21 = vshrl.u32 %v2172_v51, 16  ;;  %v901_v29 = vsub.f32 1.0, %v900_v50  ;;  %vm905_vm8 = vweird.f32 %v2859_v48 }
 0x1ca   :  { %v2861_v20 = vpop.eup %2860  ;;  %v2551_v28 = vsel %vm2423_vm6, %v2487_v12, 0.0  ;;  %v2043_v55 = vshrl.u32 %v1979_v8, 15  ;;  %v1786_v24 = vxor.u32 %v3505_v30, %v1719_v43  ;;  %v2492_v11 = vmul.f32 %v5139_v2, %v928_v4  ;;  %vm906_vm10 = vmor %vm904_vm7, %vm905_vm8  ;;  %v4243_v4 = vpop.xlane.xlu1 %465 }
 0x1cb   :  { %2615 = vst [vmem:[#allocation7 + $0xa0] sm:$0xff] %v2551_v28  ;;  %v2300_v39 = vxor.u32 %v2236_v21, %v2172_v51  ;;  %v902_v35 = vmul.f32 %v2859_v48, %v901_v29  ;;  %v885_v45 = vmul.f32 %v2861_v20, %v4205_v57  ;;  %v893_v5 = vand.u32 2147483647, %v4205_v57 }
 0x1cc   :  { %v2107_v49 = vxor.u32 %v2043_v55, %v1979_v8  ;;  %v1850_v58 = vshrl.u32 %v1786_v24, 16  ;;  %v895_v53 = vand.u32 2147483648, %v4205_v57  ;;  %v1529_v10 = vadd.s32 224, %v3475_v33 }
 0x1cd   :  { %v2364_v1 = vand.u32 16777215, %v2300_v39  ;;  %v903_v59 = vadd.f32 %v2859_v48, %v902_v35  ;;  %v886_v9 = vsub.f32 1.0, %v885_v45  ;;  %vm890_vm11 = vweird.f32 %v2861_v20 }
 0x1ce   :  { %v2171_v6 = vmul.u32 2221713035, %v2107_v49  ;;  %v1914_v18 = vxor.u32 %v1850_v58, %v1786_v24  ;;  %2862 = vrcp.f32 %v4226_v62  ;;  %v1660_v0 = vmul.u32 128, %v1529_v10 }
 0x1cf   :  { %vm2428_vm12 = vcmp.ge.s32.totalorder %v2364_v1, 1677722  ;;  %v907_v63 = vsel %vm906_vm10, %v2859_v48, %v903_v59  ;;  %v887_v37 = vmul.f32 %v2861_v20, %v886_v9  ;;  %vm889_vm13 = vweird.f32 %v4205_v57 }
 0x1d0   :  { %v2556_v46 = vsel %vm2428_vm12, %v2492_v11, 0.0  ;;  %v2235_v31 = vshrl.u32 %v2171_v6, 16  ;;  %v912_v14 = vsel %vm4218_vm9, %v911_v54, %v907_v63  ;;  %v1978_v38 = vmul.u32 2146121005, %v1914_v18  ;;  %vm891_vm14 = vmor %vm889_vm13, %vm890_vm11  ;;  %v4250_v11 = vpop.xlane.xlu0 %463 }
 0x1d1   :  { %2620 = vst [vmem:[#allocation7 + $0xc8] sm:$0xff] %v2556_v46  ;;  %v913_v36 = vmul.f32 1.1111112, %v912_v14  ;;  %v888_v41 = vadd.f32 %v2861_v20, %v887_v37  ;;  %v1724_v47 = vadd.s32 %v1660_v0, %v3494_v3  ;;  %v896_v48 = vor.u32 1.1754944e-38, %v895_v53 }
 0x1d2   :  { %v2299_v56 = vxor.u32 %v2235_v31, %v2171_v6  ;;  %v2042_v27 = vshrl.u32 %v1978_v38, 15  ;;  %v1528_v12 = vadd.s32 216, %v3475_v33  ;;  %vm894_vm15 = vcmp.eq.f32.partialorder %v893_v5, 8.507059e+37  ;;  %v5143_v6 = vld [vmem:[#allocation50_spill] sm:$0xff] }
 0x1d3   :  { %v2491_v15 = vmul.f32 %v5140_v19, %v913_v36  ;;  %v892_v7 = vsel %vm891_vm14, %v2861_v20, %v888_v41  ;;  %v1791_v51 = vxor.u32 %v3505_v30, %v1724_v47  ;;  %vm964_vm0 = vweird.f32 %v4226_v62 }
 0x1d4   :  { %v2863_v50 = vpop.eup %2862  ;;  %v2363_v8 = vand.u32 16777215, %v2299_v56  ;;  %v2106_v57 = vxor.u32 %v2042_v27, %v1978_v38  ;;  %v897_v60 = vsel %vm894_vm15, %v896_v48, %v892_v7  ;;  %v968_v29 = vand.u32 2147483647, %v4226_v62 }
 0x1d5   :  { %v1855_v43 = vshrl.u32 %v1791_v51, 16  ;;  %v960_v21 = vmul.f32 %v2863_v50, %v4226_v62  ;;  %v970_v54 = vand.u32 2147483648, %v4226_v62  ;;  %v1659_v28 = vmul.u32 128, %v1528_v12 }
 0x1d6   :  { %vm2427_vm1 = vcmp.ge.s32.totalorder %v2363_v8, 1677722  ;;  %v2170_v20 = vmul.u32 2221713035, %v2106_v57  ;;  %2864 = vrcp.f32 %v4243_v4  ;;  %v898_v24 = vmul.f32 1.1111112, %v897_v60 }
 0x1d7   :  { %v2555_v55 = vsel %vm2427_vm1, %v2491_v15, 0.0  ;;  %v1919_v39 = vxor.u32 %v1855_v43, %v1791_v51  ;;  %v961_v2 = vsub.f32 1.0, %v960_v21  ;;  %vm965_vm2 = vweird.f32 %v2863_v50 }
 0x1d8   :  { %2619 = vst [vmem:[#allocation7 + $0xc0] sm:$0xff] %v2555_v55  ;;  %v2234_v35 = vshrl.u32 %v2170_v20, 16  ;;  %v1723_v45 = vadd.s32 %v1659_v28, %v3494_v3  ;;  %v953_v49 = vand.u32 2147483647, %v4243_v4  ;;  %v955_v53 = vand.u32 2147483648, %v4243_v4  ;;  %vm966_vm4 = vmor %vm964_vm0, %vm965_vm2 }
 0x1d9   :  { %v1983_v58 = vmul.u32 2146121005, %v1919_v39  ;;  %v962_v5 = vmul.f32 %v2863_v50, %v961_v2  ;;  %v1527_v1 = vadd.s32 208, %v3475_v33  ;;  %vm4256_vm3 = vcmp.eq.f32.partialorder %v968_v29, 8.507059e+37 }
 0x1da   :  { %v2298_v59 = vxor.u32 %v2234_v35, %v2170_v20  ;;  %v1790_v10 = vxor.u32 %v3505_v30, %v1723_v45  ;;  %2866 = vrcp.f32 %v4250_v11  ;;  %v2490_v18 = vmul.f32 %v5143_v6, %v898_v24  ;;  %v5146_v20 = vld [vmem:[#allocation51_spill] sm:$0xff] }
 0x1db   :  { %v2047_v63 = vshrl.u32 %v1983_v58, 15  ;;  %v963_v37 = vadd.f32 %v2863_v50, %v962_v5  ;;  %v1658_v0 = vmul.u32 128, %v1527_v1  ;;  %v971_v14 = vor.u32 1.1754944e-38, %v970_v54  ;;  %v4279_v54 = vpop.xlane.xlu2 %473 }
 0x1dc   :  { %v2865_v46 = vpop.eup %2864  ;;  %v2362_v31 = vand.u32 16777215, %v2298_v59  ;;  %v1854_v38 = vshrl.u32 %v1790_v10, 16  ;;  %vm949_vm5 = vweird.f32 %v4243_v4  ;;  %vm4268_vm7 = vcmp.eq.f32.partialorder %v953_v49, 8.507059e+37 }
 0x1dd   :  { %v2111_v36 = vxor.u32 %v2047_v63, %v1983_v58  ;;  %v967_v41 = vsel %vm966_vm4, %v2863_v50, %v963_v37  ;;  %v945_v47 = vmul.f32 %v2865_v46, %v4243_v4  ;;  %v956_v27 = vor.u32 1.1754944e-38, %v955_v53 }
 0x1de   :  { %vm2426_vm9 = vcmp.ge.s32.totalorder %v2362_v31, 1677722  ;;  %v972_v48 = vsel %vm4256_vm3, %v971_v14, %v967_v41  ;;  %v1918_v12 = vxor.u32 %v1854_v38, %v1790_v10  ;;  %v1722_v62 = vadd.s32 %v1658_v0, %v3494_v3 }
 0x1df   :  { %v2554_v19 = vsel %vm2426_vm9, %v2490_v18, 0.0  ;;  %v2175_v15 = vmul.u32 2221713035, %v2111_v36  ;;  %v973_v7 = vmul.f32 1.1111112, %v972_v48  ;;  %v946_v51 = vsub.f32 1.0, %v945_v47 }
 0x1e0   :  { %v2867_v8 = vpop.eup %2866  ;;  %2618 = vst [vmem:[#allocation7 + $0xb8] sm:$0xff] %v2554_v19  ;;  %v1982_v50 = vmul.u32 2146121005, %v1918_v12  ;;  %v1789_v57 = vxor.u32 %v3505_v30, %v1722_v62  ;;  %vm934_vm6 = vweird.f32 %v4250_v11  ;;  %v938_v60 = vand.u32 2147483647, %v4250_v11  ;;  %v5149_v36 = vld [vmem:[#allocation52_spill] sm:$0xff] }
 0x1e1   :  { %v2239_v43 = vshrl.u32 %v2175_v15, 16  ;;  %v947_v21 = vmul.f32 %v2865_v46, %v946_v51  ;;  %vm950_vm8 = vweird.f32 %v2865_v46  ;;  %v930_v29 = vmul.f32 %v2867_v8, %v4250_v11 }
 0x1e2   :  { %v2495_v28 = vmul.f32 %v5146_v20, %v973_v7  ;;  %v2046_v55 = vshrl.u32 %v1982_v50, 15  ;;  %v1853_v24 = vshrl.u32 %v1789_v57, 16  ;;  %v940_v39 = vand.u32 2147483648, %v4250_v11  ;;  %vm951_vm10 = vmor %vm949_vm5, %vm950_vm8  ;;  %v4303_v7 = vpop.xlane.xlu1 %471 }
 0x1e3   :  { %v2303_v2 = vxor.u32 %v2239_v43, %v2175_v15  ;;  %v948_v35 = vadd.f32 %v2865_v46, %v947_v21  ;;  %v931_v45 = vsub.f32 1.0, %v930_v29  ;;  %v1532_v49 = vadd.s32 248, %v3475_v33 }
 0x1e4   :  { %v2110_v58 = vxor.u32 %v2046_v55, %v1982_v50  ;;  %v1917_v5 = vxor.u32 %v1853_v24, %v1789_v57  ;;  %vm935_vm11 = vweird.f32 %v2867_v8  ;;  %2868 = vrcp.f32 %v4279_v54  ;;  %v4314_v24 = vpop.xlane.xlu0 %469 }
 0x1e5   :  { %v2367_v53 = vand.u32 16777215, %v2303_v2  ;;  %v952_v1 = vsel %vm951_vm10, %v2865_v46, %v948_v35  ;;  %v932_v59 = vmul.f32 %v2867_v8, %v931_v45  ;;  %v1663_v9 = vmul.u32 128, %v1532_v49  ;;  %vm936_vm14 = vmor %vm934_vm6, %vm935_vm11 }
 0x1e6   :  { %v2174_v10 = vmul.u32 2221713035, %v2110_v58  ;;  %v957_v6 = vsel %vm4268_vm7, %v956_v27, %v952_v1  ;;  %v1981_v18 = vmul.u32 2146121005, %v1917_v5  ;;  %vm4289_vm12 = vcmp.eq.f32.partialorder %v938_v60, 8.507059e+37  ;;  %v5152_v58 = vld [vmem:[#allocation53_spill] sm:$0xff] }
 0x1e7   :  { %vm2431_vm13 = vcmp.ge.s32.totalorder %v2367_v53, 1677722  ;;  %v958_v4 = vmul.f32 1.1111112, %v957_v6  ;;  %v933_v37 = vadd.f32 %v2867_v8, %v932_v59  ;;  %v1727_v0 = vadd.s32 %v1663_v9, %v3494_v3 }
 0x1e8   :  { %v2559_v31 = vsel %vm2431_vm13, %v2495_v28, 0.0  ;;  %v2238_v14 = vshrl.u32 %v2174_v10, 16  ;;  %v2045_v38 = vshrl.u32 %v1981_v18, 15  ;;  %v941_v46 = vor.u32 1.1754944e-38, %v940_v39 }
 0x1e9   :  { %2623 = vst [vmem:[#allocation7 + $0xe0] sm:$0xff] %v2559_v31  ;;  %v2494_v41 = vmul.f32 %v5149_v36, %v958_v4  ;;  %v937_v47 = vsel %vm936_vm14, %v2867_v8, %v933_v37  ;;  %v1794_v56 = vxor.u32 %v3505_v30, %v1727_v0  ;;  %v1013_v27 = vand.u32 2147483647, %v4279_v54 }
 0x1ea   :  { %v2869_v48 = vpop.eup %2868  ;;  %v2302_v12 = vxor.u32 %v2238_v14, %v2174_v10  ;;  %v2109_v62 = vxor.u32 %v2045_v38, %v1981_v18  ;;  %v942_v19 = vsel %vm4289_vm12, %v941_v46, %v937_v47  ;;  %v1531_v15 = vadd.s32 240, %v3475_v33 }
 0x1eb   :  { %v943_v11 = vmul.f32 1.1111112, %v942_v19  ;;  %v1858_v51 = vshrl.u32 %v1794_v56, 16  ;;  %v1005_v50 = vmul.f32 %v2869_v48, %v4279_v54  ;;  %v1015_v8 = vand.u32 2147483648, %v4279_v54 }
 0x1ec   :  { %v2366_v57 = vand.u32 16777215, %v2302_v12  ;;  %v2173_v60 = vmul.u32 2221713035, %v2109_v62  ;;  %vm1009_vm15 = vweird.f32 %v4279_v54  ;;  %v1662_v43 = vmul.u32 128, %v1531_v15 }
 0x1ed   :  { %v1922_v21 = vxor.u32 %v1858_v51, %v1794_v56  ;;  %v1006_v29 = vsub.f32 1.0, %v1005_v50  ;;  %vm4308_vm0 = vcmp.eq.f32.partialorder %v1013_v27, 8.507059e+37  ;;  %2870 = vrcp.f32 %v4303_v7 }
 0x1ee   :  { %vm2430_vm1 = vcmp.ge.s32.totalorder %v2366_v57, 1677722  ;;  %v2237_v28 = vshrl.u32 %v2173_v60, 16  ;;  %vm1010_vm2 = vweird.f32 %v2869_v48  ;;  %v1726_v55 = vadd.s32 %v1662_v43, %v3494_v3 }
 0x1ef   :  { %v2558_v39 = vsel %vm2430_vm1, %v2494_v41, 0.0  ;;  %v1986_v2 = vmul.u32 2146121005, %v1922_v21  ;;  %v1007_v35 = vmul.f32 %v2869_v48, %v1006_v29  ;;  %v1016_v45 = vor.u32 1.1754944e-38, %v1015_v8  ;;  %vm1011_vm3 = vmor %vm1009_vm15, %vm1010_vm2  ;;  %v5155_v21 = vld [vmem:[#allocation10_spill] sm:$0xff] }
 0x1f0   :  { %2622 = vst [vmem:[#allocation7 + $0xd8] sm:$0xff] %v2558_v39  ;;  %v2301_v49 = vxor.u32 %v2237_v28, %v2173_v60  ;;  %v2493_v5 = vmul.f32 %v5152_v58, %v943_v11  ;;  %v1793_v53 = vxor.u32 %v3505_v30, %v1726_v55  ;;  %v1530_v1 = vadd.s32 232, %v3475_v33  ;;  %v4339_v60 = vpop.xlane.xlu2 %479 }
 0x1f1   :  { %v2050_v59 = vshrl.u32 %v1986_v2, 15  ;;  %v1008_v9 = vadd.f32 %v2869_v48, %v1007_v35  ;;  %v998_v10 = vand.u32 2147483647, %v4303_v7  ;;  %2872 = vrcp.f32 %v4314_v24 }
 0x1f2   :  { %v2365_v6 = vand.u32 16777215, %v2301_v49  ;;  %v1857_v18 = vshrl.u32 %v1793_v53, 16  ;;  %v1000_v63 = vand.u32 2147483648, %v4303_v7  ;;  %v1661_v4 = vmul.u32 128, %v1530_v1 }
 0x1f3   :  { %v2871_v37 = vpop.eup %2870  ;;  %v2114_v0 = vxor.u32 %v2050_v59, %v1986_v2  ;;  %v1012_v31 = vsel %vm1011_vm3, %v2869_v48, %v1008_v9  ;;  %vm994_vm4 = vweird.f32 %v4303_v7  ;;  %v983_v14 = vand.u32 2147483647, %v4314_v24 }
 0x1f4   :  { %vm2429_vm5 = vcmp.ge.s32.totalorder %v2365_v6, 1677722  ;;  %v1017_v38 = vsel %vm4308_vm0, %v1016_v45, %v1012_v31  ;;  %v1921_v46 = vxor.u32 %v1857_v18, %v1793_v53  ;;  %v990_v36 = vmul.f32 %v2871_v37, %v4303_v7 }
 0x1f5   :  { %v2557_v54 = vsel %vm2429_vm5, %v2493_v5, 0.0  ;;  %v2178_v41 = vmul.u32 2221713035, %v2114_v0  ;;  %v1018_v47 = vmul.f32 1.1111112, %v1017_v38  ;;  %vm4330_vm7 = vcmp.eq.f32.partialorder %v998_v10, 8.507059e+37 }
 0x1f6   :  { %2621 = vst [vmem:[#allocation7 + $0xd0] sm:$0xff] %v2557_v54  ;;  %v1985_v27 = vmul.u32 2146121005, %v1921_v46  ;;  %v991_v48 = vsub.f32 1.0, %v990_v36  ;;  %v1001_v12 = vor.u32 1.1754944e-38, %v1000_v63  ;;  %v1725_v62 = vadd.s32 %v1661_v4, %v3494_v3  ;;  %v4355_v4 = vpop.xlane.xlu1 %477 }
 0x1f7   :  { %v2873_v19 = vpop.eup %2872  ;;  %v2242_v15 = vshrl.u32 %v2178_v41, 16  ;;  %vm995_vm9 = vweird.f32 %v2871_v37  ;;  %vm979_vm6 = vweird.f32 %v4314_v24  ;;  %v1535_v11 = vadd.s32 272, %v3475_v33 }
 0x1f8   :  { %v2049_v51 = vshrl.u32 %v1985_v27, 15  ;;  %v992_v50 = vmul.f32 %v2871_v37, %v991_v48  ;;  %v1792_v8 = vxor.u32 %v3505_v30, %v1725_v62  ;;  %v975_v57 = vmul.f32 %v2873_v19, %v4314_v24  ;;  %vm996_vm10 = vmor %vm994_vm4, %vm995_vm9 }
 0x1f9   :  { %v2306_v43 = vxor.u32 %v2242_v15, %v2178_v41  ;;  %v2498_v29 = vmul.f32 %v5155_v21, %v1018_v47  ;;  %vm4342_vm8 = vcmp.eq.f32.partialorder %v983_v14, 8.507059e+37  ;;  %v1666_v28 = vmul.u32 128, %v1535_v11  ;;  %v5158_v47 = vld [vmem:[#allocation11_spill] sm:$0xff]  ;;  %v4372_v21 = vpop.xlane.xlu0 %475 }
 0x1fa   :  { %v2113_v55 = vxor.u32 %v2049_v51, %v1985_v27  ;;  %v993_v39 = vadd.f32 %v2871_v37, %v992_v50  ;;  %v1856_v2 = vshrl.u32 %v1792_v8, 16  ;;  %v976_v35 = vsub.f32 1.0, %v975_v57 }
 0x1fb   :  { %v2370_v45 = vand.u32 16777215, %v2306_v43  ;;  %v985_v49 = vand.u32 2147483648, %v4314_v24  ;;  %v1730_v58 = vadd.s32 %v1666_v28, %v3494_v3  ;;  %2874 = vrcp.f32 %v4339_v60 }
 0x1fc   :  { %v2177_v5 = vmul.u32 2221713035, %v2113_v55  ;;  %v997_v53 = vsel %vm996_vm10, %v2871_v37, %v993_v39  ;;  %v1920_v1 = vxor.u32 %v1856_v2, %v1792_v8  ;;  %v977_v59 = vmul.f32 %v2873_v19, %v976_v35 }
 0x1fd   :  { %vm2434_vm11 = vcmp.ge.s32.totalorder %v2370_v45, 1677722  ;;  %v1002_v9 = vsel %vm4330_vm7, %v1001_v12, %v997_v53  ;;  %vm980_vm12 = vweird.f32 %v2873_v19  ;;  %v1797_v10 = vxor.u32 %v3505_v30, %v1730_v58  ;;  %v5161_v53 = vld [vmem:[#allocation12_spill] sm:$0xff] }
 0x1fe   :  { %v2562_v6 = vsel %vm2434_vm11, %v2498_v29, 0.0  ;;  %v2241_v7 = vshrl.u32 %v2177_v5, 16  ;;  %v1003_v18 = vmul.f32 1.1111112, %v1002_v9  ;;  %v1984_v63 = vmul.u32 2146121005, %v1920_v1  ;;  %vm981_vm13 = vmor %vm979_vm6, %vm980_vm12 }
 0x1ff   :  { %2626 = vst [vmem:[#allocation7 + $0xf8] sm:$0xff] %v2562_v6  ;;  %v978_v0 = vadd.f32 %v2873_v19, %v977_v59  ;;  %v986_v31 = vor.u32 1.1754944e-38, %v985_v49  ;;  %v1861_v14 = vshrl.u32 %v1797_v10, 16  ;;  %v1058_v37 = vand.u32 2147483647, %v4339_v60 }
 0x200   :  { %v2305_v38 = vxor.u32 %v2241_v7, %v2177_v5  ;;  %v2048_v46 = vshrl.u32 %v1984_v63, 15  ;;  %vm1054_vm14 = vweird.f32 %v4339_v60  ;;  %v1060_v36 = vand.u32 2147483648, %v4339_v60 }
 0x201   :  { %v1534_v54 = vadd.s32 264, %v3475_v33  ;;  %v2875_v41 = vpop.eup %2874  ;;  %v2497_v56 = vmul.f32 %v5158_v47, %v1003_v18  ;;  %v982_v27 = vsel %vm981_vm13, %v2873_v19, %v978_v0  ;;  %v1925_v48 = vxor.u32 %v1861_v14, %v1797_v10 }
 0x202   :  { %2876 = vrcp.f32 %v4355_v4  ;;  %v2369_v12 = vand.u32 16777215, %v2305_v38  ;;  %v2112_v62 = vxor.u32 %v2048_v46, %v1984_v63  ;;  %v987_v15 = vsel %vm4342_vm8, %v986_v31, %v982_v27 }
 0x203   :  { %v1050_v24 = vmul.f32 %v2875_v41, %v4339_v60  ;;  %v988_v11 = vmul.f32 1.1111112, %v987_v15  ;;  %v1989_v51 = vmul.u32 2146121005, %v1925_v48  ;;  %vm4368_vm15 = vcmp.eq.f32.partialorder %v1058_v37, 8.507059e+37 }
 0x204   :  { %v1665_v8 = vmul.u32 128, %v1534_v54  ;;  %vm2433_vm0 = vcmp.ge.s32.totalorder %v2369_v12, 1677722  ;;  %v2176_v57 = vmul.u32 2221713035, %v2112_v62  ;;  %v1061_v43 = vor.u32 1.1754944e-38, %v1060_v36 }
 0x205   :  { %v1051_v19 = vsub.f32 1.0, %v1050_v24  ;;  %v2561_v29 = vsel %vm2433_vm0, %v2497_v56, 0.0  ;;  %v2053_v28 = vshrl.u32 %v1989_v51, 15  ;;  %vm1055_vm1 = vweird.f32 %v2875_v41  ;;  %v5164_v12 = vld [vmem:[#allocation15_spill] sm:$0xff] }
 0x206   :  { %v1729_v20 = vadd.s32 %v1665_v8, %v3494_v3  ;;  %2625 = vst [vmem:[#allocation7 + $0xf0] sm:$0xff] %v2561_v29  ;;  %v2240_v55 = vshrl.u32 %v2176_v57, 16  ;;  %vm1039_vm2 = vweird.f32 %v4355_v4  ;;  %v1043_v2 = vand.u32 2147483647, %v4355_v4  ;;  %vm1056_vm3 = vmor %vm1054_vm14, %vm1055_vm1 }
 0x207   :  { %v1052_v39 = vmul.f32 %v2875_v41, %v1051_v19  ;;  %v2117_v45 = vxor.u32 %v2053_v28, %v1989_v51  ;;  %v1533_v58 = vadd.s32 256, %v3475_v33  ;;  %2878 = vrcp.f32 %v4372_v21  ;;  %v4402_v28 = vpop.xlane.xlu2 %485 }
 0x208   :  { %v2877_v35 = vpop.eup %2876  ;;  %v1796_v49 = vxor.u32 %v3505_v30, %v1729_v20  ;;  %v2304_v5 = vxor.u32 %v2240_v55, %v2176_v57  ;;  %v2496_v1 = vmul.f32 %v5161_v53, %v988_v11  ;;  %v1045_v7 = vand.u32 2147483648, %v4355_v4 }
 0x209   :  { %v1053_v59 = vadd.f32 %v2875_v41, %v1052_v39  ;;  %v1035_v9 = vmul.f32 %v2877_v35, %v4355_v4  ;;  %v2181_v10 = vmul.u32 2221713035, %v2117_v45  ;;  %vm1040_vm4 = vweird.f32 %v2877_v35 }
 0x20a   :  { %v1860_v6 = vshrl.u32 %v1796_v49, 16  ;;  %v2368_v18 = vand.u32 16777215, %v2304_v5  ;;  %v1664_v31 = vmul.u32 128, %v1533_v58  ;;  %vm4388_vm5 = vcmp.eq.f32.partialorder %v1043_v2, 8.507059e+37  ;;  %vm1041_vm9 = vmor %vm1039_vm2, %vm1040_vm4  ;;  %v4412_v5 = vpop.xlane.xlu1 %483 }
 0x20b   :  { %v1057_v63 = vsel %vm1056_vm3, %v2875_v41, %v1053_v59  ;;  %v1036_v0 = vsub.f32 1.0, %v1035_v9  ;;  %v2245_v14 = vshrl.u32 %v2181_v10, 16  ;;  %v1046_v48 = vor.u32 1.1754944e-38, %v1045_v7 }
 0x20c   :  { %v1062_v37 = vsel %vm4368_vm15, %v1061_v43, %v1057_v63  ;;  %v1924_v38 = vxor.u32 %v1860_v6, %v1796_v49  ;;  %vm2432_vm7 = vcmp.ge.s32.totalorder %v2368_v18, 1677722  ;;  %v1728_v54 = vadd.s32 %v1664_v31, %v3494_v3 }
 0x20d   :  { %v1063_v60 = vmul.f32 1.1111112, %v1062_v37  ;;  %v1037_v36 = vmul.f32 %v2877_v35, %v1036_v0  ;;  %v2879_v47 = vpop.eup %2878  ;;  %v2560_v56 = vsel %vm2432_vm7, %v2496_v1, 0.0  ;;  %v2309_v27 = vxor.u32 %v2245_v14, %v2181_v10 }
 0x20e   :  { %v1988_v41 = vmul.u32 2146121005, %v1924_v38  ;;  %2624 = vst [vmem:[#allocation7 + $0xe8] sm:$0xff] %v2560_v56  ;;  %v1795_v24 = vxor.u32 %v3505_v30, %v1728_v54  ;;  %v1020_v11 = vmul.f32 %v2879_v47, %v4372_v21  ;;  %vm1024_vm6 = vweird.f32 %v4372_v21 }
 0x20f   :  { %v2501_v62 = vmul.f32 %v5164_v12, %v1063_v60  ;;  %v1038_v15 = vadd.f32 %v2877_v35, %v1037_v36  ;;  %v2373_v51 = vand.u32 16777215, %v2309_v27  ;;  %v1028_v8 = vand.u32 2147483647, %v4372_v21 }
 0x210   :  { %v2052_v50 = vshrl.u32 %v1988_v41, 15  ;;  %v1859_v19 = vshrl.u32 %v1795_v24, 16  ;;  %v1021_v43 = vsub.f32 1.0, %v1020_v11  ;;  %v1030_v29 = vand.u32 2147483648, %v4372_v21  ;;  %v5167_v21 = vld [vmem:[#allocation16_spill] sm:$0xff] }
 0x211   :  { %v1042_v57 = vsel %vm1041_vm9, %v2877_v35, %v1038_v15  ;;  %vm2437_vm8 = vcmp.ge.s32.totalorder %v2373_v51, 1677722  ;;  %v1538_v39 = vadd.s32 296, %v3475_v33  ;;  %vm1025_vm10 = vweird.f32 %v2879_v47 }
 0x212   :  { %v2116_v20 = vxor.u32 %v2052_v50, %v1988_v41  ;;  %v1047_v55 = vsel %vm4388_vm5, %v1046_v48, %v1042_v57  ;;  %v2565_v4 = vsel %vm2437_vm8, %v2501_v62, 0.0  ;;  %v1923_v2 = vxor.u32 %v1859_v19, %v1795_v24  ;;  %vm1026_vm12 = vmor %vm1024_vm6, %vm1025_vm10  ;;  %v5170_v57 = vld [vmem:[#allocation13_spill] sm:$0xff] }
 0x213   :  { %v1022_v45 = vmul.f32 %v2879_v47, %v1021_v43  ;;  %2629 = vst [vmem:[#allocation7 + $0x110] sm:$0xff] %v2565_v4  ;;  %vm4407_vm11 = vcmp.eq.f32.partialorder %v1028_v8, 8.507059e+37  ;;  %v1669_v58 = vmul.u32 128, %v1538_v39  ;;  %2880 = vrcp.f32 %v4402_v28 }
 0x214   :  { %v2180_v49 = vmul.u32 2221713035, %v2116_v20  ;;  %v1048_v53 = vmul.f32 1.1111112, %v1047_v55  ;;  %v1987_v1 = vmul.u32 2146121005, %v1923_v2  ;;  %2882 = vrcp.f32 %v4412_v5 }
 0x215   :  { %v1023_v59 = vadd.f32 %v2879_v47, %v1022_v45  ;;  %v1031_v9 = vor.u32 1.1754944e-38, %v1030_v29  ;;  %v1733_v6 = vadd.s32 %v1669_v58, %v3494_v3  ;;  %v1103_v7 = vand.u32 2147483647, %v4402_v28  ;;  %v4435_v29 = vpop.xlane.xlu0 %481 }
 0x216   :  { %v2244_v10 = vshrl.u32 %v2180_v49, 16  ;;  %v1105_v18 = vand.u32 2147483648, %v4402_v28  ;;  %v2051_v63 = vshrl.u32 %v1987_v1, 15  ;;  %v1537_v31 = vadd.s32 288, %v3475_v33 }
 0x217   :  { %v1027_v0 = vsel %vm1026_vm12, %v2879_v47, %v1023_v59  ;;  %v1800_v38 = vxor.u32 %v3505_v30, %v1733_v6  ;;  %v2500_v46 = vmul.f32 %v5167_v21, %v1048_v53  ;;  %vm1099_vm13 = vweird.f32 %v4402_v28 }
 0x218   :  { %v2308_v14 = vxor.u32 %v2244_v10, %v2180_v49  ;;  %v1032_v37 = vsel %vm4407_vm11, %v1031_v9, %v1027_v0  ;;  %v2115_v60 = vxor.u32 %v2051_v63, %v1987_v1  ;;  %v1668_v54 = vmul.u32 128, %v1537_v31 }
 0x219   :  { %v1033_v36 = vmul.f32 1.1111112, %v1032_v37  ;;  %v2881_v56 = vpop.eup %2880  ;;  %v1864_v41 = vshrl.u32 %v1800_v38, 16  ;;  %vm4427_vm14 = vcmp.eq.f32.partialorder %v1103_v7, 8.507059e+37  ;;  %v1106_v62 = vor.u32 1.1754944e-38, %v1105_v18 }
 0x21a   :  { %v2372_v27 = vand.u32 16777215, %v2308_v14  ;;  %v2179_v47 = vmul.u32 2221713035, %v2115_v60  ;;  %v1095_v48 = vmul.f32 %v2881_v56, %v4402_v28  ;;  %v1732_v24 = vadd.s32 %v1668_v54, %v3494_v3  ;;  %v2883_v51 = vpop.eup %2882 }
 0x21b   :  { %v1928_v15 = vxor.u32 %v1864_v41, %v1800_v38  ;;  %v1088_v11 = vand.u32 2147483647, %v4412_v5  ;;  %v2499_v19 = vmul.f32 %v5170_v57, %v1033_v36  ;;  %vm1084_vm0 = vweird.f32 %v4412_v5 }
 0x21c   :  { %vm2436_vm15 = vcmp.ge.s32.totalorder %v2372_v27, 1677722  ;;  %v2243_v8 = vshrl.u32 %v2179_v47, 16  ;;  %v1096_v43 = vsub.f32 1.0, %v1095_v48  ;;  %vm1100_vm1 = vweird.f32 %v2881_v56 }
 0x21d   :  { %v2564_v50 = vsel %vm2436_vm15, %v2500_v46, 0.0  ;;  %v1992_v20 = vmul.u32 2146121005, %v1928_v15  ;;  %v1799_v55 = vxor.u32 %v3505_v30, %v1732_v24  ;;  %v1080_v39 = vmul.f32 %v2883_v51, %v4412_v5  ;;  %vm1101_vm3 = vmor %vm1099_vm13, %vm1100_vm1  ;;  %v4461_v15 = vpop.xlane.xlu2 %491 }
 0x21e   :  { %2628 = vst [vmem:[#allocation7 + $0x108] sm:$0xff] %v2564_v50  ;;  %v2307_v4 = vxor.u32 %v2243_v8, %v2179_v47  ;;  %v1097_v2 = vmul.f32 %v2881_v56, %v1096_v43  ;;  %v1090_v45 = vand.u32 2147483648, %v4412_v5  ;;  %v1536_v49 = vadd.s32 280, %v3475_v33 }
 0x21f   :  { %v2056_v35 = vshrl.u32 %v1992_v20, 15  ;;  %v1863_v58 = vshrl.u32 %v1799_v55, 16  ;;  %v1081_v53 = vsub.f32 1.0, %v1080_v39  ;;  %2884 = vrcp.f32 %v4435_v29 }
 0x220   :  { %v2371_v1 = vand.u32 16777215, %v2307_v4  ;;  %v1098_v59 = vadd.f32 %v2881_v56, %v1097_v2  ;;  %vm4442_vm2 = vcmp.eq.f32.partialorder %v1088_v11, 8.507059e+37  ;;  %v1667_v10 = vmul.u32 128, %v1536_v49  ;;  %v5173_v11 = vld [vmem:[#allocation18_spill] sm:$0xff] }
 0x221   :  { %v2120_v6 = vxor.u32 %v2056_v35, %v1992_v20  ;;  %v1927_v7 = vxor.u32 %v1863_v58, %v1799_v55  ;;  %v1082_v18 = vmul.f32 %v2883_v51, %v1081_v53  ;;  %vm1085_vm4 = vweird.f32 %v2883_v51  ;;  %v5176_v35 = vld [vmem:[#allocation54_spill] sm:$0xff] }
 0x222   :  { %vm2435_vm5 = vcmp.ge.s32.totalorder %v2371_v1, 1677722  ;;  %v1102_v63 = vsel %vm1101_vm3, %v2881_v56, %v1098_v59  ;;  %v1091_v0 = vor.u32 1.1754944e-38, %v1090_v45  ;;  %v1731_v31 = vadd.s32 %v1667_v10, %v3494_v3  ;;  %vm1086_vm9 = vmor %vm1084_vm0, %vm1085_vm4  ;;  %v4473_v1 = vpop.xlane.xlu1 %489 }
 0x223   :  { %v2563_v14 = vsel %vm2435_vm5, %v2499_v19, 0.0  ;;  %v2184_v37 = vmul.u32 2221713035, %v2120_v6  ;;  %v1107_v38 = vsel %vm4427_vm14, %v1106_v62, %v1102_v63  ;;  %v1991_v21 = vmul.u32 2146121005, %v1927_v7 }
 0x224   :  { %2627 = vst [vmem:[#allocation7 + $0x100] sm:$0xff] %v2563_v14  ;;  %v1108_v46 = vmul.f32 1.1111112, %v1107_v38  ;;  %v1083_v60 = vadd.f32 %v2883_v51, %v1082_v18  ;;  %v1798_v28 = vxor.u32 %v3505_v30, %v1731_v31  ;;  %vm1069_vm7 = vweird.f32 %v4435_v29 }
 0x225   :  { %v2885_v36 = vpop.eup %2884  ;;  %v2248_v54 = vshrl.u32 %v2184_v37, 16  ;;  %v2055_v27 = vshrl.u32 %v1991_v21, 15  ;;  %v1073_v56 = vand.u32 2147483647, %v4435_v29  ;;  %v1541_v41 = vadd.s32 320, %v3475_v33 }
 0x226   :  { %v1087_v47 = vsel %vm1086_vm9, %v2883_v51, %v1083_v60  ;;  %v1862_v48 = vshrl.u32 %v1798_v28, 16  ;;  %v1065_v12 = vmul.f32 %v2885_v36, %v4435_v29  ;;  %v1075_v62 = vand.u32 2147483648, %v4435_v29 }
 0x227   :  { %v2312_v24 = vxor.u32 %v2248_v54, %v2184_v37  ;;  %v2504_v50 = vmul.f32 %v5173_v11, %v1108_v46  ;;  %v2119_v8 = vxor.u32 %v2055_v27, %v1991_v21  ;;  %v1092_v5 = vsel %vm4442_vm2, %v1091_v0, %v1087_v47  ;;  %v4491_v47 = vpop.xlane.xlu0 %487 }
 0x228   :  { %v1093_v57 = vmul.f32 1.1111112, %v1092_v5  ;;  %v1926_v19 = vxor.u32 %v1862_v48, %v1798_v28  ;;  %v1066_v43 = vsub.f32 1.0, %v1065_v12  ;;  %v1672_v20 = vmul.u32 128, %v1541_v41 }
 0x229   :  { %v2376_v55 = vand.u32 16777215, %v2312_v24  ;;  %v2183_v51 = vmul.u32 2221713035, %v2119_v8  ;;  %vm4466_vm6 = vcmp.eq.f32.partialorder %v1073_v56, 8.507059e+37  ;;  %2886 = vrcp.f32 %v4461_v15  ;;  %v5182_v56 = vld [vmem:[#allocation20_spill] sm:$0xff] }
 0x22a   :  { %v1990_v4 = vmul.u32 2146121005, %v1926_v19  ;;  %v1067_v2 = vmul.f32 %v2885_v36, %v1066_v43  ;;  %vm1070_vm8 = vweird.f32 %v2885_v36  ;;  %v1736_v45 = vadd.s32 %v1672_v20, %v3494_v3  ;;  %v5179_v20 = vld [vmem:[#allocation14_spill] sm:$0xff] }
 0x22b   :  { %vm2440_vm10 = vcmp.ge.s32.totalorder %v2376_v55, 1677722  ;;  %v2247_v49 = vshrl.u32 %v2183_v51, 16  ;;  %v2503_v58 = vmul.f32 %v5176_v35, %v1093_v57  ;;  %v1076_v53 = vor.u32 1.1754944e-38, %v1075_v62  ;;  %vm1071_vm11 = vmor %vm1069_vm7, %vm1070_vm8 }
 0x22c   :  { %v2568_v59 = vsel %vm2440_vm10, %v2504_v50, 0.0  ;;  %v2054_v9 = vshrl.u32 %v1990_v4, 15  ;;  %v1068_v10 = vadd.f32 %v2885_v36, %v1067_v2  ;;  %v1803_v6 = vxor.u32 %v3505_v30, %v1736_v45 }
 0x22d   :  { %2632 = vst [vmem:[#allocation7 + $0x128] sm:$0xff] %v2568_v59  ;;  %v2311_v7 = vxor.u32 %v2247_v49, %v2183_v51  ;;  %v1148_v18 = vand.u32 2147483647, %v4461_v15  ;;  %v1150_v63 = vand.u32 2147483648, %v4461_v15  ;;  %v1540_v0 = vadd.s32 312, %v3475_v33 }
 0x22e   :  { %v2118_v31 = vxor.u32 %v2054_v9, %v1990_v4  ;;  %v1072_v14 = vsel %vm1071_vm11, %v2885_v36, %v1068_v10  ;;  %v1867_v37 = vshrl.u32 %v1803_v6, 16  ;;  %2888 = vrcp.f32 %v4473_v1 }
 0x22f   :  { %v2887_v38 = vpop.eup %2886  ;;  %v2375_v21 = vand.u32 16777215, %v2311_v7  ;;  %v1077_v46 = vsel %vm4466_vm6, %v1076_v53, %v1072_v14  ;;  %v1671_v60 = vmul.u32 128, %v1540_v0  ;;  %vm1144_vm12 = vweird.f32 %v4461_v15 }
 0x230   :  { %v2182_v28 = vmul.u32 2221713035, %v2118_v31  ;;  %v1931_v29 = vxor.u32 %v1867_v37, %v1803_v6  ;;  %v1140_v54 = vmul.f32 %v2887_v38, %v4461_v15  ;;  %v1078_v27 = vmul.f32 1.1111112, %v1077_v46 }
 0x231   :  { %vm2439_vm13 = vcmp.ge.s32.totalorder %v2375_v21, 1677722  ;;  %vm4486_vm14 = vcmp.eq.f32.partialorder %v1148_v18, 8.507059e+37  ;;  %v1151_v36 = vor.u32 1.1754944e-38, %v1150_v63  ;;  %v1735_v41 = vadd.s32 %v1671_v60, %v3494_v3 }
 0x232   :  { %v2567_v48 = vsel %vm2439_vm13, %v2503_v58, 0.0  ;;  %v2246_v12 = vshrl.u32 %v2182_v28, 16  ;;  %v1995_v62 = vmul.u32 2146121005, %v1931_v29  ;;  %v1133_v24 = vand.u32 2147483647, %v4473_v1 }
 0x233   :  { %2631 = vst [vmem:[#allocation7 + $0x120] sm:$0xff] %v2567_v48  ;;  %v1141_v11 = vsub.f32 1.0, %v1140_v54  ;;  %vm1145_vm15 = vweird.f32 %v2887_v38  ;;  %v1802_v50 = vxor.u32 %v3505_v30, %v1735_v41  ;;  %vm1129_vm0 = vweird.f32 %v4473_v1 }
 0x234   :  { %v1135_v8 = vand.u32 2147483648, %v4473_v1  ;;  %v2889_v5 = vpop.eup %2888  ;;  %v2310_v57 = vxor.u32 %v2246_v12, %v2182_v28  ;;  %v2059_v19 = vshrl.u32 %v1995_v62, 15  ;;  %v1539_v43 = vadd.s32 304, %v3475_v33  ;;  %vm1146_vm4 = vmor %vm1144_vm12, %vm1145_vm15 }
 0x235   :  { %2890 = vrcp.f32 %v4491_v47  ;;  %v2502_v55 = vmul.f32 %v5179_v20, %v1078_v27  ;;  %v1142_v51 = vmul.f32 %v2887_v38, %v1141_v11  ;;  %v1866_v39 = vshrl.u32 %v1802_v50, 16  ;;  %v4530_v20 = vpop.xlane.xlu1 %495 }
 0x236   :  { %v1125_v4 = vmul.f32 %v2889_v5, %v4473_v1  ;;  %v2374_v2 = vand.u32 16777215, %v2310_v57  ;;  %v2123_v45 = vxor.u32 %v2059_v19, %v1995_v62  ;;  %vm4501_vm1 = vcmp.eq.f32.partialorder %v1133_v24, 8.507059e+37  ;;  %v4520_v62 = vpop.xlane.xlu2 %497  ;;  %v4555_v1 = vpop.xlane.xlu0 %493 }
 0x237   :  { %v1670_v35 = vmul.u32 128, %v1539_v43  ;;  %v1143_v58 = vadd.f32 %v2887_v38, %v1142_v51  ;;  %v1930_v53 = vxor.u32 %v1866_v39, %v1802_v50  ;;  %vm1130_vm2 = vweird.f32 %v2889_v5 }
 0x238   :  { %v1126_v59 = vsub.f32 1.0, %v1125_v4  ;;  %vm2438_vm3 = vcmp.ge.s32.totalorder %v2374_v2, 1677722  ;;  %v2187_v9 = vmul.u32 2221713035, %v2123_v45  ;;  %v1136_v10 = vor.u32 1.1754944e-38, %v1135_v8  ;;  %vm1131_vm5 = vmor %vm1129_vm0, %vm1130_vm2 }
 0x239   :  { %v1734_v6 = vadd.s32 %v1670_v35, %v3494_v3  ;;  %v2566_v7 = vsel %vm2438_vm3, %v2502_v55, 0.0  ;;  %v1147_v18 = vsel %vm1146_vm4, %v2887_v38, %v1143_v58  ;;  %v1994_v63 = vmul.u32 2146121005, %v1930_v53 }
 0x23a   :  { %v1127_v0 = vmul.f32 %v2889_v5, %v1126_v59  ;;  %2630 = vst [vmem:[#allocation7 + $0x118] sm:$0xff] %v2566_v7  ;;  %v2251_v14 = vshrl.u32 %v2187_v9, 16  ;;  %v1152_v37 = vsel %vm4486_vm14, %v1151_v36, %v1147_v18  ;;  %v1118_v46 = vand.u32 2147483647, %v4491_v47 }
 0x23b   :  { %v2891_v31 = vpop.eup %2890  ;;  %v1801_v21 = vxor.u32 %v3505_v30, %v1734_v6  ;;  %v1153_v60 = vmul.f32 1.1111112, %v1152_v37  ;;  %v2058_v15 = vshrl.u32 %v1994_v63, 15  ;;  %vm1114_vm7 = vweird.f32 %v4491_v47 }
 0x23c   :  { %v1128_v28 = vadd.f32 %v2889_v5, %v1127_v0  ;;  %v1110_v29 = vmul.f32 %v2891_v31, %v4491_v47  ;;  %v2315_v54 = vxor.u32 %v2251_v14, %v2187_v9  ;;  %v1120_v27 = vand.u32 2147483648, %v4491_v47  ;;  %v5185_v9 = vld [vmem:[#allocation21_spill] sm:$0xff] }
 0x23d   :  { %v1865_v38 = vshrl.u32 %v1801_v21, 16  ;;  %v2507_v36 = vmul.f32 %v5182_v56, %v1153_v60  ;;  %v2122_v41 = vxor.u32 %v2058_v15, %v1994_v63  ;;  %vm4524_vm9 = vcmp.eq.f32.partialorder %v1118_v46, 8.507059e+37 }
 0x23e   :  { %v1132_v48 = vsel %vm1131_vm5, %v2889_v5, %v1128_v28  ;;  %v1111_v12 = vsub.f32 1.0, %v1110_v29  ;;  %v2379_v24 = vand.u32 16777215, %v2315_v54  ;;  %vm1115_vm6 = vweird.f32 %v2891_v31 }
 0x23f   :  { %v1137_v11 = vsel %vm4501_vm1, %v1136_v10, %v1132_v48  ;;  %v1929_v50 = vxor.u32 %v1865_v38, %v1801_v21  ;;  %v2186_v8 = vmul.u32 2221713035, %v2122_v41  ;;  %v1544_v19 = vadd.s32 344, %v3475_v33  ;;  %vm1116_vm10 = vmor %vm1114_vm7, %vm1115_vm6 }
 0x240   :  { %v1112_v57 = vmul.f32 %v2891_v31, %v1111_v12  ;;  %vm2443_vm8 = vcmp.ge.s32.totalorder %v2379_v24, 1677722  ;;  %v1138_v43 = vmul.f32 1.1111112, %v1137_v11  ;;  %2892 = vrcp.f32 %v4520_v62 }
 0x241   :  { %v1993_v5 = vmul.u32 2146121005, %v1929_v50  ;;  %v2571_v55 = vsel %vm2443_vm8, %v2507_v36, 0.0  ;;  %v2250_v51 = vshrl.u32 %v2186_v8, 16  ;;  %v1121_v4 = vor.u32 1.1754944e-38, %v1120_v27  ;;  %v5188_v27 = vld [vmem:[#allocation17_spill] sm:$0xff] }
 0x242   :  { %v1113_v39 = vadd.f32 %v2891_v31, %v1112_v57  ;;  %2635 = vst [vmem:[#allocation7 + $0x140] sm:$0xff] %v2571_v55  ;;  %v1675_v45 = vmul.u32 128, %v1544_v19  ;;  %v1193_v49 = vand.u32 2147483647, %v4520_v62  ;;  %v1195_v35 = vand.u32 2147483648, %v4520_v62 }
 0x243   :  { %v2057_v2 = vshrl.u32 %v1993_v5, 15  ;;  %v2314_v58 = vxor.u32 %v2250_v51, %v2186_v8  ;;  %v1543_v59 = vadd.s32 336, %v3475_v33  ;;  %2894 = vrcp.f32 %v4530_v20 }
 0x244   :  { %v1117_v53 = vsel %vm1116_vm10, %v2891_v31, %v1113_v39  ;;  %v2506_v10 = vmul.f32 %v5185_v9, %v1138_v43  ;;  %v1739_v47 = vadd.s32 %v1675_v45, %v3494_v3  ;;  %vm1189_vm11 = vweird.f32 %v4520_v62 }
 0x245   :  { %v2121_v6 = vxor.u32 %v2057_v2, %v1993_v5  ;;  %v1122_v7 = vsel %vm4524_vm9, %v1121_v4, %v1117_v53  ;;  %v2378_v18 = vand.u32 16777215, %v2314_v58  ;;  %v1674_v0 = vmul.u32 128, %v1543_v59 }
 0x246   :  { %v1123_v63 = vmul.f32 1.1111112, %v1122_v7  ;;  %v2893_v14 = vpop.eup %2892  ;;  %v1806_v21 = vxor.u32 %v3505_v30, %v1739_v47  ;;  %vm4545_vm13 = vcmp.eq.f32.partialorder %v1193_v49, 8.507059e+37  ;;  %v1196_v60 = vor.u32 1.1754944e-38, %v1195_v35 }
 0x247   :  { %v2185_v37 = vmul.u32 2221713035, %v2121_v6  ;;  %vm2442_vm12 = vcmp.ge.s32.totalorder %v2378_v18, 1677722  ;;  %v1185_v31 = vmul.f32 %v2893_v14, %v4520_v62  ;;  %v1738_v54 = vadd.s32 %v1674_v0, %v3494_v3 }
 0x248   :  { %v2570_v15 = vsel %vm2442_vm12, %v2506_v10, 0.0  ;;  %v1870_v29 = vshrl.u32 %v1806_v21, 16  ;;  %v2505_v56 = vmul.f32 %v5188_v27, %v1123_v63  ;;  %v1178_v41 = vand.u32 2147483647, %v4530_v20 }
 0x249   :  { %v2249_v28 = vshrl.u32 %v2185_v37, 16  ;;  %v2895_v38 = vpop.eup %2894  ;;  %2634 = vst [vmem:[#allocation7 + $0x138] sm:$0xff] %v2570_v15  ;;  %v1186_v36 = vsub.f32 1.0, %v1185_v31  ;;  %v1542_v48 = vadd.s32 328, %v3475_v33  ;;  %v1805_v11 = vxor.u32 %v3505_v30, %v1738_v54 }
 0x24a   :  { %v1934_v24 = vxor.u32 %v1870_v29, %v1806_v21  ;;  %v1170_v50 = vmul.f32 %v2895_v38, %v4530_v20  ;;  %vm1190_vm14 = vweird.f32 %v2893_v14  ;;  %v1180_v57 = vand.u32 2147483648, %v4530_v20 }
 0x24b   :  { %v2313_v12 = vxor.u32 %v2249_v28, %v2185_v37  ;;  %v1187_v8 = vmul.f32 %v2893_v14, %v1186_v36  ;;  %v1673_v19 = vmul.u32 128, %v1542_v48  ;;  %v1869_v55 = vshrl.u32 %v1805_v11, 16  ;;  %vm1191_vm1 = vmor %vm1189_vm11, %vm1190_vm14 }
 0x24c   :  { %v1998_v5 = vmul.u32 2146121005, %v1934_v24  ;;  %v1171_v51 = vsub.f32 1.0, %v1170_v50  ;;  %vm1175_vm15 = vweird.f32 %v2895_v38  ;;  %2896 = vrcp.f32 %v4555_v1 }
 0x24d   :  { %v2377_v43 = vand.u32 16777215, %v2313_v12  ;;  %v1188_v39 = vadd.f32 %v2893_v14, %v1187_v8  ;;  %v1737_v4 = vadd.s32 %v1673_v19, %v3494_v3  ;;  %v1933_v45 = vxor.u32 %v1869_v55, %v1805_v11  ;;  %v5191_v12 = vld [vmem:[#allocation23_spill] sm:$0xff] }
 0x24e   :  { %v2062_v2 = vshrl.u32 %v1998_v5, 15  ;;  %v1172_v49 = vmul.f32 %v2895_v38, %v1171_v51  ;;  %vm1174_vm2 = vweird.f32 %v4530_v20  ;;  %vm1179_vm4 = vcmp.eq.f32.partialorder %v1178_v41, 8.507059e+37 }
 0x24f   :  { %vm2441_vm0 = vcmp.ge.s32.totalorder %v2377_v43, 1677722  ;;  %v1192_v58 = vsel %vm1191_vm1, %v2893_v14, %v1188_v39  ;;  %v1804_v53 = vxor.u32 %v3505_v30, %v1737_v4  ;;  %v1997_v10 = vmul.u32 2146121005, %v1933_v45  ;;  %vm1176_vm3 = vmor %vm1174_vm2, %vm1175_vm15  ;;  %v4569_v14 = vpop.xlane.xlu2 %503 }
 0x250   :  { %v2569_v35 = vsel %vm2441_vm0, %v2505_v56, 0.0  ;;  %v2126_v59 = vxor.u32 %v2062_v2, %v1998_v5  ;;  %v1197_v9 = vsel %vm4545_vm13, %v1196_v60, %v1192_v58  ;;  %v1173_v6 = vadd.f32 %v2895_v38, %v1172_v49  ;;  %v5192_v5 = vld [vmem:[#allocation55_spill] sm:$0xff] }
 0x251   :  { %2633 = vst [vmem:[#allocation7 + $0x130] sm:$0xff] %v2569_v35  ;;  %v1181_v62 = vor.u32 1.1754944e-38, %v1180_v57  ;;  %v1868_v7 = vshrl.u32 %v1804_v53, 16  ;;  %v1163_v47 = vand.u32 2147483647, %v4555_v1  ;;  %v2061_v63 = vshrl.u32 %v1997_v10, 15 }
 0x252   :  { %v2190_v18 = vmul.u32 2221713035, %v2126_v59  ;;  %v1177_v0 = vsel %vm1176_vm3, %v2895_v38, %v1173_v6  ;;  %v1547_v20 = vadd.s32 368, %v3475_v33  ;;  %v2897_v37 = vpop.eup %2896  ;;  %v1198_v21 = vmul.f32 1.1111112, %v1197_v9  ;;  %v4587_v9 = vpop.xlane.xlu1 %501 }
 0x253   :  { %v1182_v31 = vsel %vm1179_vm4, %v1181_v62, %v1177_v0  ;;  %v1932_v46 = vxor.u32 %v1868_v7, %v1804_v53  ;;  %v1165_v60 = vand.u32 2147483648, %v4555_v1  ;;  %v2125_v28 = vxor.u32 %v2061_v63, %v1997_v10 }
 0x254   :  { %v2254_v15 = vshrl.u32 %v2190_v18, 16  ;;  %v1155_v29 = vmul.f32 %v2897_v37, %v4555_v1  ;;  %vm1159_vm5 = vweird.f32 %v4555_v1  ;;  %v1183_v54 = vmul.f32 1.1111112, %v1182_v31 }
 0x255   :  { %v1996_v27 = vmul.u32 2146121005, %v1932_v46  ;;  %v1678_v56 = vmul.u32 128, %v1547_v20  ;;  %2898 = vrcp.f32 %v4569_v14  ;;  %v2189_v36 = vmul.u32 2221713035, %v2125_v28 }
 0x256   :  { %v2318_v38 = vxor.u32 %v2254_v15, %v2190_v18  ;;  %v1156_v41 = vsub.f32 1.0, %v1155_v29  ;;  %vm4575_vm7 = vcmp.eq.f32.partialorder %v1163_v47, 8.507059e+37  ;;  %v2510_v24 = vmul.f32 %v5191_v12, %v1198_v21  ;;  %v5193_v15 = vld [vmem:[#allocation19_spill] sm:$0xff] }
 0x257   :  { %v2060_v11 = vshrl.u32 %v1996_v27, 15  ;;  %v1166_v50 = vor.u32 1.1754944e-38, %v1165_v60  ;;  %v1742_v8 = vadd.s32 %v1678_v56, %v3494_v3  ;;  %v2253_v19 = vshrl.u32 %v2189_v36, 16  ;;  %v4596_v60 = vpop.xlane.xlu0 %499 }
 0x258   :  { %v2382_v57 = vand.u32 16777215, %v2318_v38  ;;  %v1157_v43 = vmul.f32 %v2897_v37, %v1156_v41  ;;  %vm1160_vm9 = vweird.f32 %v2897_v37  ;;  %v2509_v55 = vmul.f32 %v5192_v5, %v1183_v54 }
 0x259   :  { %v2124_v51 = vxor.u32 %v2060_v11, %v1996_v27  ;;  %v1809_v39 = vxor.u32 %v3505_v30, %v1742_v8  ;;  %v1546_v4 = vadd.s32 360, %v3475_v33  ;;  %v2317_v2 = vxor.u32 %v2253_v19, %v2189_v36  ;;  %vm1161_vm10 = vmor %vm1159_vm5, %vm1160_vm9 }
 0x25a   :  { %vm2446_vm6 = vcmp.ge.s32.totalorder %v2382_v57, 1677722  ;;  %v1158_v45 = vadd.f32 %v2897_v37, %v1157_v43  ;;  %vm1234_vm8 = vweird.f32 %v4569_v14  ;;  %v1240_v7 = vand.u32 2147483648, %v4569_v14 }
 0x25b   :  { %v2899_v49 = vpop.eup %2898  ;;  %v2574_v35 = vsel %vm2446_vm6, %v2510_v24, 0.0  ;;  %v2188_v58 = vmul.u32 2221713035, %v2124_v51  ;;  %v1873_v53 = vshrl.u32 %v1809_v39, 16  ;;  %v1677_v59 = vmul.u32 128, %v1546_v4 }
 0x25c   :  { %2638 = vst [vmem:[#allocation7 + $0x158] sm:$0xff] %v2574_v35  ;;  %v2381_v10 = vand.u32 16777215, %v2317_v2  ;;  %v1162_v6 = vsel %vm1161_vm10, %v2897_v37, %v1158_v45  ;;  %v1230_v62 = vmul.f32 %v2899_v49, %v4569_v14  ;;  %2900 = vrcp.f32 %v4587_v9 }
 0x25d   :  { %v2252_v47 = vshrl.u32 %v2188_v58, 16  ;;  %v1167_v18 = vsel %vm4575_vm7, %v1166_v50, %v1162_v6  ;;  %v1937_v63 = vxor.u32 %v1873_v53, %v1809_v39  ;;  %v1741_v0 = vadd.s32 %v1677_v59, %v3494_v3 }
 0x25e   :  { %vm2445_vm11 = vcmp.ge.s32.totalorder %v2381_v10, 1677722  ;;  %v1168_v1 = vmul.f32 1.1111112, %v1167_v18  ;;  %v1231_v20 = vsub.f32 1.0, %v1230_v62  ;;  %vm1235_vm12 = vweird.f32 %v2899_v49 }
 0x25f   :  { %v2573_v21 = vsel %vm2445_vm11, %v2509_v55, 0.0  ;;  %v2316_v31 = vxor.u32 %v2252_v47, %v2188_v58  ;;  %v2001_v46 = vmul.u32 2146121005, %v1937_v63  ;;  %v1808_v37 = vxor.u32 %v3505_v30, %v1741_v0  ;;  %vm1236_vm14 = vmor %vm1234_vm8, %vm1235_vm12  ;;  %v4617_v63 = vpop.xlane.xlu2 %509  ;;  %v5196_v0 = vld [vmem:[#allocation25_spill] sm:$0xff] }
 0x260   :  { %2637 = vst [vmem:[#allocation7 + $0x150] sm:$0xff] %v2573_v21  ;;  %v2508_v28 = vmul.f32 %v5193_v15, %v1168_v1  ;;  %v1232_v29 = vmul.f32 %v2899_v49, %v1231_v20  ;;  %v1238_v54 = vand.u32 2147483647, %v4569_v14  ;;  %v1241_v38 = vor.u32 1.1754944e-38, %v1240_v7 }
 0x261   :  { %v2380_v27 = vand.u32 16777215, %v2316_v31  ;;  %v2065_v56 = vshrl.u32 %v2001_v46, 15  ;;  %v1872_v36 = vshrl.u32 %v1808_v37, 16  ;;  %v1223_v48 = vand.u32 2147483647, %v4587_v9 }
 0x262   :  { %v1233_v41 = vadd.f32 %v2899_v49, %v1232_v29  ;;  %v1545_v12 = vadd.s32 352, %v3475_v33  ;;  %2902 = vrcp.f32 %v4596_v60  ;;  %v1225_v50 = vand.u32 2147483648, %v4587_v9  ;;  %v2901_v8 = vpop.eup %2900 }
 0x263   :  { %vm2444_vm13 = vcmp.ge.s32.totalorder %v2380_v27, 1677722  ;;  %v2129_v24 = vxor.u32 %v2065_v56, %v2001_v46  ;;  %v1936_v11 = vxor.u32 %v1872_v36, %v1808_v37  ;;  %vm1239_vm15 = vcmp.eq.f32.partialorder %v1238_v54, 8.507059e+37 }
 0x264   :  { %v2572_v57 = vsel %vm2444_vm13, %v2508_v28, 0.0  ;;  %v1237_v19 = vsel %vm1236_vm14, %v2899_v49, %v1233_v41  ;;  %v1676_v43 = vmul.u32 128, %v1545_v12  ;;  %v1215_v39 = vmul.f32 %v2901_v8, %v4587_v9 }
 0x265   :  { %2636 = vst [vmem:[#allocation7 + $0x148] sm:$0xff] %v2572_v57  ;;  %v2193_v5 = vmul.u32 2221713035, %v2129_v24  ;;  %v1242_v55 = vsel %vm1239_vm15, %v1241_v38, %v1237_v19  ;;  %v2000_v51 = vmul.u32 2146121005, %v1936_v11  ;;  %vm1219_vm0 = vweird.f32 %v4587_v9 }
 0x266   :  { %v1243_v4 = vmul.f32 1.1111112, %v1242_v55  ;;  %vm4608_vm1 = vcmp.eq.f32.partialorder %v1223_v48, 8.507059e+37  ;;  %v1740_v2 = vadd.s32 %v1676_v43, %v3494_v3  ;;  %v1216_v49 = vsub.f32 1.0, %v1215_v39 }
 0x267   :  { %v2257_v45 = vshrl.u32 %v2193_v5, 16  ;;  %v2064_v35 = vshrl.u32 %v2000_v51, 15  ;;  %v1226_v58 = vor.u32 1.1754944e-38, %v1225_v50  ;;  %vm1220_vm2 = vweird.f32 %v2901_v8 }
 0x268   :  { %v2903_v53 = vpop.eup %2902  ;;  %v1807_v59 = vxor.u32 %v3505_v30, %v1740_v2  ;;  %v1208_v10 = vand.u32 2147483647, %v4596_v60  ;;  %v1550_v6 = vadd.s32 392, %v3475_v33  ;;  %v1217_v47 = vmul.f32 %v2901_v8, %v1216_v49  ;;  %vm1221_vm3 = vmor %vm1219_vm0, %vm1220_vm2 }
 0x269   :  { %v2321_v62 = vxor.u32 %v2257_v45, %v2193_v5  ;;  %v2128_v7 = vxor.u32 %v2064_v35, %v2000_v51  ;;  %v1200_v18 = vmul.f32 %v2903_v53, %v4596_v60  ;;  %v2513_v1 = vmul.f32 %v5196_v0, %v1243_v4  ;;  %v5197_v5 = vld [vmem:[#allocation26_spill] sm:$0xff]  ;;  %v4633_v45 = vpop.xlane.xlu1 %507 }
 0x26a   :  { %v1871_v20 = vshrl.u32 %v1807_v59, 16  ;;  %v1210_v21 = vand.u32 2147483648, %v4596_v60  ;;  %v1681_v31 = vmul.u32 128, %v1550_v6  ;;  %v1218_v15 = vadd.f32 %v2901_v8, %v1217_v47 }
 0x26b   :  { %v2385_v46 = vand.u32 16777215, %v2321_v62  ;;  %v2192_v37 = vmul.u32 2221713035, %v2128_v7  ;;  %v1201_v28 = vsub.f32 1.0, %v1200_v18  ;;  %vm1205_vm4 = vweird.f32 %v2903_v53  ;;  %v4638_v62 = vpop.xlane.xlu0 %505 }
 0x26c   :  { %v1935_v29 = vxor.u32 %v1871_v20, %v1807_v59  ;;  %v1745_v54 = vadd.s32 %v1681_v31, %v3494_v3  ;;  %2904 = vrcp.f32 %v4617_v63  ;;  %v1222_v56 = vsel %vm1221_vm3, %v2901_v8, %v1218_v15 }
 0x26d   :  { %vm2449_vm5 = vcmp.ge.s32.totalorder %v2385_v46, 1677722  ;;  %v2256_v27 = vshrl.u32 %v2192_v37, 16  ;;  %v1202_v38 = vmul.f32 %v2903_v53, %v1201_v28  ;;  %v1227_v41 = vsel %vm4608_vm1, %v1226_v58, %v1222_v56  ;;  %v5200_v28 = vld [vmem:[#allocation22_spill] sm:$0xff] }
 0x26e   :  { %v2577_v36 = vsel %vm2449_vm5, %v2513_v1, 0.0  ;;  %v1999_v48 = vmul.u32 2146121005, %v1935_v29  ;;  %v1812_v12 = vxor.u32 %v3505_v30, %v1745_v54  ;;  %v1228_v24 = vmul.f32 1.1111112, %v1227_v41 }
 0x26f   :  { %2641 = vst [vmem:[#allocation7 + $0x170] sm:$0xff] %v2577_v36  ;;  %v2320_v9 = vxor.u32 %v2256_v27, %v2192_v37  ;;  %v1203_v11 = vadd.f32 %v2903_v53, %v1202_v38  ;;  %vm1204_vm7 = vweird.f32 %v4596_v60  ;;  %v1211_v57 = vor.u32 1.1754944e-38, %v1210_v21 }
 0x270   :  { %v2063_v50 = vshrl.u32 %v1999_v48, 15  ;;  %vm1206_vm9 = vmor %vm1204_vm7, %vm1205_vm4  ;;  %v1876_v19 = vshrl.u32 %v1812_v12, 16  ;;  %v1549_v8 = vadd.s32 384, %v3475_v33  ;;  %v2512_v55 = vmul.f32 %v5197_v5, %v1228_v24 }
 0x271   :  { %v2384_v43 = vand.u32 16777215, %v2320_v9  ;;  %v1207_v51 = vsel %vm1206_vm9, %v2903_v53, %v1203_v11  ;;  %vm1209_vm6 = vcmp.eq.f32.partialorder %v1208_v10, 8.507059e+37  ;;  %vm1279_vm10 = vweird.f32 %v4617_v63 }
 0x272   :  { %v2905_v39 = vpop.eup %2904  ;;  %v2127_v4 = vxor.u32 %v2063_v50, %v1999_v48  ;;  %v1212_v14 = vsel %vm1209_vm6, %v1211_v57, %v1207_v51  ;;  %v1940_v2 = vxor.u32 %v1876_v19, %v1812_v12  ;;  %v1283_v35 = vand.u32 2147483647, %v4617_v63 }
 0x273   :  { %vm2448_vm8 = vcmp.ge.s32.totalorder %v2384_v43, 1677722  ;;  %v1275_v60 = vmul.f32 %v2905_v39, %v4617_v63  ;;  %v1680_v6 = vmul.u32 128, %v1549_v8  ;;  %v1213_v53 = vmul.f32 1.1111112, %v1212_v14 }
 0x274   :  { %v2576_v49 = vsel %vm2448_vm8, %v2512_v55, 0.0  ;;  %v2191_v58 = vmul.u32 2221713035, %v2127_v4  ;;  %v2004_v59 = vmul.u32 2146121005, %v1940_v2  ;;  %v1285_v7 = vand.u32 2147483648, %v4617_v63 }
 0x275   :  { %2640 = vst [vmem:[#allocation7 + $0x168] sm:$0xff] %v2576_v49  ;;  %v1276_v10 = vsub.f32 1.0, %v1275_v60  ;;  %2906 = vrcp.f32 %v4633_v45  ;;  %vm1280_vm11 = vweird.f32 %v2905_v39  ;;  %v1744_v0 = vadd.s32 %v1680_v6, %v3494_v3  ;;  %v4668_v60 = vpop.xlane.xlu2 %515 }
 0x276   :  { %v2255_v47 = vshrl.u32 %v2191_v58, 16  ;;  %v2068_v18 = vshrl.u32 %v2004_v59, 15  ;;  %v1270_v20 = vand.u32 2147483648, %v4633_v45  ;;  %v1548_v21 = vadd.s32 376, %v3475_v33  ;;  %vm1281_vm13 = vmor %vm1279_vm10, %vm1280_vm11 }
 0x277   :  { %v1277_v1 = vmul.f32 %v2905_v39, %v1276_v10  ;;  %2908 = vrcp.f32 %v4638_v62  ;;  %vm4646_vm12 = vcmp.eq.f32.partialorder %v1283_v35, 8.507059e+37  ;;  %v1811_v15 = vxor.u32 %v3505_v30, %v1744_v0  ;;  %v5203_v35 = vld [vmem:[#allocation27_spill] sm:$0xff] }
 0x278   :  { %v2319_v31 = vxor.u32 %v2255_v47, %v2191_v58  ;;  %v2132_v46 = vxor.u32 %v2068_v18, %v2004_v59  ;;  %v2511_v29 = vmul.f32 %v5200_v28, %v1213_v53  ;;  %v1268_v27 = vand.u32 2147483647, %v4633_v45 }
 0x279   :  { %v1278_v54 = vadd.f32 %v2905_v39, %v1277_v1  ;;  %v1679_v56 = vmul.u32 128, %v1548_v21  ;;  %v1286_v41 = vor.u32 1.1754944e-38, %v1285_v7  ;;  %v1875_v48 = vshrl.u32 %v1811_v15, 16 }
 0x27a   :  { %v2383_v38 = vand.u32 16777215, %v2319_v31  ;;  %v2196_v36 = vmul.u32 2221713035, %v2132_v46  ;;  %vm1264_vm14 = vweird.f32 %v4633_v45  ;;  %v1271_v24 = vor.u32 1.1754944e-38, %v1270_v20 }
 0x27b   :  { %v2907_v12 = vpop.eup %2906  ;;  %v1282_v9 = vsel %vm1281_vm13, %v2905_v39, %v1278_v54  ;;  %v1743_v11 = vadd.s32 %v1679_v56, %v3494_v3  ;;  %v1939_v19 = vxor.u32 %v1875_v48, %v1811_v15  ;;  %vm4661_vm0 = vcmp.eq.f32.partialorder %v1268_v27, 8.507059e+37 }
 0x27c   :  { %vm2447_vm15 = vcmp.ge.s32.totalorder %v2383_v38, 1677722  ;;  %v2260_v50 = vshrl.u32 %v2196_v36, 16  ;;  %v1287_v57 = vsel %vm4646_vm12, %v1286_v41, %v1282_v9  ;;  %v1260_v63 = vmul.f32 %v2907_v12, %v4633_v45 }
 0x27d   :  { %v2909_v8 = vpop.eup %2908  ;;  %v2575_v43 = vsel %vm2447_vm15, %v2511_v29, 0.0  ;;  %v1288_v5 = vmul.f32 1.1111112, %v1287_v57  ;;  %v1553_v51 = vadd.s32 416, %v3475_v33  ;;  %v2003_v4 = vmul.u32 2146121005, %v1939_v19 }
 0x27e   :  { %2639 = vst [vmem:[#allocation7 + $0x160] sm:$0xff] %v2575_v43  ;;  %v2324_v39 = vxor.u32 %v2260_v50, %v2196_v36  ;;  %v1810_v14 = vxor.u32 %v3505_v30, %v1743_v11  ;;  %v1245_v2 = vmul.f32 %v2909_v8, %v4638_v62  ;;  %v1261_v58 = vsub.f32 1.0, %v1260_v63  ;;  %v4692_v63 = vpop.xlane.xlu1 %513 }
 0x27f   :  { %v2516_v49 = vmul.f32 %v5203_v35, %v1288_v5  ;;  %vm1265_vm1 = vweird.f32 %v2907_v12  ;;  %v1255_v59 = vand.u32 2147483648, %v4638_v62  ;;  %v2067_v53 = vshrl.u32 %v2003_v4, 15 }
 0x280   :  { %v2388_v6 = vand.u32 16777215, %v2324_v39  ;;  %v1874_v10 = vshrl.u32 %v1810_v14, 16  ;;  %v1246_v7 = vsub.f32 1.0, %v1245_v2  ;;  %v1262_v47 = vmul.f32 %v2907_v12, %v1261_v58  ;;  %vm1266_vm4 = vmor %vm1264_vm14, %vm1265_vm1 }
 0x281   :  { %vm1250_vm2 = vweird.f32 %v2909_v8  ;;  %v1684_v18 = vmul.u32 128, %v1553_v51  ;;  %2910 = vrcp.f32 %v4668_v60  ;;  %v2131_v0 = vxor.u32 %v2067_v53, %v2003_v4  ;;  %v5206_v51 = vld [vmem:[#allocation28_spill] sm:$0xff]  ;;  %v4702_v53 = vpop.xlane.xlu0 %511 }
 0x282   :  { %vm2452_vm3 = vcmp.ge.s32.totalorder %v2388_v6, 1677722  ;;  %v1938_v1 = vxor.u32 %v1874_v10, %v1810_v14  ;;  %v1247_v20 = vmul.f32 %v2909_v8, %v1246_v7  ;;  %v1263_v31 = vadd.f32 %v2907_v12, %v1262_v47 }
 0x283   :  { %v2580_v21 = vsel %vm2452_vm3, %v2516_v49, 0.0  ;;  %v1253_v46 = vand.u32 2147483647, %v4638_v62  ;;  %v1748_v37 = vadd.s32 %v1684_v18, %v3494_v3  ;;  %v2195_v15 = vmul.u32 2221713035, %v2131_v0 }
 0x284   :  { %2644 = vst [vmem:[#allocation7 + $0x188] sm:$0xff] %v2580_v21  ;;  %v2002_v28 = vmul.u32 2146121005, %v1938_v1  ;;  %v1248_v29 = vadd.f32 %v2909_v8, %v1247_v20  ;;  %vm1249_vm5 = vweird.f32 %v4638_v62  ;;  %v1267_v54 = vsel %vm1266_vm4, %v2907_v12, %v1263_v31  ;;  %v5209_v31 = vld [vmem:[#allocation24_spill] sm:$0xff] }
 0x285   :  { %vm4680_vm7 = vmor %vm1249_vm5, %vm1250_vm2  ;;  %v1256_v56 = vor.u32 1.1754944e-38, %v1255_v59  ;;  %v1815_v38 = vxor.u32 %v3505_v30, %v1748_v37  ;;  %v1328_v36 = vand.u32 2147483647, %v4668_v60  ;;  %v2259_v41 = vshrl.u32 %v2195_v15, 16 }
 0x286   :  { %v1272_v45 = vsel %vm4661_vm0, %v1271_v24, %v1267_v54  ;;  %v2066_v48 = vshrl.u32 %v2002_v28, 15  ;;  %v1252_v9 = vsel %vm4680_vm7, %v2909_v8, %v1248_v29  ;;  %vm1254_vm9 = vcmp.eq.f32.partialorder %v1253_v46, 8.507059e+37 }
 0x287   :  { %v2911_v62 = vpop.eup %2910  ;;  %v1273_v12 = vmul.f32 1.1111112, %v1272_v45  ;;  %v1879_v11 = vshrl.u32 %v1815_v38, 16  ;;  %v1552_v50 = vadd.s32 408, %v3475_v33  ;;  %v2323_v57 = vxor.u32 %v2259_v41, %v2195_v15 }
 0x288   :  { %v2130_v19 = vxor.u32 %v2066_v48, %v2002_v28  ;;  %v1257_v43 = vsel %vm1254_vm9, %v1256_v56, %v1252_v9  ;;  %v1320_v5 = vmul.f32 %v2911_v62, %v4668_v60  ;;  %vm1324_vm6 = vweird.f32 %v4668_v60 }
 0x289   :  { %v2515_v55 = vmul.f32 %v5206_v51, %v1273_v12  ;;  %v1943_v24 = vxor.u32 %v1879_v11, %v1815_v38  ;;  %v1330_v8 = vand.u32 2147483648, %v4668_v60  ;;  %v2387_v39 = vand.u32 16777215, %v2323_v57 }
 0x28a   :  { %v2194_v4 = vmul.u32 2221713035, %v2130_v19  ;;  %v1321_v14 = vsub.f32 1.0, %v1320_v5  ;;  %vm4697_vm8 = vcmp.eq.f32.partialorder %v1328_v36, 8.507059e+37  ;;  %v1258_v35 = vmul.f32 1.1111112, %v1257_v43 }
 0x28b   :  { %v2007_v49 = vmul.u32 2146121005, %v1943_v24  ;;  %v1683_v58 = vmul.u32 128, %v1552_v50  ;;  %2912 = vrcp.f32 %v4692_v63  ;;  %vm2451_vm10 = vcmp.ge.s32.totalorder %v2387_v39, 1677722 }
 0x28c   :  { %v2258_v59 = vshrl.u32 %v2194_v4, 16  ;;  %v1322_v6 = vmul.f32 %v2911_v62, %v1321_v14  ;;  %vm1325_vm11 = vweird.f32 %v2911_v62  ;;  %v2579_v10 = vsel %vm2451_vm10, %v2515_v55, 0.0 }
 0x28d   :  { %v2071_v7 = vshrl.u32 %v2007_v49, 15  ;;  %v1331_v47 = vor.u32 1.1754944e-38, %v1330_v8  ;;  %v1747_v18 = vadd.s32 %v1683_v58, %v3494_v3  ;;  %2643 = vst [vmem:[#allocation7 + $0x180] sm:$0xff] %v2579_v10  ;;  %v1313_v20 = vand.u32 2147483647, %v4692_v63  ;;  %vm1326_vm12 = vmor %vm1324_vm6, %vm1325_vm11  ;;  %v4726_v8 = vpop.xlane.xlu2 %521 }
 0x28e   :  { %v2322_v0 = vxor.u32 %v2258_v59, %v2194_v4  ;;  %v1323_v1 = vadd.f32 %v2911_v62, %v1322_v6  ;;  %v1551_v21 = vadd.s32 400, %v3475_v33  ;;  %v2514_v46 = vmul.f32 %v5209_v31, %v1258_v35 }
 0x28f   :  { %v2135_v37 = vxor.u32 %v2071_v7, %v2007_v49  ;;  %v1814_v15 = vxor.u32 %v3505_v30, %v1747_v18  ;;  %2914 = vrcp.f32 %v4702_v53  ;;  %v1315_v54 = vand.u32 2147483648, %v4692_v63 }
 0x290   :  { %v2386_v28 = vand.u32 16777215, %v2322_v0  ;;  %v1327_v29 = vsel %vm1326_vm12, %v2911_v62, %v1323_v1  ;;  %v1682_v27 = vmul.u32 128, %v1551_v21  ;;  %vm1309_vm13 = vweird.f32 %v4692_v63 }
 0x291   :  { %v2913_v56 = vpop.eup %2912  ;;  %v2199_v38 = vmul.u32 2221713035, %v2135_v37  ;;  %v1332_v36 = vsel %vm4697_vm8, %v1331_v47, %v1327_v29  ;;  %v1878_v41 = vshrl.u32 %v1814_v15, 16  ;;  %vm4717_vm15 = vcmp.eq.f32.partialorder %v1313_v20, 8.507059e+37  ;;  %v4738_v37 = vpop.xlane.xlu1 %519 }
 0x292   :  { %vm2450_vm14 = vcmp.ge.s32.totalorder %v2386_v28, 1677722  ;;  %v1333_v60 = vmul.f32 1.1111112, %v1332_v36  ;;  %v1305_v45 = vmul.f32 %v2913_v56, %v4692_v63  ;;  %v1746_v11 = vadd.s32 %v1682_v27, %v3494_v3 }
 0x293   :  { %v2578_v9 = vsel %vm2450_vm14, %v2514_v46, 0.0  ;;  %v2263_v62 = vshrl.u32 %v2199_v38, 16  ;;  %v1942_v12 = vxor.u32 %v1878_v41, %v1814_v15  ;;  %v1316_v57 = vor.u32 1.1754944e-38, %v1315_v54 }
 0x294   :  { %2642 = vst [vmem:[#allocation7 + $0x178] sm:$0xff] %v2578_v9  ;;  %v1306_v50 = vsub.f32 1.0, %v1305_v45  ;;  %vm1294_vm0 = vweird.f32 %v4702_v53  ;;  %v1298_v19 = vand.u32 2147483647, %v4702_v53  ;;  %v1813_v55 = vxor.u32 %v3505_v30, %v1746_v11 }
 0x295   :  { %v2915_v43 = vpop.eup %2914  ;;  %v2327_v5 = vxor.u32 %v2263_v62, %v2199_v38  ;;  %v2006_v51 = vmul.u32 2146121005, %v1942_v12  ;;  %v1556_v24 = vadd.s32 440, %v3475_v33  ;;  %v2519_v39 = vmul.f32 %v3611_v23, %v1333_v60 }
 0x296   :  { %v1307_v4 = vmul.f32 %v2913_v56, %v1306_v50  ;;  %vm1310_vm1 = vweird.f32 %v2913_v56  ;;  %v1290_v14 = vmul.f32 %v2915_v43, %v4702_v53  ;;  %v1877_v49 = vshrl.u32 %v1813_v55, 16 }
 0x297   :  { %v2391_v2 = vand.u32 16777215, %v2327_v5  ;;  %v2070_v35 = vshrl.u32 %v2006_v51, 15  ;;  %v1687_v58 = vmul.u32 128, %v1556_v24  ;;  %v1300_v10 = vand.u32 2147483648, %v4702_v53  ;;  %vm1311_vm3 = vmor %vm1309_vm13, %vm1310_vm1 }
 0x298   :  { %v1308_v59 = vadd.f32 %v2913_v56, %v1307_v4  ;;  %v1291_v6 = vsub.f32 1.0, %v1290_v14  ;;  %2916 = vrcp.f32 %v4726_v8  ;;  %v1941_v23 = vxor.u32 %v1877_v49, %v1813_v55 }
 0x299   :  { %vm2455_vm2 = vcmp.ge.s32.totalorder %v2391_v2, 1677722  ;;  %v2134_v7 = vxor.u32 %v2070_v35, %v2006_v51  ;;  %v1751_v47 = vadd.s32 %v1687_v58, %v3494_v3  ;;  %vm1295_vm4 = vweird.f32 %v2915_v43  ;;  %v4756_v58 = vpop.xlane.xlu0 %517 }
 0x29a   :  { %v2583_v18 = vsel %vm2455_vm2, %v2519_v39, 0.0  ;;  %v1312_v0 = vsel %vm1311_vm3, %v2913_v56, %v1308_v59  ;;  %v1292_v1 = vmul.f32 %v2915_v43, %v1291_v6  ;;  %v2005_v31 = vmul.u32 2146121005, %v1941_v23  ;;  %vm1296_vm7 = vmor %vm1294_vm0, %vm1295_vm4 }
 0x29b   :  { %2647 = vst [vmem:[#allocation7 + $0x1a0] sm:$0xff] %v2583_v18  ;;  %v2198_v20 = vmul.u32 2221713035, %v2134_v7  ;;  %v1317_v21 = vsel %vm4717_vm15, %v1316_v57, %v1312_v0  ;;  %v1818_v46 = vxor.u32 %v3505_v30, %v1751_v47  ;;  %vm1299_vm5 = vcmp.eq.f32.partialorder %v1298_v19, 8.507059e+37 }
 0x29c   :  { %v1318_v15 = vmul.f32 1.1111112, %v1317_v21  ;;  %v1293_v63 = vadd.f32 %v2915_v43, %v1292_v1  ;;  %v1301_v28 = vor.u32 1.1754944e-38, %v1300_v10  ;;  %v2069_v54 = vshrl.u32 %v2005_v31, 15 }
 0x29d   :  { %v2262_v29 = vshrl.u32 %v2198_v20, 16  ;;  %v1882_v27 = vshrl.u32 %v1818_v46, 16  ;;  %v1555_v56 = vadd.s32 432, %v3475_v33  ;;  %v1373_v41 = vand.u32 2147483647, %v4726_v8 }
 0x29e   :  { %v2917_v38 = vpop.eup %2916  ;;  %v1297_v36 = vsel %vm1296_vm7, %v2915_v43, %v1293_v63  ;;  %v1375_v60 = vand.u32 2147483648, %v4726_v8  ;;  %2918 = vrcp.f32 %v4738_v37  ;;  %v2133_v48 = vxor.u32 %v2069_v54, %v2005_v31 }
 0x29f   :  { %v2326_v45 = vxor.u32 %v2262_v29, %v2198_v20  ;;  %v1302_v9 = vsel %vm1299_vm5, %v1301_v28, %v1297_v36  ;;  %v1946_v62 = vxor.u32 %v1882_v27, %v1818_v46  ;;  %v2518_v12 = vmul.f32 %v3618_v42, %v1318_v15 }
 0x2a0   :  { %v1303_v11 = vmul.f32 1.1111112, %v1302_v9  ;;  %v1365_v53 = vmul.f32 %v2917_v38, %v4726_v8  ;;  %v1686_v50 = vmul.u32 128, %v1555_v56  ;;  %v2197_v19 = vmul.u32 2221713035, %v2133_v48 }
 0x2a1   :  { %v2390_v57 = vand.u32 16777215, %v2326_v45  ;;  %v2010_v5 = vmul.u32 2146121005, %v1946_v62  ;;  %vm1369_vm9 = vweird.f32 %v4726_v8  ;;  %vm4749_vm6 = vcmp.eq.f32.partialorder %v1373_v41, 8.507059e+37 }
 0x2a2   :  { %v1366_v43 = vsub.f32 1.0, %v1365_v53  ;;  %v1376_v55 = vor.u32 1.1754944e-38, %v1375_v60  ;;  %v1750_v24 = vadd.s32 %v1686_v50, %v3494_v3  ;;  %v2261_v39 = vshrl.u32 %v2197_v19, 16 }
 0x2a3   :  { %vm2454_vm8 = vcmp.ge.s32.totalorder %v2390_v57, 1677722  ;;  %v2074_v42 = vshrl.u32 %v2010_v5, 15  ;;  %vm1370_vm10 = vweird.f32 %v2917_v38  ;;  %v2517_v2 = vmul.f32 %v3583_v52, %v1303_v11 }
 0x2a4   :  { %v2919_v4 = vpop.eup %2918  ;;  %v2582_v14 = vsel %vm2454_vm8, %v2518_v12, 0.0  ;;  %v1367_v35 = vmul.f32 %v2917_v38, %v1366_v43  ;;  %v1817_v49 = vxor.u32 %v3505_v30, %v1750_v24  ;;  %v2325_v59 = vxor.u32 %v2261_v39, %v2197_v19  ;;  %vm1371_vm11 = vmor %vm1369_vm9, %vm1370_vm10  ;;  %v4779_v24 = vpop.xlane.xlu1 %525 }
 0x2a5   :  { %2646 = vst [vmem:[#allocation7 + $0x198] sm:$0xff] %v2582_v14  ;;  %v2138_v6 = vxor.u32 %v2074_v42, %v2010_v5  ;;  %v1350_v10 = vmul.f32 %v2919_v4, %v4738_v37  ;;  %v1358_v7 = vand.u32 2147483647, %v4738_v37  ;;  %v1360_v18 = vand.u32 2147483648, %v4738_v37 }
 0x2a6   :  { %v1368_v23 = vadd.f32 %v2917_v38, %v1367_v35  ;;  %v1881_v47 = vshrl.u32 %v1817_v49, 16  ;;  %v1554_v0 = vadd.s32 424, %v3475_v33  ;;  %v2389_v1 = vand.u32 16777215, %v2325_v59 }
 0x2a7   :  { %v2202_v52 = vmul.u32 2221713035, %v2138_v6  ;;  %v1351_v20 = vsub.f32 1.0, %v1350_v10  ;;  %2920 = vrcp.f32 %v4756_v58  ;;  %vm1355_vm12 = vweird.f32 %v2919_v4 }
 0x2a8   :  { %v1372_v21 = vsel %vm1371_vm11, %v2917_v38, %v1368_v23  ;;  %v1945_v31 = vxor.u32 %v1881_v47, %v1817_v49  ;;  %v1685_v46 = vmul.u32 128, %v1554_v0  ;;  %vm2453_vm13 = vcmp.ge.s32.totalorder %v2389_v1, 1677722 }
 0x2a9   :  { %v2266_v15 = vshrl.u32 %v2202_v52, 16  ;;  %v1377_v63 = vsel %vm4749_vm6, %v1376_v55, %v1372_v21  ;;  %v1352_v28 = vmul.f32 %v2919_v4, %v1351_v20  ;;  %v2581_v29 = vsel %vm2453_vm13, %v2517_v2, 0.0 }
 0x2aa   :  { %v1378_v54 = vmul.f32 1.1111112, %v1377_v63  ;;  %v2009_v27 = vmul.u32 2146121005, %v1945_v31  ;;  %v1749_v56 = vadd.s32 %v1685_v46, %v3494_v3  ;;  %2645 = vst [vmem:[#allocation7 + $0x190] sm:$0xff] %v2581_v29  ;;  %vm1354_vm14 = vweird.f32 %v4738_v37  ;;  %v4775_v37 = vpop.xlane.xlu2 %527 }
 0x2ab   :  { %v2330_v8 = vxor.u32 %v2266_v15, %v2202_v52  ;;  %v1353_v36 = vadd.f32 %v2919_v4, %v1352_v28  ;;  %v1361_v38 = vor.u32 1.1754944e-38, %v1360_v18  ;;  %vm1356_vm15 = vmor %vm1354_vm14, %vm1355_vm12  ;;  %v1559_v48 = vadd.s32 464, %v3475_v33 }
 0x2ac   :  { %v2522_v41 = vmul.f32 %v3626_v61, %v1378_v54  ;;  %v2073_v60 = vshrl.u32 %v2009_v27, 15  ;;  %v1816_v45 = vxor.u32 %v3505_v30, %v1749_v56  ;;  %vm1359_vm0 = vcmp.eq.f32.partialorder %v1358_v7, 8.507059e+37 }
 0x2ad   :  { %v2921_v9 = vpop.eup %2920  ;;  %v2394_v62 = vand.u32 16777215, %v2330_v8  ;;  %v1357_v12 = vsel %vm1356_vm15, %v2919_v4, %v1353_v36  ;;  %vm1339_vm2 = vweird.f32 %v4756_v58  ;;  %v1345_v61 = vand.u32 2147483648, %v4756_v58 }
 0x2ae   :  { %v2137_v11 = vxor.u32 %v2073_v60, %v2009_v27  ;;  %v1362_v53 = vsel %vm1359_vm0, %v1361_v38, %v1357_v12  ;;  %v1880_v50 = vshrl.u32 %v1816_v45, 16  ;;  %v1335_v57 = vmul.f32 %v2921_v9, %v4756_v58 }
 0x2af   :  { %vm2458_vm1 = vcmp.ge.s32.totalorder %v2394_v62, 1677722  ;;  %v1690_v19 = vmul.u32 128, %v1559_v48  ;;  %v1363_v39 = vmul.f32 1.1111112, %v1362_v53  ;;  %2922 = vrcp.f32 %v4775_v37 }
 0x2b0   :  { %v2586_v5 = vsel %vm2458_vm1, %v2522_v41, 0.0  ;;  %v2201_v43 = vmul.u32 2221713035, %v2137_v11  ;;  %v1944_v51 = vxor.u32 %v1880_v50, %v1816_v45  ;;  %v1336_v55 = vsub.f32 1.0, %v1335_v57 }
 0x2b1   :  { %2650 = vst [vmem:[#allocation7 + $0x1b8] sm:$0xff] %v2586_v5  ;;  %v1343_v42 = vand.u32 2147483647, %v4756_v58  ;;  %v1754_v4 = vadd.s32 %v1690_v19, %v3494_v3  ;;  %vm1340_vm3 = vweird.f32 %v2921_v9  ;;  %v1346_v49 = vor.u32 1.1754944e-38, %v1345_v61 }
 0x2b2   :  { %v2265_v14 = vshrl.u32 %v2201_v43, 16  ;;  %v2008_v2 = vmul.u32 2146121005, %v1944_v51  ;;  %v1337_v35 = vmul.f32 %v2921_v9, %v1336_v55  ;;  %v1558_v6 = vadd.s32 456, %v3475_v33  ;;  %vm1341_vm4 = vmor %vm1339_vm2, %vm1340_vm3 }
 0x2b3   :  { %v1821_v59 = vxor.u32 %v3505_v30, %v1754_v4  ;;  %2924 = vrcp.f32 %v4779_v24  ;;  %v1418_v47 = vand.u32 2147483647, %v4775_v37  ;;  %v2521_v18 = vmul.f32 %v3635_v44, %v1363_v39 }
 0x2b4   :  { %v2329_v10 = vxor.u32 %v2265_v14, %v2201_v43  ;;  %v2072_v7 = vshrl.u32 %v2008_v2, 15  ;;  %v1338_v23 = vadd.f32 %v2921_v9, %v1337_v35  ;;  %v1420_v1 = vand.u32 2147483648, %v4775_v37 }
 0x2b5   :  { %v1885_v0 = vshrl.u32 %v1821_v59, 16  ;;  %v1689_v52 = vmul.u32 128, %v1558_v6  ;;  %vm1344_vm5 = vcmp.eq.f32.partialorder %v1343_v42, 8.507059e+37  ;;  %v2923_v46 = vpop.eup %2922  ;;  %vm1414_vm7 = vweird.f32 %v4775_v37 }
 0x2b6   :  { %v2393_v20 = vand.u32 16777215, %v2329_v10  ;;  %v2136_v21 = vxor.u32 %v2072_v7, %v2008_v2  ;;  %v1342_v31 = vsel %vm1341_vm4, %v2921_v9, %v1338_v23  ;;  %v1410_v58 = vmul.f32 %v2923_v46, %v4775_v37  ;;  %v4802_v9 = vpop.xlane.xlu0 %523 }
 0x2b7   :  { %v1347_v15 = vsel %vm1344_vm5, %v1346_v49, %v1342_v31  ;;  %v1949_v63 = vxor.u32 %v1885_v0, %v1821_v59  ;;  %v1753_v28 = vadd.s32 %v1689_v52, %v3494_v3  ;;  %vm4795_vm6 = vcmp.eq.f32.partialorder %v1418_v47, 8.507059e+37 }
 0x2b8   :  { %vm2457_vm9 = vcmp.ge.s32.totalorder %v2393_v20, 1677722  ;;  %v2200_v44 = vmul.u32 2221713035, %v2136_v21  ;;  %v1348_v29 = vmul.f32 1.1111112, %v1347_v15  ;;  %vm1415_vm8 = vweird.f32 %v2923_v46 }
 0x2b9   :  { %v2925_v27 = vpop.eup %2924  ;;  %v2585_v56 = vsel %vm2457_vm9, %v2521_v18, 0.0  ;;  %v2013_v8 = vmul.u32 2146121005, %v1949_v63  ;;  %v1421_v36 = vor.u32 1.1754944e-38, %v1420_v1  ;;  %v1820_v38 = vxor.u32 %v3505_v30, %v1753_v28  ;;  %vm1416_vm11 = vmor %vm1414_vm7, %vm1415_vm8  ;;  %v4815_v1 = vpop.xlane.xlu2 %533 }
 0x2ba   :  { %2649 = vst [vmem:[#allocation7 + $0x1b0] sm:$0xff] %v2585_v56  ;;  %v2264_v41 = vshrl.u32 %v2200_v44, 16  ;;  %v1411_v60 = vsub.f32 1.0, %v1410_v58  ;;  %v1395_v45 = vmul.f32 %v2925_v27, %v4779_v24  ;;  %v1403_v48 = vand.u32 2147483647, %v4779_v24 }
 0x2bb   :  { %v2077_v62 = vshrl.u32 %v2013_v8, 15  ;;  %v1884_v12 = vshrl.u32 %v1820_v38, 16  ;;  %v1405_v11 = vand.u32 2147483648, %v4779_v24  ;;  %v2520_v50 = vmul.f32 %v3607_v13, %v1348_v29 }
 0x2bc   :  { %v2328_v53 = vxor.u32 %v2264_v41, %v2200_v44  ;;  %v1412_v57 = vmul.f32 %v2923_v46, %v1411_v60  ;;  %v1396_v61 = vsub.f32 1.0, %v1395_v45  ;;  %v1557_v43 = vadd.s32 448, %v3475_v33 }
 0x2bd   :  { %v2141_v19 = vxor.u32 %v2077_v62, %v2013_v8  ;;  %v1948_v5 = vxor.u32 %v1884_v12, %v1820_v38  ;;  %2926 = vrcp.f32 %v4802_v9  ;;  %vm1400_vm10 = vweird.f32 %v2925_v27 }
 0x2be   :  { %v2392_v51 = vand.u32 16777215, %v2328_v53  ;;  %v1413_v55 = vadd.f32 %v2923_v46, %v1412_v57  ;;  %v1397_v39 = vmul.f32 %v2925_v27, %v1396_v61  ;;  %vm1399_vm12 = vweird.f32 %v4779_v24 }
 0x2bf   :  { %v2205_v42 = vmul.u32 2221713035, %v2141_v19  ;;  %v2012_v4 = vmul.u32 2146121005, %v1948_v5  ;;  %v1688_v13 = vmul.u32 128, %v1557_v43  ;;  %v1406_v35 = vor.u32 1.1754944e-38, %v1405_v11  ;;  %vm1401_vm14 = vmor %vm1399_vm12, %vm1400_vm10 }
 0x2c0   :  { %vm2456_vm13 = vcmp.ge.s32.totalorder %v2392_v51, 1677722  ;;  %v1417_v14 = vsel %vm1416_vm11, %v2923_v46, %v1413_v55  ;;  %v1398_v2 = vadd.f32 %v2925_v27, %v1397_v39  ;;  %vm1404_vm15 = vcmp.eq.f32.partialorder %v1403_v48, 8.507059e+37 }
 0x2c1   :  { %v2584_v49 = vsel %vm2456_vm13, %v2520_v50, 0.0  ;;  %v2269_v59 = vshrl.u32 %v2205_v42, 16  ;;  %v1422_v6 = vsel %vm4795_vm6, %v1421_v36, %v1417_v14  ;;  %v2076_v10 = vshrl.u32 %v2012_v4, 15 }
 0x2c2   :  { %2648 = vst [vmem:[#allocation7 + $0x1a8] sm:$0xff] %v2584_v49  ;;  %v1423_v7 = vmul.f32 1.1111112, %v1422_v6  ;;  %v1402_v23 = vsel %vm1401_vm14, %v2925_v27, %v1398_v2  ;;  %v1752_v37 = vadd.s32 %v1688_v13, %v3494_v3  ;;  %vm1384_vm0 = vweird.f32 %v4802_v9  ;;  %v4825_v27 = vpop.xlane.xlu1 %531 }
 0x2c3   :  { %v2927_v47 = vpop.eup %2926  ;;  %v2333_v24 = vxor.u32 %v2269_v59, %v2205_v42  ;;  %v2140_v18 = vxor.u32 %v2076_v10, %v2012_v4  ;;  %v1407_v0 = vsel %vm1404_vm15, %v1406_v35, %v1402_v23  ;;  %v1390_v15 = vand.u32 2147483648, %v4802_v9 }
 0x2c4   :  { %v2525_v52 = vmul.f32 %v3652_v40, %v1423_v7  ;;  %v1819_v20 = vxor.u32 %v3505_v30, %v1752_v37  ;;  %v1380_v21 = vmul.f32 %v2927_v47, %v4802_v9  ;;  %v1562_v63 = vadd.s32 488, %v3475_v33 }
 0x2c5   :  { %v2397_v31 = vand.u32 16777215, %v2333_v24  ;;  %v2204_v46 = vmul.u32 2221713035, %v2140_v18  ;;  %v1408_v28 = vmul.f32 1.1111112, %v1407_v0  ;;  %2928 = vrcp.f32 %v4815_v1 }
 0x2c6   :  { %v1883_v44 = vshrl.u32 %v1819_v20, 16  ;;  %v1381_v29 = vsub.f32 1.0, %v1380_v21  ;;  %v1388_v40 = vand.u32 2147483647, %v4802_v9  ;;  %v1693_v54 = vmul.u32 128, %v1562_v63 }
 0x2c7   :  { %vm2461_vm1 = vcmp.ge.s32.totalorder %v2397_v31, 1677722  ;;  %v2268_v58 = vshrl.u32 %v2204_v46, 16  ;;  %vm1385_vm2 = vweird.f32 %v2927_v47  ;;  %v1391_v41 = vor.u32 1.1754944e-38, %v1390_v15 }
 0x2c8   :  { %v2589_v56 = vsel %vm2461_vm1, %v2525_v52, 0.0  ;;  %v1947_v8 = vxor.u32 %v1883_v44, %v1819_v20  ;;  %v1382_v36 = vmul.f32 %v2927_v47, %v1381_v29  ;;  %v1757_v60 = vadd.s32 %v1693_v54, %v3494_v3  ;;  %vm1386_vm3 = vmor %vm1384_vm0, %vm1385_vm2 }
 0x2c9   :  { %2653 = vst [vmem:[#allocation7 + $0x1d0] sm:$0xff] %v2589_v56  ;;  %v2332_v38 = vxor.u32 %v2268_v58, %v2204_v46  ;;  %v1561_v45 = vadd.s32 480, %v3475_v33  ;;  %v2524_v48 = vmul.f32 %v3657_v34, %v1408_v28  ;;  %2930 = vrcp.f32 %v4825_v27 }
 0x2ca   :  { %v2011_v62 = vmul.u32 2146121005, %v1947_v8  ;;  %v1383_v12 = vadd.f32 %v2927_v47, %v1382_v36  ;;  %v1824_v53 = vxor.u32 %v3505_v30, %v1757_v60  ;;  %v1463_v50 = vand.u32 2147483647, %v4815_v1 }
 0x2cb   :  { %v2396_v11 = vand.u32 16777215, %v2332_v38  ;;  %v1692_v57 = vmul.u32 128, %v1561_v45  ;;  %v2929_v61 = vpop.eup %2928  ;;  %vm1389_vm4 = vcmp.eq.f32.partialorder %v1388_v40, 8.507059e+37  ;;  %v1465_v43 = vand.u32 2147483648, %v4815_v1 }
 0x2cc   :  { %v2075_v19 = vshrl.u32 %v2011_v62, 15  ;;  %v1387_v5 = vsel %vm1386_vm3, %v2927_v47, %v1383_v12  ;;  %v1888_v51 = vshrl.u32 %v1824_v53, 16  ;;  %v1455_v55 = vmul.f32 %v2929_v61, %v4815_v1  ;;  %v4846_v47 = vpop.xlane.xlu0 %529 }
 0x2cd   :  { %vm2460_vm5 = vcmp.ge.s32.totalorder %v2396_v11, 1677722  ;;  %v1392_v34 = vsel %vm1389_vm4, %v1391_v41, %v1387_v5  ;;  %vm1459_vm7 = vweird.f32 %v4815_v1  ;;  %vm4838_vm9 = vcmp.eq.f32.partialorder %v1463_v50, 8.507059e+37 }
 0x2ce   :  { %v2588_v39 = vsel %vm2460_vm5, %v2524_v48, 0.0  ;;  %v2139_v42 = vxor.u32 %v2075_v19, %v2011_v62  ;;  %v1393_v9 = vmul.f32 1.1111112, %v1392_v34  ;;  %v1952_v4 = vxor.u32 %v1888_v51, %v1824_v53 }
 0x2cf   :  { %2652 = vst [vmem:[#allocation7 + $0x1c8] sm:$0xff] %v2588_v39  ;;  %v1456_v13 = vsub.f32 1.0, %v1455_v55  ;;  %v1756_v2 = vadd.s32 %v1692_v57, %v3494_v3  ;;  %v2931_v35 = vpop.eup %2930  ;;  %vm1460_vm6 = vweird.f32 %v2929_v61  ;;  %v1466_v59 = vor.u32 1.1754944e-38, %v1465_v43  ;;  %v4861_v57 = vpop.xlane.xlu1 %537 }
 0x2d0   :  { %v2203_v49 = vmul.u32 2221713035, %v2139_v42  ;;  %v1560_v6 = vadd.s32 472, %v3475_v33  ;;  %v2016_v10 = vmul.u32 2146121005, %v1952_v4  ;;  %v1440_v37 = vmul.f32 %v2931_v35, %v4825_v27  ;;  %vm1461_vm8 = vmor %vm1459_vm7, %vm1460_vm6 }
 0x2d1   :  { %v1457_v7 = vmul.f32 %v2929_v61, %v1456_v13  ;;  %v1823_v23 = vxor.u32 %v3505_v30, %v1756_v2  ;;  %v2523_v18 = vmul.f32 %v3623_v22, %v1393_v9  ;;  %v1448_v0 = vand.u32 2147483647, %v4825_v27 }
 0x2d2   :  { %v2267_v24 = vshrl.u32 %v2203_v49, 16  ;;  %v1691_v52 = vmul.u32 128, %v1560_v6  ;;  %v2080_v20 = vshrl.u32 %v2016_v10, 15  ;;  %v1441_v46 = vsub.f32 1.0, %v1440_v37 }
 0x2d3   :  { %v1458_v21 = vadd.f32 %v2929_v61, %v1457_v7  ;;  %v1887_v31 = vshrl.u32 %v1823_v23, 16  ;;  %v1450_v63 = vand.u32 2147483648, %v4825_v27  ;;  %2932 = vrcp.f32 %v4846_v47 }
 0x2d4   :  { %v2331_v15 = vxor.u32 %v2267_v24, %v2203_v49  ;;  %v1755_v28 = vadd.s32 %v1691_v52, %v3494_v3  ;;  %v2144_v44 = vxor.u32 %v2080_v20, %v2016_v10  ;;  %v1442_v58 = vmul.f32 %v2931_v35, %v1441_v46 }
 0x2d5   :  { %v1462_v22 = vsel %vm1461_vm8, %v2929_v61, %v1458_v21  ;;  %v1951_v29 = vxor.u32 %v1887_v31, %v1823_v23  ;;  %vm1445_vm10 = vweird.f32 %v2931_v35  ;;  %vm1444_vm12 = vweird.f32 %v4825_v27 }
 0x2d6   :  { %v2395_v40 = vand.u32 16777215, %v2331_v15  ;;  %v1467_v54 = vsel %vm4838_vm9, %v1466_v59, %v1462_v22  ;;  %v1822_v56 = vxor.u32 %v3505_v30, %v1755_v28  ;;  %v2208_v8 = vmul.u32 2221713035, %v2144_v44  ;;  %vm1446_vm13 = vmor %vm1444_vm12, %vm1445_vm10 }
 0x2d7   :  { %v2015_v1 = vmul.u32 2146121005, %v1951_v29  ;;  %v1443_v36 = vadd.f32 %v2931_v35, %v1442_v58  ;;  %v1468_v38 = vmul.f32 1.1111112, %v1467_v54  ;;  %v1451_v62 = vor.u32 1.1754944e-38, %v1450_v63 }
 0x2d8   :  { %vm2459_vm11 = vcmp.ge.s32.totalorder %v2395_v40, 1677722  ;;  %v1886_v41 = vshrl.u32 %v1822_v56, 16  ;;  %v2272_v45 = vshrl.u32 %v2208_v8, 16  ;;  %vm1449_vm14 = vcmp.eq.f32.partialorder %v1448_v0, 8.507059e+37 }
 0x2d9   :  { %v2587_v60 = vsel %vm2459_vm11, %v2523_v18, 0.0  ;;  %v2079_v48 = vshrl.u32 %v2015_v1, 15  ;;  %v2933_v12 = vpop.eup %2932  ;;  %v1447_v11 = vsel %vm1446_vm13, %v2931_v35, %v1443_v36  ;;  %v1564_v50 = vadd.s32 504, %v3475_v33 }
 0x2da   :  { %2651 = vst [vmem:[#allocation7 + $0x1c0] sm:$0xff] %v2587_v60  ;;  %v1950_v53 = vxor.u32 %v1886_v41, %v1822_v56  ;;  %v2336_v61 = vxor.u32 %v2272_v45, %v2208_v8  ;;  %v1452_v5 = vsel %vm1449_vm14, %v1451_v62, %v1447_v11  ;;  %v1425_v27 = vmul.f32 %v2933_v12, %v4846_v47 }
 0x2db   :  { %v2143_v19 = vxor.u32 %v2079_v48, %v2015_v1  ;;  %v2528_v43 = vmul.f32 %v3704_v32, %v1468_v38  ;;  %v1435_v51 = vand.u32 2147483648, %v4846_v47  ;;  %v1695_v55 = vmul.u32 128, %v1564_v50  ;;  %v4869_v32 = vpop.xlane.xlu0 %535 }
 0x2dc   :  { %v2014_v34 = vmul.u32 2146121005, %v1950_v53  ;;  %v2400_v39 = vand.u32 16777215, %v2336_v61  ;;  %v1426_v9 = vsub.f32 1.0, %v1425_v27  ;;  %2934 = vrcp.f32 %v4861_v57 }
 0x2dd   :  { %v2207_v42 = vmul.u32 2221713035, %v2143_v19  ;;  %v1453_v4 = vmul.f32 1.1111112, %v1452_v5  ;;  %v1433_v14 = vand.u32 2147483647, %v4846_v47  ;;  %v1759_v2 = vadd.s32 %v1695_v55, %v3494_v3 }
 0x2de   :  { %v2078_v13 = vshrl.u32 %v2014_v34, 15  ;;  %vm2464_vm15 = vcmp.ge.s32.totalorder %v2400_v39, 1677722  ;;  %v1427_v49 = vmul.f32 %v2933_v12, %v1426_v9  ;;  %vm1430_vm0 = vweird.f32 %v2933_v12 }
 0x2df   :  { %v2271_v35 = vshrl.u32 %v2207_v42, 16  ;;  %v2592_v59 = vsel %vm2464_vm15, %v2528_v43, 0.0  ;;  %vm1429_vm1 = vweird.f32 %v4846_v47  ;;  %v1826_v10 = vxor.u32 %v3505_v30, %v1759_v2 }
 0x2e0   :  { %v2142_v6 = vxor.u32 %v2078_v13, %v2014_v34  ;;  %2656 = vst [vmem:[#allocation7 + $0x1e8] sm:$0xff] %v2592_v59  ;;  %v1428_v23 = vadd.f32 %v2933_v12, %v1427_v49  ;;  %v1436_v37 = vor.u32 1.1754944e-38, %v1435_v51  ;;  %v1563_v24 = vadd.s32 496, %v3475_v33  ;;  %vm1431_vm2 = vmor %vm1429_vm1, %vm1430_vm0 }
 0x2e1   :  { %v2335_v7 = vxor.u32 %v2271_v35, %v2207_v42  ;;  %v2527_v18 = vmul.f32 %v3721_v16, %v1453_v4  ;;  %v1890_v52 = vshrl.u32 %v1826_v10, 16  ;;  %2936 = vrcp.f32 %v4869_v32 }
 0x2e2   :  { %v2206_v0 = vmul.u32 2221713035, %v2142_v6  ;;  %v2935_v20 = vpop.eup %2934  ;;  %v1432_v31 = vsel %vm1431_vm2, %v2933_v12, %v1428_v23  ;;  %vm1434_vm3 = vcmp.eq.f32.partialorder %v1433_v14, 8.507059e+37  ;;  %v1694_v47 = vmul.u32 128, %v1563_v24 }
 0x2e3   :  { %v2399_v21 = vand.u32 16777215, %v2335_v7  ;;  %v1437_v15 = vsel %vm1434_vm3, %v1436_v37, %v1432_v31  ;;  %v1954_v63 = vxor.u32 %v1890_v52, %v1826_v10  ;;  %v1485_v28 = vmul.f32 %v2935_v20, %v4861_v57 }
 0x2e4   :  { %v2270_v46 = vshrl.u32 %v2206_v0, 16  ;;  %v1438_v44 = vmul.f32 1.1111112, %v1437_v15  ;;  %v1493_v33 = vand.u32 2147483647, %v4861_v57  ;;  %v1758_v16 = vadd.s32 %v1694_v47, %v3494_v3 }
 0x2e5   :  { %vm2463_vm4 = vcmp.ge.s32.totalorder %v2399_v21, 1677722  ;;  %v2018_v58 = vmul.u32 2146121005, %v1954_v63  ;;  %v1486_v40 = vsub.f32 1.0, %v1485_v28  ;;  %v1495_v56 = vand.u32 2147483648, %v4861_v57 }
 0x2e6   :  { %v2591_v22 = vsel %vm2463_vm4, %v2527_v18, 0.0  ;;  %v2334_v29 = vxor.u32 %v2270_v46, %v2206_v0  ;;  %v2526_v54 = vmul.f32 %v3645_v26, %v1438_v44  ;;  %v1825_v8 = vxor.u32 %v3505_v30, %v1758_v16 }
 0x2e7   :  { %2655 = vst [vmem:[#allocation7 + $0x1e0] sm:$0xff] %v2591_v22  ;;  %v2937_v1 = vpop.eup %2936  ;;  %v2082_v38 = vshrl.u32 %v2018_v58, 15  ;;  %v1487_v41 = vmul.f32 %v2935_v20, %v1486_v40  ;;  %vm1490_vm5 = vweird.f32 %v2935_v20  ;;  %vm1489_vm7 = vweird.f32 %v4861_v57 }
 0x2e8   :  { %v2398_v36 = vand.u32 16777215, %v2334_v29  ;;  %v1889_v60 = vshrl.u32 %v1825_v8, 16  ;;  %v1470_v3 = vmul.f32 %v2937_v1, %v4869_v32  ;;  %vm1494_vm6 = vcmp.eq.f32.partialorder %v1493_v33, 8.507059e+37  ;;  %vm1491_vm8 = vmor %vm1489_vm7, %vm1490_vm5 }
 0x2e9   :  { %v2146_v45 = vxor.u32 %v2082_v38, %v2018_v58  ;;  %v1488_v48 = vadd.f32 %v2935_v20, %v1487_v41  ;;  %v1496_v26 = vor.u32 1.1754944e-38, %v1495_v56  ;;  %v1478_v50 = vand.u32 2147483647, %v4869_v32 }
 0x2ea   :  { %vm2462_vm9 = vcmp.ge.s32.totalorder %v2398_v36, 1677722  ;;  %v1953_v12 = vxor.u32 %v1889_v60, %v1825_v8  ;;  %v1471_v11 = vsub.f32 1.0, %v1470_v3  ;;  %v1480_v61 = vand.u32 2147483648, %v4869_v32 }
 0x2eb   :  { %v2590_v62 = vsel %vm2462_vm9, %v2526_v54, 0.0  ;;  %v2210_v30 = vmul.u32 2221713035, %v2146_v45  ;;  %v1492_v53 = vsel %vm1491_vm8, %v2935_v20, %v1488_v48  ;;  %vm1475_vm10 = vweird.f32 %v2937_v1 }
 0x2ec   :  { %2654 = vst [vmem:[#allocation7 + $0x1d8] sm:$0xff] %v2590_v62  ;;  %v1497_v57 = vsel %vm1494_vm6, %v1496_v26, %v1492_v53  ;;  %v2017_v19 = vmul.u32 2146121005, %v1953_v12  ;;  %v1472_v5 = vmul.f32 %v2937_v1, %v1471_v11  ;;  %vm1474_vm11 = vweird.f32 %v4869_v32 }
 0x2ed   :  { %v2274_v27 = vshrl.u32 %v2210_v30, 16  ;;  %v1498_v43 = vmul.f32 1.1111112, %v1497_v57  ;;  %vm1476_vm12 = vmor %vm1474_vm11, %vm1475_vm10  ;;  %v1481_v39 = vor.u32 1.1754944e-38, %v1480_v61  ;;  %vm1479_vm13 = vcmp.eq.f32.partialorder %v1478_v50, 8.507059e+37 }
 0x2ee   :  { %v2081_v34 = vshrl.u32 %v2017_v19, 15  ;;  %v1473_v51 = vadd.f32 %v2937_v1, %v1472_v5 }
 0x2ef   :  { %v2338_v55 = vxor.u32 %v2274_v27, %v2210_v30  ;;  %v2530_v42 = vmul.f32 %v5094_v17, %v1498_v43 }
 0x2f0   :  { %v2145_v9 = vxor.u32 %v2081_v34, %v2017_v19  ;;  %v1477_v4 = vsel %vm1476_vm12, %v2937_v1, %v1473_v51 }
 0x2f1   :  { %v2402_v13 = vand.u32 16777215, %v2338_v55  ;;  %v1482_v14 = vsel %vm1479_vm13, %v1481_v39, %v1477_v4 }
 0x2f2   :  { %v2209_v2 = vmul.u32 2221713035, %v2145_v9  ;;  %v1483_v35 = vmul.f32 1.1111112, %v1482_v14 }
 0x2f3   :  { %vm2466_vm14 = vcmp.ge.s32.totalorder %v2402_v13, 1677722 }
 0x2f4   :  { %v2594_v49 = vsel %vm2466_vm14, %v2530_v42, 0.0  ;;  %v2273_v59 = vshrl.u32 %v2209_v2, 16  ;;  %v2529_v10 = vmul.f32 %v5097_v25, %v1483_v35 }
 0x2f5   :  { %2658 = vst [vmem:[#allocation7 + $0x1f8] sm:$0xff] %v2594_v49 }
 0x2f6   :  { %v2337_v6 = vxor.u32 %v2273_v59, %v2209_v2 }
 0x2f8   :  { %v2401_v17 = vand.u32 16777215, %v2337_v6 }
 0x2fa   :  { %vm2465_vm15 = vcmp.ge.s32.totalorder %v2401_v17, 1677722 }
 0x2fb   :  { %v2593_v32 = vsel %vm2465_vm15, %v2529_v10, 0.0 }
 0x2fc   :  { %2657 = vst [vmem:[#allocation7 + $0x1f0] sm:$0xff] %v2593_v32 }
 0x2fd   :  { %2671 = dma.vmem_to_hbm [thread:$0]  %s2664_s18, 8192, %s2666_s21, [#allocation6], %s2991_s14, %s2991_s14, %s2992_s15  }
 0x2fe   :  { %2988 = dma.done.wait [#allocation6], 8192  }
 0x2ff   :  { %2989 = vsyncadd [#allocation6], 4294959104 }
 0x300   :  { %2676 = vsyncpa [#allocation5], 1 }
 0x301   :  { %2677 = vsyncpa [#allocation6], 1 }

</bundles_post_ra>
